<compile_context>
chip_gen: v5e
topology: v5e:2x2
jax: 0.10.0
libtpu: 0.0.40
codegen_flags: <defaults>
</compile_context>

<pallas_src>
import math

import numpy as np

import jax
import jax.numpy as jnp
from jax.experimental import pallas as pl
from jax.experimental.pallas import tpu as pltpu


_LANE = 128
_SUBLANE = 8


def _round_up(v, m):
    return ((v + m - 1) // m) * m


def make_frequency_bands(num_frequencies, log_sampling=True):
    """Static Python-float frequency bands (matches torch.linspace semantics)."""
    max_frequency = float(num_frequencies - 1)
    lin = np.linspace(0.0, max_frequency, num_frequencies)
    if log_sampling:
        return tuple(float(2.0 ** v) for v in lin)
    return tuple(float(v) for v in lin)


def _make_fourier_kernel(freqs, num_channels):
    """Kernel body with frequencies baked in as constants.

    Refs: x_ref VMEM (C, TILE_S, 128), o_ref VMEM ((2F+1)*C, TILE_S, 128).
    """
    F = len(freqs)
    C = num_channels
    G = 2 * F + 1  # output rows per input channel

    def kernel(x_ref, o_ref):
        # Small static loops (C*(2F+1) rows) -> fully unrolled. Each store is
        # a full (TILE_S, 128) slab: unmasked, full-vreg vst.
        for c in range(C):
            xc = x_ref[c].astype(jnp.float32)              # (TILE_S, 128)
            o_ref[c * G] = xc.astype(o_ref.dtype)          # identity channel
            for j, f in enumerate(freqs):
                s = xc * f                                 # constant-folded mul
                o_ref[c * G + 1 + 2 * j] = jnp.sin(s).astype(o_ref.dtype)
                o_ref[c * G + 2 + 2 * j] = jnp.cos(s).astype(o_ref.dtype)

    return kernel


def fourier_embedding(x, num_frequencies, log_sampling=True,
                      tile_points=65536, channels_major_output=False):
    """Pallas TPU forward pass of FourierEmbedding.

    x:               f32[..., C]
    num_frequencies: F (static int)
    tile_points:     points per grid step (sweep 32K-128K; multiple of 1024)
    returns          f32[..., (2F+1)*C]   (or f32[(2F+1)*C, n] if
                     channels_major_output=True, n = prod(leading dims))
    """
    *lead, C = x.shape
    F = int(num_frequencies)
    G = 2 * F + 1
    out_ch = G * C
    freqs = make_frequency_bands(F, log_sampling)

    n = math.prod(lead) if lead else 1
    n_pad = _round_up(max(n, 1), _LANE)
    S = n_pad // _LANE                      # number of 128-lane sublane-rows

    # --- tile size in sublane-rows (each row = 128 points) ---
    tile_s = max(_SUBLANE, (int(tile_points) // _LANE) // _SUBLANE * _SUBLANE)
    # Cap so double-buffered in+out stays well under v7x's 64 MiB VMEM.
    itemsize = jnp.dtype(x.dtype).itemsize
    max_db_bytes = 40 << 20
    bytes_per_row = (C + out_ch) * _LANE * itemsize * 2     # double-buffered
    tile_s = min(tile_s,
                 max(_SUBLANE, (max_db_bytes // bytes_per_row) // _SUBLANE * _SUBLANE))
    # Don't use a block much bigger than the data.
    tile_s = min(tile_s, _round_up(S, _SUBLANE))
    # Keep >= 2 grid steps when there is enough data (2 TensorCores on v7x).
    if S > 2 * _SUBLANE and pl.cdiv(S, tile_s) < 2:
        tile_s = max(_SUBLANE, _round_up(pl.cdiv(S, 2), _SUBLANE))

    # Channels-major, lane-folded input view: (C, S, 128).
    xt = x.reshape(n, C).T                                  # (C, n)
    if n_pad != n:
        xt = jnp.pad(xt, ((0, 0), (0, n_pad - n)))
    x3 = xt.reshape(C, S, _LANE)

    grid = (pl.cdiv(S, tile_s),)

    out3 = pl.pallas_call(
        _make_fourier_kernel(freqs, C),
        grid=grid,
        in_specs=[pl.BlockSpec((C, tile_s, _LANE), lambda i: (0, i, 0))],
        out_specs=pl.BlockSpec((out_ch, tile_s, _LANE), lambda i: (0, i, 0)),
        out_shape=jax.ShapeDtypeStruct((out_ch, S, _LANE), x.dtype),
        compiler_params=pltpu.CompilerParams(
            dimension_semantics=("parallel",),
            vmem_limit_bytes=48 << 20,      # v5e scoped default (16 MiB) is too small
        ),
    )(x3)

    out_cm = out3.reshape(out_ch, n_pad)[:, :n]             # (out_ch, n)
    if channels_major_output:
        return out_cm
    # Match the torch module's (..., out_ch) layout (extra pass over the
    # 9x-expanded output; prefer channels_major_output=True when the consumer
    # can take channels-major directly).
    return out_cm.T.reshape(*lead, out_ch)


def fourier_embedding_ref(x, num_frequencies, log_sampling=True):
    """Pure-JAX reference with identical per-scalar channel ordering."""
    *lead, C = x.shape
    F = int(num_frequencies)
    freq = jnp.asarray(make_frequency_bands(F, log_sampling), dtype=x.dtype)
    scaled = x[..., :, None] * freq[None, :]                      # (..., C, F)
    sc = jnp.stack([jnp.sin(scaled), jnp.cos(scaled)], axis=-1)   # (..., C, F, 2)
    sc = sc.reshape(*lead, C, 2 * F)
    out = jnp.concatenate([x[..., :, None], sc], axis=-1)         # (..., C, 2F+1)
    return out.reshape(*lead, (2 * F + 1) * C)


if __name__ == "__main__":
    num_input_channels = 3      # 3-D sample coordinates
    num_frequencies = 4
    batch, pts = 2, 600         # n = 1200 flattened points (pads to 1280)

    key = jax.random.PRNGKey(0)
    x = jax.random.normal(key, (batch, pts, num_input_channels), dtype=jnp.float32)

    # Small tile (1024 points -> TILE_S=8) so the test exercises a multi-step
    # grid and a ragged last block; production default is tile_points=65536.
    out = fourier_embedding(x, num_frequencies, log_sampling=True, tile_points=1024)
    out = jax.block_until_ready(out)

    expected_shape = (batch, pts, (2 * num_frequencies + 1) * num_input_channels)
    assert out.shape == expected_shape, (out.shape, expected_shape)

    ref = fourier_embedding_ref(x, num_frequencies, log_sampling=True)
    err = float(jnp.abs(out - ref).max())
    assert jnp.allclose(out, ref, atol=1e-5, rtol=1e-5), err

    # Channels-major fast path (skips the output transpose).
    out_cm = fourier_embedding(x, num_frequencies, log_sampling=True,
                               tile_points=1024, channels_major_output=True)
    out_cm = jax.block_until_ready(out_cm)
    ref_cm = ref.reshape(-1, expected_shape[-1]).T
    assert out_cm.shape == ref_cm.shape, (out_cm.shape, ref_cm.shape)
    assert jnp.allclose(out_cm, ref_cm, atol=1e-5, rtol=1e-5)

    print("KERNEL_OK")
</pallas_src>

<mosaic_0001>
module attributes {stable_mosaic.version = 11 : i64} {
  func.func @kernel(%arg0: i32, %arg1: memref<3x8x128xf32, #tpu.memory_space<vmem>>, %arg2: memref<27x8x128xf32, #tpu.memory_space<vmem>>) attributes {dimension_semantics = [#tpu.dimension_semantics<parallel>], iteration_bounds = array<i64: 2>, scalar_prefetch = 0 : i64, scratch_operands = 0 : i64, tpu.core_type = #tpu.core_type<tc>, window_params = [{transform_indices = @transform_0, window_bounds = array<i64: 3, 8, 128>}, {transform_indices = @transform_1, window_bounds = array<i64: 27, 8, 128>}]} {
    %c0 = arith.constant 0 : index
    %c0_0 = arith.constant 0 : index
    %c0_1 = arith.constant 0 : index
    %0 = vector.load %arg1[%c0, %c0_0, %c0_1] : memref<3x8x128xf32, #tpu.memory_space<vmem>>, vector<1x8x128xf32>
    %1 = vector.shape_cast %0 : vector<1x8x128xf32> to vector<8x128xf32>
    %c0_2 = arith.constant 0 : index
    %c0_3 = arith.constant 0 : index
    %c0_4 = arith.constant 0 : index
    %2 = vector.load %arg2[%c0_2, %c0_3, %c0_4] : memref<27x8x128xf32, #tpu.memory_space<vmem>>, vector<1x8x128xf32>
    %3 = vector.shape_cast %2 : vector<1x8x128xf32> to vector<8x128xf32>
    %4 = vector.shape_cast %1 : vector<8x128xf32> to vector<1x8x128xf32>
    tpu.vector_store %arg2[%c0_2, %c0_3, %c0_4], %4 {strides = array<i32>} : memref<27x8x128xf32, #tpu.memory_space<vmem>>, vector<1x8x128xf32>,
    %cst = arith.constant 1.000000e+00 : f32
    %5 = vector.broadcast %cst : f32 to vector<8x128xf32>
    %6 = arith.mulf %1, %5 : vector<8x128xf32>
    %7 = math.sin %6 : vector<8x128xf32>
    %c1 = arith.constant 1 : index
    %c0_5 = arith.constant 0 : index
    %c0_6 = arith.constant 0 : index
    %8 = vector.load %arg2[%c1, %c0_5, %c0_6] : memref<27x8x128xf32, #tpu.memory_space<vmem>>, vector<1x8x128xf32>
    %9 = vector.shape_cast %8 : vector<1x8x128xf32> to vector<8x128xf32>
    %10 = vector.shape_cast %7 : vector<8x128xf32> to vector<1x8x128xf32>
    tpu.vector_store %arg2[%c1, %c0_5, %c0_6], %10 {strides = array<i32>} : memref<27x8x128xf32, #tpu.memory_space<vmem>>, vector<1x8x128xf32>,
    %11 = math.cos %6 : vector<8x128xf32>
    %c2 = arith.constant 2 : index
    %c0_7 = arith.constant 0 : index
    %c0_8 = arith.constant 0 : index
    %12 = vector.load %arg2[%c2, %c0_7, %c0_8] : memref<27x8x128xf32, #tpu.memory_space<vmem>>, vector<1x8x128xf32>
    %13 = vector.shape_cast %12 : vector<1x8x128xf32> to vector<8x128xf32>
    %14 = vector.shape_cast %11 : vector<8x128xf32> to vector<1x8x128xf32>
    tpu.vector_store %arg2[%c2, %c0_7, %c0_8], %14 {strides = array<i32>} : memref<27x8x128xf32, #tpu.memory_space<vmem>>, vector<1x8x128xf32>,
    %cst_9 = arith.constant 2.000000e+00 : f32
    %15 = vector.broadcast %cst_9 : f32 to vector<8x128xf32>
    %16 = arith.mulf %1, %15 : vector<8x128xf32>
    %17 = math.sin %16 : vector<8x128xf32>
    %c3 = arith.constant 3 : index
    %c0_10 = arith.constant 0 : index
    %c0_11 = arith.constant 0 : index
    %18 = vector.load %arg2[%c3, %c0_10, %c0_11] : memref<27x8x128xf32, #tpu.memory_space<vmem>>, vector<1x8x128xf32>
    %19 = vector.shape_cast %18 : vector<1x8x128xf32> to vector<8x128xf32>
    %20 = vector.shape_cast %17 : vector<8x128xf32> to vector<1x8x128xf32>
    tpu.vector_store %arg2[%c3, %c0_10, %c0_11], %20 {strides = array<i32>} : memref<27x8x128xf32, #tpu.memory_space<vmem>>, vector<1x8x128xf32>,
    %21 = math.cos %16 : vector<8x128xf32>
    %c4 = arith.constant 4 : index
    %c0_12 = arith.constant 0 : index
    %c0_13 = arith.constant 0 : index
    %22 = vector.load %arg2[%c4, %c0_12, %c0_13] : memref<27x8x128xf32, #tpu.memory_space<vmem>>, vector<1x8x128xf32>
    %23 = vector.shape_cast %22 : vector<1x8x128xf32> to vector<8x128xf32>
    %24 = vector.shape_cast %21 : vector<8x128xf32> to vector<1x8x128xf32>
    tpu.vector_store %arg2[%c4, %c0_12, %c0_13], %24 {strides = array<i32>} : memref<27x8x128xf32, #tpu.memory_space<vmem>>, vector<1x8x128xf32>,
    %cst_14 = arith.constant 4.000000e+00 : f32
    %25 = vector.broadcast %cst_14 : f32 to vector<8x128xf32>
    %26 = arith.mulf %1, %25 : vector<8x128xf32>
    %27 = math.sin %26 : vector<8x128xf32>
    %c5 = arith.constant 5 : index
    %c0_15 = arith.constant 0 : index
    %c0_16 = arith.constant 0 : index
    %28 = vector.load %arg2[%c5, %c0_15, %c0_16] : memref<27x8x128xf32, #tpu.memory_space<vmem>>, vector<1x8x128xf32>
    %29 = vector.shape_cast %28 : vector<1x8x128xf32> to vector<8x128xf32>
    %30 = vector.shape_cast %27 : vector<8x128xf32> to vector<1x8x128xf32>
    tpu.vector_store %arg2[%c5, %c0_15, %c0_16], %30 {strides = array<i32>} : memref<27x8x128xf32, #tpu.memory_space<vmem>>, vector<1x8x128xf32>,
    %31 = math.cos %26 : vector<8x128xf32>
    %c6 = arith.constant 6 : index
    %c0_17 = arith.constant 0 : index
    %c0_18 = arith.constant 0 : index
    %32 = vector.load %arg2[%c6, %c0_17, %c0_18] : memref<27x8x128xf32, #tpu.memory_space<vmem>>, vector<1x8x128xf32>
    %33 = vector.shape_cast %32 : vector<1x8x128xf32> to vector<8x128xf32>
    %34 = vector.shape_cast %31 : vector<8x128xf32> to vector<1x8x128xf32>
    tpu.vector_store %arg2[%c6, %c0_17, %c0_18], %34 {strides = array<i32>} : memref<27x8x128xf32, #tpu.memory_space<vmem>>, vector<1x8x128xf32>,
    %cst_19 = arith.constant 8.000000e+00 : f32
    %35 = vector.broadcast %cst_19 : f32 to vector<8x128xf32>
    %36 = arith.mulf %1, %35 : vector<8x128xf32>
    %37 = math.sin %36 : vector<8x128xf32>
    %c7 = arith.constant 7 : index
    %c0_20 = arith.constant 0 : index
    %c0_21 = arith.constant 0 : index
    %38 = vector.load %arg2[%c7, %c0_20, %c0_21] : memref<27x8x128xf32, #tpu.memory_space<vmem>>, vector<1x8x128xf32>
    %39 = vector.shape_cast %38 : vector<1x8x128xf32> to vector<8x128xf32>
    %40 = vector.shape_cast %37 : vector<8x128xf32> to vector<1x8x128xf32>
    tpu.vector_store %arg2[%c7, %c0_20, %c0_21], %40 {strides = array<i32>} : memref<27x8x128xf32, #tpu.memory_space<vmem>>, vector<1x8x128xf32>,
    %41 = math.cos %36 : vector<8x128xf32>
    %c8 = arith.constant 8 : index
    %c0_22 = arith.constant 0 : index
    %c0_23 = arith.constant 0 : index
    %42 = vector.load %arg2[%c8, %c0_22, %c0_23] : memref<27x8x128xf32, #tpu.memory_space<vmem>>, vector<1x8x128xf32>
    %43 = vector.shape_cast %42 : vector<1x8x128xf32> to vector<8x128xf32>
    %44 = vector.shape_cast %41 : vector<8x128xf32> to vector<1x8x128xf32>
    tpu.vector_store %arg2[%c8, %c0_22, %c0_23], %44 {strides = array<i32>} : memref<27x8x128xf32, #tpu.memory_space<vmem>>, vector<1x8x128xf32>,
    %c1_24 = arith.constant 1 : index
    %c0_25 = arith.constant 0 : index
    %c0_26 = arith.constant 0 : index
    %45 = vector.load %arg1[%c1_24, %c0_25, %c0_26] : memref<3x8x128xf32, #tpu.memory_space<vmem>>, vector<1x8x128xf32>
    %46 = vector.shape_cast %45 : vector<1x8x128xf32> to vector<8x128xf32>
    %c9 = arith.constant 9 : index
    %c0_27 = arith.constant 0 : index
    %c0_28 = arith.constant 0 : index
    %47 = vector.load %arg2[%c9, %c0_27, %c0_28] : memref<27x8x128xf32, #tpu.memory_space<vmem>>, vector<1x8x128xf32>
    %48 = vector.shape_cast %47 : vector<1x8x128xf32> to vector<8x128xf32>
    %49 = vector.shape_cast %46 : vector<8x128xf32> to vector<1x8x128xf32>
    tpu.vector_store %arg2[%c9, %c0_27, %c0_28], %49 {strides = array<i32>} : memref<27x8x128xf32, #tpu.memory_space<vmem>>, vector<1x8x128xf32>,
    %cst_29 = arith.constant 1.000000e+00 : f32
    %50 = vector.broadcast %cst_29 : f32 to vector<8x128xf32>
    %51 = arith.mulf %46, %50 : vector<8x128xf32>
    %52 = math.sin %51 : vector<8x128xf32>
    %c10 = arith.constant 10 : index
    %c0_30 = arith.constant 0 : index
    %c0_31 = arith.constant 0 : index
    %53 = vector.load %arg2[%c10, %c0_30, %c0_31] : memref<27x8x128xf32, #tpu.memory_space<vmem>>, vector<1x8x128xf32>
    %54 = vector.shape_cast %53 : vector<1x8x128xf32> to vector<8x128xf32>
    %55 = vector.shape_cast %52 : vector<8x128xf32> to vector<1x8x128xf32>
    tpu.vector_store %arg2[%c10, %c0_30, %c0_31], %55 {strides = array<i32>} : memref<27x8x128xf32, #tpu.memory_space<vmem>>, vector<1x8x128xf32>,
    %56 = math.cos %51 : vector<8x128xf32>
    %c11 = arith.constant 11 : index
    %c0_32 = arith.constant 0 : index
    %c0_33 = arith.constant 0 : index
    %57 = vector.load %arg2[%c11, %c0_32, %c0_33] : memref<27x8x128xf32, #tpu.memory_space<vmem>>, vector<1x8x128xf32>
    %58 = vector.shape_cast %57 : vector<1x8x128xf32> to vector<8x128xf32>
    %59 = vector.shape_cast %56 : vector<8x128xf32> to vector<1x8x128xf32>
    tpu.vector_store %arg2[%c11, %c0_32, %c0_33], %59 {strides = array<i32>} : memref<27x8x128xf32, #tpu.memory_space<vmem>>, vector<1x8x128xf32>,
    %cst_34 = arith.constant 2.000000e+00 : f32
    %60 = vector.broadcast %cst_34 : f32 to vector<8x128xf32>
    %61 = arith.mulf %46, %60 : vector<8x128xf32>
    %62 = math.sin %61 : vector<8x128xf32>
    %c12 = arith.constant 12 : index
    %c0_35 = arith.constant 0 : index
    %c0_36 = arith.constant 0 : index
    %63 = vector.load %arg2[%c12, %c0_35, %c0_36] : memref<27x8x128xf32, #tpu.memory_space<vmem>>, vector<1x8x128xf32>
    %64 = vector.shape_cast %63 : vector<1x8x128xf32> to vector<8x128xf32>
    %65 = vector.shape_cast %62 : vector<8x128xf32> to vector<1x8x128xf32>
    tpu.vector_store %arg2[%c12, %c0_35, %c0_36], %65 {strides = array<i32>} : memref<27x8x128xf32, #tpu.memory_space<vmem>>, vector<1x8x128xf32>,
    %66 = math.cos %61 : vector<8x128xf32>
    %c13 = arith.constant 13 : index
    %c0_37 = arith.constant 0 : index
    %c0_38 = arith.constant 0 : index
    %67 = vector.load %arg2[%c13, %c0_37, %c0_38] : memref<27x8x128xf32, #tpu.memory_space<vmem>>, vector<1x8x128xf32>
    %68 = vector.shape_cast %67 : vector<1x8x128xf32> to vector<8x128xf32>
    %69 = vector.shape_cast %66 : vector<8x128xf32> to vector<1x8x128xf32>
    tpu.vector_store %arg2[%c13, %c0_37, %c0_38], %69 {strides = array<i32>} : memref<27x8x128xf32, #tpu.memory_space<vmem>>, vector<1x8x128xf32>,
    %cst_39 = arith.constant 4.000000e+00 : f32
    %70 = vector.broadcast %cst_39 : f32 to vector<8x128xf32>
    %71 = arith.mulf %46, %70 : vector<8x128xf32>
    %72 = math.sin %71 : vector<8x128xf32>
    %c14 = arith.constant 14 : index
    %c0_40 = arith.constant 0 : index
    %c0_41 = arith.constant 0 : index
    %73 = vector.load %arg2[%c14, %c0_40, %c0_41] : memref<27x8x128xf32, #tpu.memory_space<vmem>>, vector<1x8x128xf32>
    %74 = vector.shape_cast %73 : vector<1x8x128xf32> to vector<8x128xf32>
    %75 = vector.shape_cast %72 : vector<8x128xf32> to vector<1x8x128xf32>
    tpu.vector_store %arg2[%c14, %c0_40, %c0_41], %75 {strides = array<i32>} : memref<27x8x128xf32, #tpu.memory_space<vmem>>, vector<1x8x128xf32>,
    %76 = math.cos %71 : vector<8x128xf32>
    %c15 = arith.constant 15 : index
    %c0_42 = arith.constant 0 : index
    %c0_43 = arith.constant 0 : index
    %77 = vector.load %arg2[%c15, %c0_42, %c0_43] : memref<27x8x128xf32, #tpu.memory_space<vmem>>, vector<1x8x128xf32>
    %78 = vector.shape_cast %77 : vector<1x8x128xf32> to vector<8x128xf32>
    %79 = vector.shape_cast %76 : vector<8x128xf32> to vector<1x8x128xf32>
    tpu.vector_store %arg2[%c15, %c0_42, %c0_43], %79 {strides = array<i32>} : memref<27x8x128xf32, #tpu.memory_space<vmem>>, vector<1x8x128xf32>,
    %cst_44 = arith.constant 8.000000e+00 : f32
    %80 = vector.broadcast %cst_44 : f32 to vector<8x128xf32>
    %81 = arith.mulf %46, %80 : vector<8x128xf32>
    %82 = math.sin %81 : vector<8x128xf32>
    %c16 = arith.constant 16 : index
    %c0_45 = arith.constant 0 : index
    %c0_46 = arith.constant 0 : index
    %83 = vector.load %arg2[%c16, %c0_45, %c0_46] : memref<27x8x128xf32, #tpu.memory_space<vmem>>, vector<1x8x128xf32>
    %84 = vector.shape_cast %83 : vector<1x8x128xf32> to vector<8x128xf32>
    %85 = vector.shape_cast %82 : vector<8x128xf32> to vector<1x8x128xf32>
    tpu.vector_store %arg2[%c16, %c0_45, %c0_46], %85 {strides = array<i32>} : memref<27x8x128xf32, #tpu.memory_space<vmem>>, vector<1x8x128xf32>,
    %86 = math.cos %81 : vector<8x128xf32>
    %c17 = arith.constant 17 : index
    %c0_47 = arith.constant 0 : index
    %c0_48 = arith.constant 0 : index
    %87 = vector.load %arg2[%c17, %c0_47, %c0_48] : memref<27x8x128xf32, #tpu.memory_space<vmem>>, vector<1x8x128xf32>
    %88 = vector.shape_cast %87 : vector<1x8x128xf32> to vector<8x128xf32>
    %89 = vector.shape_cast %86 : vector<8x128xf32> to vector<1x8x128xf32>
    tpu.vector_store %arg2[%c17, %c0_47, %c0_48], %89 {strides = array<i32>} : memref<27x8x128xf32, #tpu.memory_space<vmem>>, vector<1x8x128xf32>,
    %c2_49 = arith.constant 2 : index
    %c0_50 = arith.constant 0 : index
    %c0_51 = arith.constant 0 : index
    %90 = vector.load %arg1[%c2_49, %c0_50, %c0_51] : memref<3x8x128xf32, #tpu.memory_space<vmem>>, vector<1x8x128xf32>
    %91 = vector.shape_cast %90 : vector<1x8x128xf32> to vector<8x128xf32>
    %c18 = arith.constant 18 : index
    %c0_52 = arith.constant 0 : index
    %c0_53 = arith.constant 0 : index
    %92 = vector.load %arg2[%c18, %c0_52, %c0_53] : memref<27x8x128xf32, #tpu.memory_space<vmem>>, vector<1x8x128xf32>
    %93 = vector.shape_cast %92 : vector<1x8x128xf32> to vector<8x128xf32>
    %94 = vector.shape_cast %91 : vector<8x128xf32> to vector<1x8x128xf32>
    tpu.vector_store %arg2[%c18, %c0_52, %c0_53], %94 {strides = array<i32>} : memref<27x8x128xf32, #tpu.memory_space<vmem>>, vector<1x8x128xf32>,
    %cst_54 = arith.constant 1.000000e+00 : f32
    %95 = vector.broadcast %cst_54 : f32 to vector<8x128xf32>
    %96 = arith.mulf %91, %95 : vector<8x128xf32>
    %97 = math.sin %96 : vector<8x128xf32>
    %c19 = arith.constant 19 : index
    %c0_55 = arith.constant 0 : index
    %c0_56 = arith.constant 0 : index
    %98 = vector.load %arg2[%c19, %c0_55, %c0_56] : memref<27x8x128xf32, #tpu.memory_space<vmem>>, vector<1x8x128xf32>
    %99 = vector.shape_cast %98 : vector<1x8x128xf32> to vector<8x128xf32>
    %100 = vector.shape_cast %97 : vector<8x128xf32> to vector<1x8x128xf32>
    tpu.vector_store %arg2[%c19, %c0_55, %c0_56], %100 {strides = array<i32>} : memref<27x8x128xf32, #tpu.memory_space<vmem>>, vector<1x8x128xf32>,
    %101 = math.cos %96 : vector<8x128xf32>
    %c20 = arith.constant 20 : index
    %c0_57 = arith.constant 0 : index
    %c0_58 = arith.constant 0 : index
    %102 = vector.load %arg2[%c20, %c0_57, %c0_58] : memref<27x8x128xf32, #tpu.memory_space<vmem>>, vector<1x8x128xf32>
    %103 = vector.shape_cast %102 : vector<1x8x128xf32> to vector<8x128xf32>
    %104 = vector.shape_cast %101 : vector<8x128xf32> to vector<1x8x128xf32>
    tpu.vector_store %arg2[%c20, %c0_57, %c0_58], %104 {strides = array<i32>} : memref<27x8x128xf32, #tpu.memory_space<vmem>>, vector<1x8x128xf32>,
    %cst_59 = arith.constant 2.000000e+00 : f32
    %105 = vector.broadcast %cst_59 : f32 to vector<8x128xf32>
    %106 = arith.mulf %91, %105 : vector<8x128xf32>
    %107 = math.sin %106 : vector<8x128xf32>
    %c21 = arith.constant 21 : index
    %c0_60 = arith.constant 0 : index
    %c0_61 = arith.constant 0 : index
    %108 = vector.load %arg2[%c21, %c0_60, %c0_61] : memref<27x8x128xf32, #tpu.memory_space<vmem>>, vector<1x8x128xf32>
    %109 = vector.shape_cast %108 : vector<1x8x128xf32> to vector<8x128xf32>
    %110 = vector.shape_cast %107 : vector<8x128xf32> to vector<1x8x128xf32>
    tpu.vector_store %arg2[%c21, %c0_60, %c0_61], %110 {strides = array<i32>} : memref<27x8x128xf32, #tpu.memory_space<vmem>>, vector<1x8x128xf32>,
    %111 = math.cos %106 : vector<8x128xf32>
    %c22 = arith.constant 22 : index
    %c0_62 = arith.constant 0 : index
    %c0_63 = arith.constant 0 : index
    %112 = vector.load %arg2[%c22, %c0_62, %c0_63] : memref<27x8x128xf32, #tpu.memory_space<vmem>>, vector<1x8x128xf32>
    %113 = vector.shape_cast %112 : vector<1x8x128xf32> to vector<8x128xf32>
    %114 = vector.shape_cast %111 : vector<8x128xf32> to vector<1x8x128xf32>
    tpu.vector_store %arg2[%c22, %c0_62, %c0_63], %114 {strides = array<i32>} : memref<27x8x128xf32, #tpu.memory_space<vmem>>, vector<1x8x128xf32>,
    %cst_64 = arith.constant 4.000000e+00 : f32
    %115 = vector.broadcast %cst_64 : f32 to vector<8x128xf32>
    %116 = arith.mulf %91, %115 : vector<8x128xf32>
    %117 = math.sin %116 : vector<8x128xf32>
    %c23 = arith.constant 23 : index
    %c0_65 = arith.constant 0 : index
    %c0_66 = arith.constant 0 : index
    %118 = vector.load %arg2[%c23, %c0_65, %c0_66] : memref<27x8x128xf32, #tpu.memory_space<vmem>>, vector<1x8x128xf32>
    %119 = vector.shape_cast %118 : vector<1x8x128xf32> to vector<8x128xf32>
    %120 = vector.shape_cast %117 : vector<8x128xf32> to vector<1x8x128xf32>
    tpu.vector_store %arg2[%c23, %c0_65, %c0_66], %120 {strides = array<i32>} : memref<27x8x128xf32, #tpu.memory_space<vmem>>, vector<1x8x128xf32>,
    %121 = math.cos %116 : vector<8x128xf32>
    %c24 = arith.constant 24 : index
    %c0_67 = arith.constant 0 : index
    %c0_68 = arith.constant 0 : index
    %122 = vector.load %arg2[%c24, %c0_67, %c0_68] : memref<27x8x128xf32, #tpu.memory_space<vmem>>, vector<1x8x128xf32>
    %123 = vector.shape_cast %122 : vector<1x8x128xf32> to vector<8x128xf32>
    %124 = vector.shape_cast %121 : vector<8x128xf32> to vector<1x8x128xf32>
    tpu.vector_store %arg2[%c24, %c0_67, %c0_68], %124 {strides = array<i32>} : memref<27x8x128xf32, #tpu.memory_space<vmem>>, vector<1x8x128xf32>,
    %cst_69 = arith.constant 8.000000e+00 : f32
    %125 = vector.broadcast %cst_69 : f32 to vector<8x128xf32>
    %126 = arith.mulf %91, %125 : vector<8x128xf32>
    %127 = math.sin %126 : vector<8x128xf32>
    %c25 = arith.constant 25 : index
    %c0_70 = arith.constant 0 : index
    %c0_71 = arith.constant 0 : index
    %128 = vector.load %arg2[%c25, %c0_70, %c0_71] : memref<27x8x128xf32, #tpu.memory_space<vmem>>, vector<1x8x128xf32>
    %129 = vector.shape_cast %128 : vector<1x8x128xf32> to vector<8x128xf32>
    %130 = vector.shape_cast %127 : vector<8x128xf32> to vector<1x8x128xf32>
    tpu.vector_store %arg2[%c25, %c0_70, %c0_71], %130 {strides = array<i32>} : memref<27x8x128xf32, #tpu.memory_space<vmem>>, vector<1x8x128xf32>,
    %131 = math.cos %126 : vector<8x128xf32>
    %c26 = arith.constant 26 : index
    %c0_72 = arith.constant 0 : index
    %c0_73 = arith.constant 0 : index
    %132 = vector.load %arg2[%c26, %c0_72, %c0_73] : memref<27x8x128xf32, #tpu.memory_space<vmem>>, vector<1x8x128xf32>
    %133 = vector.shape_cast %132 : vector<1x8x128xf32> to vector<8x128xf32>
    %134 = vector.shape_cast %131 : vector<8x128xf32> to vector<1x8x128xf32>
    tpu.vector_store %arg2[%c26, %c0_72, %c0_73], %134 {strides = array<i32>} : memref<27x8x128xf32, #tpu.memory_space<vmem>>, vector<1x8x128xf32>,
    return
  }
  func.func @transform_0(%arg0: i32) -> (i32, i32, i32) {
    %c0_i32 = arith.constant 0 : i32
    %c0_i32_0 = arith.constant 0 : i32
    %c0_i32_1 = arith.constant 0 : i32
    return %c0_i32, %arg0, %c0_i32_0 : i32, i32, i32
  }
  func.func @transform_1(%arg0: i32) -> (i32, i32, i32) {
    %c0_i32 = arith.constant 0 : i32
    %c0_i32_0 = arith.constant 0 : i32
    %c0_i32_1 = arith.constant 0 : i32
    return %c0_i32, %arg0, %c0_i32_0 : i32, i32, i32
  }
}

</mosaic_0001>

<bundles_post_ra>
// kernel: tpu_custom_call.1
= control target key start
LH: loop header
LB: loop body
LE: loop exit
PB: predicated region body
PF: predicated region fallthrough
CT: control target
= control target key end

     0   :  { %s4317_s6 = smov 0   ;;  %s4319_s7 = smov 0   ;;  %s5892_s0 = inlined_call_operand.vmem [shape: f32[3,10,128], index: 0, kind: input, shape index: {}]   ;;  %s5893_s1 = inlined_call_operand.vmem [shape: f32[27,10,128], index: 1, kind: output, shape index: {}]  }
   0x1   :  { %s4321_s8 = smov 0  }
   0x2 LB: > { %s4131_s9 = sadd.s32 4294967295, %s4298_s8   ;;  %s4334_s10 = sadd.s32 1, %s4298_s8   ;;  %s4298_s8 = sphi %s4321_s8, %s5917_s8   ;;  %s4294_s7 = sphi %s4319_s7, %s5916_s7   ;;  %s4290_s6 = sphi %s4317_s6, %s5915_s6  }
   0x3   : > { %s15_s11 = ssub.s32 %s4298_s8, %s4334_s10  ;;  %s18_s12 = sadd.s32 1, %s4294_s7 }
   0x4   : > { %p16_p0 = scmp.eq.s32.totalorder %s15_s11, 0  ;;  %p25_p1 = scmp.ne.s32.totalorder %s4294_s7, %s4290_s6 }
   0x5   : > { %p26_p2 = scmp.eq.s32.totalorder %s4298_s8, 0  ;;  %p55_p3 = scmp.eq.s32.totalorder %s4131_s9, 1 }
   0x6   : > { %s4345_s13 = scalar_select %p16_p0, %s4294_s7, %s18_s12  }
   0x7   : > { %p27_p4 = por %p26_p2, %p25_p1  ;;  %p4347_p5 = por %p55_p3, %p25_p1 }
   0x8   : > { %p4134_p6 = scmp.ge.s32.totalorder %s4298_s8, 2 }
   0xa   : > { %77 = sbr.rel (%p4134_p6) target bundleno = 22 (0x16), region = 16 }
   0xf   : > { %80 = sbr.rel (!%p27_p4) target bundleno = 22 (0x16), region = 20  ;;  %s82_s15 = sand.u32 (%p27_p4), 1, %s4294_s7  }
  0x10   : > { %s4135_s16 = sshll.u32 (%p27_p4), %s4298_s8, 3  ;;  %s4240_s17 = smul.u32 (%p27_p4), 24, %s82_s15 }
  0x11   : > { %s86_s20 = scalar_lea.vmem (%p27_p4), %s5892_s0, %s4135_s16 }
  0x12   : > { %v119_v0 = vld [vmem:[%s86_s20] sm:$0xff] (%p27_p4)  ;;  %v121_v1 = vld [vmem:[%s86_s20 + $0x10] sm:$0xff] (%p27_p4)  ;;  %s84_s21 = scalar_lea.vmem (%p27_p4), [#allocation2], %s4240_s17 }
  0x13   : > { %v123_v2 = vld [vmem:[%s86_s20 + $0x20] sm:$0xff] (%p27_p4)  ;;  %120 = vst [vmem:[%s84_s21] sm:$0xff] (%p27_p4), %v119_v0 }
  0x14   : > { %122 = vst [vmem:[%s84_s21 + $0x8] sm:$0xff] %v121_v1 }
  0x15   : > { %124 = vst [vmem:[%s84_s21 + $0x10] sm:$0xff] %v123_v2 }
  0x16 PF: > { %p4136_p7 = scmp.ge.s32.totalorder %s4298_s8, 1  ;;  %p129_p8 = scmp.lt.s32.totalorder %s4298_s8, 3 }
  0x18   : > { %p130_p9 = pnand %p4136_p7, %p129_p8 }
  0x19   : > { %s136_s22 = sand.u32 (!%p130_p9), 1, %s4290_s6  }
  0x1a   : > { %133 = sbr.rel (%p130_p9) target bundleno = 556 (0x22c), region = 58 }
  0x1b   : > { %s4241_s23 = smul.u32 (!%p130_p9), 24, %s136_s22 }
  0x1c   : > { %s4242_s24 = smul.u32 (!%p130_p9), 216, %s136_s22 }
  0x1d   : > { %s4360_s25 = scalar_lea.vmem (!%p130_p9), [#allocation2], %s4241_s23 }
  0x1e   : > { %s4365_s26 = scalar_lea.vmem (!%p130_p9), [#allocation3], %s4242_s24 }
  0x1f   : > { %v4363_v3 = vld [vmem:[%s4360_s25] sm:$0xff]  ;;  %v4300_v28 = vmov 683565275   ;;  %v4301_v30 = vmov 2475754826   ;;  %s4237_s27 = sshll.u32 (%p4347_p5), %s4131_s9, 3 }
  0x20   : > { %155 = vst [vmem:[%s4365_s26] sm:$0xff] %v4363_v3  ;;  %v156_v4 = vand.u32 2147483647, %v4363_v3  ;;  %v159_v5 = vand.u32 2139095040, %v4363_v3  ;;  %v4372_v6 = vmul.f32 2.0, %v4363_v3  ;;  %v4375_v7 = vmul.f32 4.0, %v4363_v3  ;;  %s5828_s30 = scalar_lea.vmem (%p4347_p5), %s5893_s1, %s4237_s27 }
  0x21   : > { %v4302_v32 = vmov 2131351028   ;;  %v4303_v34 = vmov 2102212464   ;;  %v4304_v36 = vmov 920167782  }
  0x22   : > { %v160_v8 = vshrl.u32 %v159_v5, 23  ;;  %v163_v9 = vand.u32 8388607, %v156_v4  ;;  %v473_v10 = vand.u32 2139095040, %v4372_v6  ;;  %v470_v11 = vand.u32 2147483647, %v4372_v6 }
  0x23   : > { %v787_v12 = vand.u32 2139095040, %v4375_v7  ;;  %v4305_v45 = vmov 1326507024  }
  0x24   : > { %v4137_v13 = vadd.s32 4294967169, %v160_v8  ;;  %v474_v14 = vshrl.u32 %v473_v10, 23  ;;  %v164_v15 = vor.u32 8388608, %v163_v9  ;;  %v477_v18 = vand.u32 8388607, %v470_v11 }
  0x25   : > { %v788_v19 = vshrl.u32 %v787_v12, 23 }
  0x26   : > { %v166_v16 = vadd.s32 1, %v4137_v13  ;;  %v4145_v17 = vadd.s32 4294967169, %v474_v14  ;;  %v4384_v22 = vshll.u32 %v164_v15, 8  ;;  %v478_v25 = vor.u32 8388608, %v477_v18 }
  0x27   : > { %v4386_v26 = vadd.s32 4294967169, %v788_v19 }
  0x28   : > { %vm167_vm0 = vcmp.gt.s32.totalorder %v166_v16, 0  ;;  %v480_v20 = vadd.s32 1, %v4145_v17  ;;  %v205_v38 = vand.u32 65535, %v4384_v22  ;;  %v206_v63 = vshrl.u32 %v4384_v22, 16 }
  0x29   : > { %v168_v21 = vsel %vm167_vm0, %v166_v16, 0  ;;  %v4407_v0 = vshll.u32 %v478_v25, 8 }
  0x2a   : > { %v170_v23 = vand.u32 31, %v168_v21  ;;  %vm481_vm1 = vcmp.gt.s32.totalorder %v480_v20, 0  ;;  %v169_v24 = vshrl.u32 %v168_v21, 5 }
  0x2b   : > { %v482_v39 = vsel %vm481_vm1, %v480_v20, 0 }
  0x2c   : > { %v171_v27 = vsub.s32 32, %v170_v23  ;;  %v173_v29 = vshll.u32 %v4300_v28, %v170_v23  ;;  %v176_v31 = vshll.u32 %v4301_v30, %v170_v23  ;;  %v179_v33 = vshll.u32 %v4302_v32, %v170_v23 }
  0x2d   : > { %v182_v35 = vshll.u32 %v4303_v34, %v170_v23  ;;  %v185_v37 = vshll.u32 %v4304_v36, %v170_v23  ;;  %vm188_vm2 = vcmp.lt.s32.totalorder %v169_v24, 1  ;;  %vm189_vm3 = vcmp.lt.s32.totalorder %v169_v24, 2 }
  0x2e   : > { %v172_v40 = vshrl.u32 %v4300_v28, %v171_v27  ;;  %v174_v41 = vshrl.u32 %v4301_v30, %v171_v27  ;;  %v177_v42 = vshrl.u32 %v4302_v32, %v171_v27  ;;  %v180_v43 = vshrl.u32 %v4303_v34, %v171_v27 }
  0x2f   : > { %v183_v44 = vshrl.u32 %v4304_v36, %v171_v27  ;;  %v186_v46 = vshrl.u32 %v4305_v45, %v171_v27  ;;  %vm191_vm4 = vcmp.lt.s32.totalorder %v169_v24, 4  ;;  %vm190_vm5 = vcmp.lt.s32.totalorder %v169_v24, 3 }
  0x30   : > { %v175_v47 = vor.u32 %v174_v41, %v173_v29  ;;  %v178_v48 = vor.u32 %v177_v42, %v176_v31  ;;  %v181_v49 = vor.u32 %v180_v43, %v179_v33  ;;  %v4401_v52 = vand.u32 31, %v482_v39 }
  0x31   : > { %v184_v50 = vor.u32 %v183_v44, %v182_v35  ;;  %v187_v51 = vor.u32 %v186_v46, %v185_v37  ;;  %v4414_v8 = vshrl.u32 %v482_v39, 5  ;;  %v4306_v46 = vmov 0  }
  0x32   : > { %v192_v53 = vsel %vm188_vm2, %v172_v40, %v175_v47  ;;  %v193_v54 = vsel %vm191_vm4, %v181_v49, 2102212464  ;;  %v196_v55 = vsel %vm188_vm2, %v175_v47, %v178_v48  ;;  %v200_v56 = vsel %vm188_vm2, %v178_v48, %v181_v49 }
  0x33   : > { %v194_v57 = vsel %vm190_vm5, %v178_v48, %v193_v54  ;;  %v197_v58 = vsel %vm191_vm4, %v184_v50, 920167782  ;;  %v201_v59 = vsel %vm191_vm4, %v187_v51, 1326507024  ;;  %v4404_v60 = vsub.s32 32, %v4401_v52 }
  0x34   : > { %v198_v61 = vsel %vm190_vm5, %v181_v49, %v197_v58  ;;  %v202_v62 = vsel %vm190_vm5, %v184_v50, %v201_v59  ;;  %v4410_v1 = vsel %vm189_vm3, %v192_v53, %v194_v57  ;;  %v487_v14 = vshll.u32 %v4300_v28, %v4401_v52 }
  0x35   : > { %v199_v2 = vsel %vm189_vm3, %v196_v55, %v198_v61  ;;  %v203_v5 = vsel %vm189_vm3, %v200_v56, %v202_v62  ;;  %v488_v15 = vshrl.u32 %v4301_v30, %v4404_v60  ;;  %v490_v16 = vshll.u32 %v4301_v30, %v4401_v52 }
  0x36   : > { %v207_v9 = vand.u32 65535, %v203_v5  ;;  %v208_v10 = vshrl.u32 %v203_v5, 16  ;;  %v229_v12 = vand.u32 65535, %v199_v2  ;;  %v230_v13 = vshrl.u32 %v199_v2, 16 }
  0x37   : > { %v491_v17 = vshrl.u32 %v4302_v32, %v4404_v60  ;;  %v493_v21 = vshll.u32 %v4302_v32, %v4401_v52  ;;  %v4426_v44 = vor.u32 %v488_v15, %v487_v14  ;;  %v496_v51 = vshll.u32 %v4303_v34, %v4401_v52 }
  0x38   : > { %v209_v18 = vmul.u32 %v207_v9, %v205_v38  ;;  %v210_v19 = vmul.u32 %v208_v10, %v205_v38  ;;  %v211_v20 = vmul.u32 %v207_v9, %v206_v63  ;;  %v212_v23 = vmul.u32 %v208_v10, %v206_v63 }
  0x39   : > { %v231_v24 = vmul.u32 %v229_v12, %v205_v38  ;;  %v232_v25 = vmul.u32 %v230_v13, %v205_v38  ;;  %v233_v27 = vmul.u32 %v229_v12, %v206_v63  ;;  %v234_v35 = vmul.u32 %v230_v13, %v206_v63 }
  0x3a   : > { %v213_v29 = vshll.u32 %v210_v19, 16  ;;  %v214_v31 = vshrl.u32 %v210_v19, 16  ;;  %v215_v33 = vshll.u32 %v211_v20, 16  ;;  %v216_v37 = vshrl.u32 %v211_v20, 16 }
  0x3b   : > { %v235_v39 = vshll.u32 %v232_v25, 16  ;;  %v236_v40 = vshrl.u32 %v232_v25, 16  ;;  %v237_v41 = vshll.u32 %v233_v27, 16  ;;  %v238_v43 = vshrl.u32 %v233_v27, 16 }
  0x3c   : > { %vm217_vm6 = vc.u32 %v209_v18, %v213_v29  ;;  %v219_v42 = vadd.s32 %v213_v29, %v209_v18  ;;  %v494_v38 = vshrl.u32 %v4303_v34, %v4404_v60  ;;  %v492_v55 = vor.u32 %v491_v17, %v490_v16 }
  0x3d   : > { %v218_v47 = vsel %vm217_vm6, 1, %v4306_v46  ;;  %vm239_vm7 = vc.u32 %v231_v24, %v235_v39  ;;  %v241_v48 = vadd.s32 %v235_v39, %v231_v24  ;;  %v497_v59 = vshrl.u32 %v4304_v36, %v4404_v60 }
  0x3e   : > { %v220_v49 = vadd.s32 %v218_v47, %v212_v23  ;;  %vm221_vm8 = vc.u32 %v219_v42, %v215_v33  ;;  %v240_v50 = vsel %vm239_vm7, 1, %v4306_v46  ;;  %v495_v58 = vor.u32 %v494_v38, %v493_v21 }
  0x3f   : > { %v222_v53 = vsel %vm221_vm8, 1, %v4306_v46  ;;  %v242_v54 = vadd.s32 %v240_v50, %v234_v35  ;;  %vm243_vm9 = vc.u32 %v241_v48, %v237_v41  ;;  %v499_v62 = vshll.u32 %v4304_v36, %v4401_v52 }
  0x40   : > { %v224_v56 = vadd.s32 %v222_v53, %v220_v49  ;;  %v244_v57 = vsel %vm243_vm9, 1, %v4306_v46  ;;  %v500_v63 = vshrl.u32 %v4305_v45, %v4404_v60  ;;  %vm502_vm10 = vcmp.lt.s32.totalorder %v4414_v8, 1 }
  0x41   : > { %v246_v61 = vadd.s32 %v244_v57, %v242_v54  ;;  %v4443_v5 = vadd.s32 %v241_v48, %v237_v41  ;;  %v498_v9 = vor.u32 %v497_v59, %v496_v51  ;;  %vm504_vm11 = vcmp.lt.s32.totalorder %v4414_v8, 3 }
  0x42   : > { %v225_v2 = vadd.s32 %v224_v56, %v214_v31  ;;  %v501_v12 = vor.u32 %v500_v63, %v499_v62  ;;  %vm503_vm12 = vcmp.lt.s32.totalorder %v4414_v8, 2  ;;  %vm505_vm13 = vcmp.lt.s32.totalorder %v4414_v8, 4 }
  0x43   : > { %v247_v10 = vadd.s32 %v246_v61, %v236_v40  ;;  %v510_v52 = vsel %vm502_vm10, %v4426_v44, %v492_v55  ;;  %v511_v14 = vsel %vm505_vm13, %v498_v9, 920167782  ;;  %v794_v15 = vadd.s32 1, %v4386_v26 }
  0x44   : > { %v4448_v13 = vadd.s32 %v225_v2, %v216_v37  ;;  %v512_v17 = vsel %vm504_vm11, %v495_v58, %v511_v14  ;;  %v519_v18 = vand.u32 65535, %v4407_v0  ;;  %v520_v19 = vshrl.u32 %v4407_v0, 16 }
  0x45   : > { %v248_v16 = vadd.s32 %v247_v10, %v238_v43  ;;  %v249_v20 = vmul.u32 %v4384_v22, %v4410_v1  ;;  %v513_v21 = vsel %vm503_vm12, %v510_v52, %v512_v17  ;;  %v514_v26 = vsel %vm502_vm10, %v492_v55, %v495_v58 }
  0x46   : > { %vm251_vm14 = vc.u32 %v4448_v13, %v4443_v5  ;;  %v515_v24 = vsel %vm505_vm13, %v501_v12, 1326507024  ;;  %v543_v25 = vand.u32 65535, %v513_v21  ;;  %v544_v27 = vshrl.u32 %v513_v21, 16 }
  0x47   : > { %v252_v23 = vadd.s32 1, %v248_v16  ;;  %v486_v29 = vshrl.u32 %v4300_v28, %v4404_v60  ;;  %v516_v22 = vsel %vm504_vm11, %v498_v9, %v515_v24  ;;  %vm795_vm15 = vcmp.gt.s32.totalorder %v794_v15, 0 }
  0x48   : > { %v517_v31 = vsel %vm503_vm12, %v514_v26, %v516_v22  ;;  %v545_v33 = vmul.u32 %v543_v25, %v519_v18  ;;  %v546_v35 = vmul.u32 %v544_v27, %v519_v18  ;;  %v547_v41 = vmul.u32 %v543_v25, %v520_v19 }
  0x49   : > { %v253_v1 = vsel %vm251_vm14, %v252_v23, %v248_v16  ;;  %v521_v39 = vand.u32 65535, %v517_v31  ;;  %v522_v40 = vshrl.u32 %v517_v31, 16  ;;  %v4476_v43 = vsel %vm795_vm15, %v794_v15, 0 }
  0x4a   : > { %v254_v37 = vadd.s32 %v253_v1, %v249_v20  ;;  %v549_v42 = vshll.u32 %v546_v35, 16  ;;  %v507_v60 = vsel %vm505_vm13, %v495_v58, 2102212464  ;;  %v506_v49 = vsel %vm502_vm10, %v486_v29, %v4426_v44 }
  0x4b   : > { %v523_v48 = vmul.u32 %v521_v39, %v519_v18  ;;  %v524_v38 = vmul.u32 %v522_v40, %v519_v18  ;;  %v525_v50 = vmul.u32 %v521_v39, %v520_v19  ;;  %v548_v51 = vmul.u32 %v544_v27, %v520_v19 }
  0x4c   : > { %v255_v47 = vadd.s32 536870912, %v254_v37  ;;  %v551_v53 = vshll.u32 %v547_v41, 16  ;;  %v526_v56 = vmul.u32 %v522_v40, %v520_v19  ;;  %vm553_vm0 = vc.u32 %v545_v33, %v549_v42 }
  0x4d   : > { %v527_v57 = vshll.u32 %v524_v38, 16  ;;  %v508_v59 = vsel %vm504_vm11, %v492_v55, %v507_v60  ;;  %v529_v61 = vshll.u32 %v525_v50, 16  ;;  %v554_v62 = vsel %vm553_vm0, 1, %v4306_v46 }
  0x4e   : > { %v256_v54 = vshrl.u32 %v255_v47, 30  ;;  %v555_v58 = vadd.s32 %v549_v42, %v545_v33  ;;  %v798_v9 = vand.u32 31, %v4476_v43  ;;  %v550_v10 = vshrl.u32 %v546_v35, 16 }
  0x4f   : > { %vm531_vm1 = vc.u32 %v523_v48, %v527_v57  ;;  %v533_v2 = vadd.s32 %v527_v57, %v523_v48  ;;  %v556_v12 = vadd.s32 %v554_v62, %v548_v51  ;;  %v528_v14 = vshrl.u32 %v524_v38, 16 }
  0x50   : > { %v257_v63 = vshll.u32 %v256_v54, 30  ;;  %v532_v44 = vsel %vm531_vm1, 1, %v4306_v46  ;;  %vm557_vm2 = vc.u32 %v555_v58, %v551_v53  ;;  %v530_v16 = vshrl.u32 %v525_v50, 16 }
  0x51   : > { %v534_v15 = vadd.s32 %v532_v44, %v526_v56  ;;  %vm535_vm3 = vc.u32 %v533_v2, %v529_v61  ;;  %v552_v17 = vshrl.u32 %v547_v41, 16  ;;  %v558_v18 = vsel %vm557_vm2, 1, %v4306_v46 }
  0x52   : > { %v258_v52 = vsub.s32 %v254_v37, %v257_v63  ;;  %v536_v55 = vsel %vm535_vm3, 1, %v4306_v46  ;;  %v560_v21 = vadd.s32 %v558_v18, %v556_v12  ;;  %v509_v26 = vsel %vm503_vm12, %v506_v49, %v508_v59 }
  0x53   : > { %v538_v20 = vadd.s32 %v536_v55, %v534_v15  ;;  %v784_v23 = vand.u32 2147483647, %v4375_v7  ;;  %v559_v27 = vadd.s32 %v555_v58, %v551_v53  ;;  %v799_v1 = vsub.s32 32, %v798_v9 }
  0x54   : > { %vm259_vm4 = vcmp.lt.s32.totalorder %v258_v52, 0  ;;  %v260_v19 = vsub.s32 0, %v258_v52  ;;  %v561_v29 = vadd.s32 %v560_v21, %v550_v10  ;;  %vm4495_vm5 = vcmp.le.f32.partialorder %v156_v4, 0.7853982 }
  0x55   : > { %v539_v25 = vadd.s32 %v538_v20, %v528_v14  ;;  %vm158_vm6 = vcmp.lt.s32.totalorder %v4363_v3, 0  ;;  %v563_v37 = vmul.u32 %v4407_v0, %v509_v26  ;;  %v280_v39 = vsub.s32 4, %v256_v54 }
  0x56   : > { %v261_v24 = vsel %vm259_vm4, %v260_v19, %v258_v52  ;;  %v562_v33 = vadd.s32 %v561_v29, %v552_v17  ;;  %v791_v41 = vand.u32 8388607, %v784_v23  ;;  %v250_v42 = vadd.s32 %v4443_v5, %v4448_v13 }
  0x57   : > { %v262_v22 = vclz %v261_v24  ;;  %v540_v31 = vadd.s32 %v539_v25, %v530_v16  ;;  %v804_v4 = vshll.u32 %v4301_v30, %v798_v9  ;;  %v805_v47 = vshrl.u32 %v4302_v32, %v799_v1 }
  0x58   : > { %v566_v40 = vadd.s32 1, %v562_v33  ;;  %v807_v38 = vshll.u32 %v4302_v32, %v798_v9  ;;  %v808_v0 = vshrl.u32 %v4303_v34, %v799_v1  ;;  %v281_v56 = vsel %vm158_vm6, %v280_v39, %v256_v54 }
  0x59   : > { %v4138_v8 = vadd.s32 4294967294, %v262_v22  ;;  %vm565_vm7 = vc.u32 %v540_v31, %v559_v27  ;;  %v4512_v5 = vshrl.u32 %v4476_v43, 5  ;;  %v813_v13 = vshll.u32 %v4304_v36, %v798_v9 }
  0x5a   : > { %v567_v48 = vsel %vm565_vm7, %v566_v40, %v562_v33  ;;  %v814_v57 = vshrl.u32 %v4305_v45, %v799_v1  ;;  %v810_v62 = vshll.u32 %v4303_v34, %v798_v9  ;;  %v811_v58 = vshrl.u32 %v4304_v36, %v799_v1 }
  0x5b   : > { %vm4139_vm8 = vcmp.lt.s32.totalorder %v4138_v8, 0  ;;  %v568_v53 = vadd.s32 %v567_v48, %v563_v37  ;;  %v792_v2 = vor.u32 8388608, %v791_v41  ;;  %v801_v44 = vshll.u32 %v4300_v28, %v798_v9 }
  0x5c   : > { %v265_v60 = vsel %vm4139_vm8, 0, %v4138_v8  ;;  %v802_v10 = vshrl.u32 %v4301_v30, %v799_v1  ;;  %v806_v43 = vor.u32 %v805_v47, %v804_v4  ;;  %v283_v14 = vsel %vm4495_vm5, 0, %v281_v56  ;;  %v4568_v56 = vld [vmem:[%s4360_s25 + $0x8] sm:$0xff] }
  0x5d   : > { %v266_v49 = vsub.s32 32, %v265_v60  ;;  %v267_v50 = vshll.u32 %v258_v52, %v265_v60  ;;  %v270_v51 = vsub.s32 4294967266, %v265_v60  ;;  %v569_v63 = vadd.s32 536870912, %v568_v53  ;;  %4170 = vst [vmem:[%s4365_s26 + $0x48] sm:$0xff] %v4568_v56 }
  0x5e   : > { %v809_v52 = vor.u32 %v808_v0, %v807_v38  ;;  %v815_v16 = vor.u32 %v814_v57, %v813_v13  ;;  %vm816_vm9 = vcmp.lt.s32.totalorder %v4512_v5, 1  ;;  %v812_v18 = vor.u32 %v811_v58, %v810_v62 }
  0x5f   : > { %v268_v59 = vshrl.u32 %v250_v42, %v266_v49  ;;  %v271_v61 = vadd.s32 127, %v270_v51  ;;  %v570_v15 = vshrl.u32 %v569_v63, 30  ;;  %vm819_vm10 = vcmp.lt.s32.totalorder %v4512_v5, 4 }
  0x60   : > { %v803_v9 = vor.u32 %v802_v10, %v801_v44  ;;  %vm818_vm11 = vcmp.lt.s32.totalorder %v4512_v5, 3  ;;  %vm472_vm12 = vcmp.lt.s32.totalorder %v4372_v6, 0  ;;  %v800_v21 = vshrl.u32 %v4300_v28, %v799_v1 }
  0x61   : > { %v269_v54 = vor.u32 %v268_v59, %v267_v50  ;;  %v272_v12 = vshll.u32 %v271_v61, 23  ;;  %v571_v19 = vshll.u32 %v570_v15, 30  ;;  %vm817_vm13 = vcmp.lt.s32.totalorder %v4512_v5, 2 }
  0x62   : > { %v828_v26 = vsel %vm816_vm9, %v806_v43, %v809_v52  ;;  %v300_v24 = vadd.s32 3, %v283_v14  ;;  %v564_v25 = vadd.s32 %v559_v27, %v540_v31  ;;  %v829_v22 = vsel %vm819_vm10, %v815_v16, 1326507024 }
  0x63   : > { %v273_v55 = vor.u32 4788187, %v272_v12  ;;  %v276_v17 = vcvt.s32.f32 %v269_v54  ;;  %v4530_v29 = vsub.s32 %v568_v53, %v571_v19  ;;  %v825_v8 = vsel %vm819_vm10, %v812_v18, 920167782 }
  0x64   : > { %v830_v37 = vsel %vm818_vm11, %v812_v18, %v829_v22  ;;  %v4538_v1 = vshll.u32 %v792_v2, 8  ;;  %v824_v27 = vsel %vm816_vm9, %v803_v9, %v806_v43  ;;  %v594_v41 = vsub.s32 4, %v570_v15 }
  0x65   : > { %v274_v20 = vand.u32 2147483647, %v273_v55  ;;  %vm573_vm14 = vcmp.lt.s32.totalorder %v4530_v29, 0  ;;  %v574_v39 = vsub.s32 0, %v4530_v29  ;;  %v831_v31 = vsel %vm817_vm13, %v828_v26, %v830_v37 }
  0x66   : > { %v4547_v42 = vand.u32 65535, %v4538_v1  ;;  %v835_v4 = vand.u32 65535, %v831_v31  ;;  %v826_v60 = vsel %vm818_vm11, %v809_v52, %v825_v8  ;;  %v4553_v48 = vshrl.u32 %v4538_v1, 16 }
  0x67   : > { %v277_v33 = vmul.f32 %v276_v17, %v274_v20  ;;  %v575_v47 = vsel %vm573_vm14, %v574_v39, %v4530_v29  ;;  %v836_v38 = vshrl.u32 %v831_v31, 16  ;;  %v4557_v49 = vand.u32 3, %v300_v24 }
  0x68   : > { %vm4561_vm15 = vcmp.le.f32.partialorder %v470_v11, 0.7853982  ;;  %v576_v51 = vclz %v575_v47  ;;  %v821_v53 = vsel %vm819_vm10, %v809_v52, 2102212464  ;;  %v4575_v57 = vand.u32 3, %v283_v14 }
  0x69   : > { %v278_v40 = vxor.u32 2147483648, %v277_v33  ;;  %v837_v59 = vmul.u32 %v835_v4, %v4547_v42  ;;  %v4579_v11 = vmul.u32 %v836_v38, %v4547_v42  ;;  %v820_v58 = vsel %vm816_vm9, %v800_v21, %v803_v9 }
  0x6a   : > { %v4146_v62 = vadd.s32 4294967294, %v576_v51  ;;  %v827_v35 = vsel %vm817_vm13, %v824_v27, %v826_v60  ;;  %v595_v63 = vsel %vm472_vm12, %v594_v41, %v570_v15  ;;  %v822_v2 = vsel %vm818_vm11, %v806_v43, %v821_v53 }
  0x6b   : > { %v279_v0 = vsel %vm158_vm6, %v278_v40, %v277_v33  ;;  %v4594_v44 = vmul.u32 %v835_v4, %v4553_v48  ;;  %v841_v10 = vshll.u32 %v4579_v11, 16  ;;  %v857_v52 = vand.u32 65535, %v827_v35 }
  0x6c   : > { %v4573_v13 = vsel %vm4495_vm5, %v4363_v3, %v279_v0  ;;  %vm4147_vm0 = vcmp.lt.s32.totalorder %v4146_v62, 0  ;;  %v840_v16 = vmul.u32 %v836_v38, %v4553_v48  ;;  %v858_v55 = vshrl.u32 %v827_v35, 16 }
  0x6d   : > { %v284_v61 = vmul.f32 %v4573_v13, %v4573_v13  ;;  %v579_v14 = vsel %vm4147_vm0, 0, %v4146_v62  ;;  %vm845_vm1 = vc.u32 %v837_v59, %v841_v10  ;;  %vm306_vm2 = vcmp.eq.s32.totalorder %v4557_v49, 2 }
  0x6e   : > { %v580_v15 = vsub.s32 32, %v579_v14  ;;  %v581_v19 = vshll.u32 %v4530_v29, %v579_v14  ;;  %vm462_vm3 = vcmp.eq.s32.totalorder %v4575_v57, 2  ;;  %v584_v43 = vsub.s32 4294967266, %v579_v14 }
  0x6f   : > { %v285_v54 = vmul.f32 -0.001358992, %v284_v61  ;;  %v292_v12 = vmul.f32 -0.00019511016, %v284_v61  ;;  %v843_v9 = vshll.u32 %v4594_v44, 16  ;;  %v846_v20 = vsel %vm845_vm1, 1, %v4306_v46 }
  0x70   : > { %v847_v21 = vadd.s32 %v841_v10, %v837_v59  ;;  %v582_v22 = vshrl.u32 %v564_v25, %v580_v15  ;;  %v4605_v33 = vsel %vm817_vm13, %v820_v58, %v822_v2  ;;  %vm303_vm4 = vcmp.eq.s32.totalorder %v4557_v49, 0 }
  0x71   : > { %v286_v17 = vadd.f32 0.041655596, %v285_v54  ;;  %v293_v18 = vadd.f32 0.008332121, %v292_v12  ;;  %vm459_vm5 = vcmp.eq.s32.totalorder %v4575_v57, 0  ;;  %v585_v29 = vadd.s32 127, %v584_v43 }
  0x72   : > { %v4611_v8 = vsel %vm4561_vm15, 0, %v595_v63  ;;  %v848_v37 = vadd.s32 %v846_v20, %v840_v16  ;;  %v860_v39 = vmul.u32 %v858_v55, %v4547_v42  ;;  %vm302_vm6 = vcmp.lt.s32.totalorder %v4557_v49, 2 }
  0x73   : > { %v287_v26 = vmul.f32 %v286_v17, %v284_v61  ;;  %v294_v24 = vmul.f32 %v293_v18, %v284_v61  ;;  %vm458_vm7 = vcmp.lt.s32.totalorder %v4575_v57, 2  ;;  %v583_v5 = vor.u32 %v582_v22, %v581_v19 }
  0x74   : > { %v861_v25 = vmul.u32 %v857_v52, %v4553_v48  ;;  %vm299_vm8 = vweird.f32 %v4363_v3  ;;  %v586_v40 = vshll.u32 %v585_v29, 23  ;;  %v842_v41 = vshrl.u32 %v4579_v11, 16 }
  0x75   : > { %v288_v27 = vadd.f32 -0.4999988, %v287_v26  ;;  %v295_v31 = vadd.f32 -0.16666654, %v294_v24  ;;  %vm849_vm9 = vc.u32 %v847_v21, %v843_v9  ;;  %v859_v4 = vmul.u32 %v857_v52, %v4547_v42 }
  0x76   : > { %v590_v38 = vcvt.s32.f32 %v583_v5  ;;  %v850_v0 = vsel %vm849_vm9, 1, %v4306_v46  ;;  %v587_v51 = vor.u32 4788187, %v586_v40  ;;  %v862_v59 = vmul.u32 %v858_v55, %v4553_v48 }
  0x77   : > { %v289_v47 = vmul.f32 %v288_v27, %v284_v61  ;;  %v296_v60 = vmul.f32 %v295_v31, %v284_v61  ;;  %v852_v53 = vadd.s32 %v850_v0, %v848_v37  ;;  %v863_v62 = vshll.u32 %v860_v39, 16 }
  0x78   : > { %v844_v63 = vshrl.u32 %v4594_v44, 16  ;;  %v865_v2 = vshll.u32 %v861_v25, 16  ;;  %v588_v10 = vand.u32 2147483647, %v587_v51  ;;  %v614_v11 = vadd.s32 3, %v4611_v8 }
  0x79   : > { %v290_v58 = vadd.f32 1.0, %v289_v47  ;;  %v297_v35 = vadd.f32 1.0, %v296_v60  ;;  %v853_v54 = vadd.s32 %v852_v53, %v842_v41  ;;  %vm867_vm10 = vc.u32 %v859_v4, %v863_v62 }
  0x7a   : > { %v868_v12 = vsel %vm867_vm10, 1, %v4306_v46  ;;  %v869_v52 = vadd.s32 %v863_v62, %v859_v4  ;;  %v591_v14 = vmul.f32 %v590_v38, %v588_v10  ;;  %v864_v16 = vshrl.u32 %v860_v39, 16 }
  0x7b   : > { %v298_v42 = vmul.f32 %v297_v35, %v4573_v13  ;;  %v307_v61 = vxor.u32 2147483648, %v290_v58  ;;  %v870_v48 = vadd.s32 %v868_v12, %v862_v59  ;;  %v4627_v55 = vmul.f32 8.0, %v4363_v3 }
  0x7c   : > { %vm871_vm11 = vc.u32 %v869_v52, %v865_v2  ;;  %v592_v15 = vxor.u32 2147483648, %v591_v14  ;;  %v4633_v13 = vadd.s32 %v853_v54, %v844_v63  ;;  %v866_v19 = vshrl.u32 %v861_v25, 16 }
  0x7d   : > { %v304_v17 = vxor.u32 2147483648, %v298_v42  ;;  %v308_v44 = vsel %vm306_vm2, %v307_v61, %v298_v42  ;;  %v464_v18 = vsel %vm462_vm3, %v307_v61, %v298_v42  ;;  %v872_v43 = vsel %vm871_vm11, 1, %v4306_v46 }
  0x7e   : > { %v874_v21 = vadd.s32 %v872_v43, %v870_v48  ;;  %v1101_v26 = vand.u32 2139095040, %v4627_v55  ;;  %v593_v29 = vsel %vm472_vm12, %v592_v15, %v591_v14  ;;  %v4647_v37 = vadd.s32 %v869_v52, %v865_v2 }
  0x7f   : > { %v305_v9 = vsel %vm303_vm4, %v290_v58, %v304_v17  ;;  %v461_v20 = vsel %vm459_vm5, %v290_v58, %v304_v17  ;;  %v596_v31 = vsel %vm4561_vm15, %v4372_v6, %v593_v29  ;;  %v877_v40 = vmul.u32 %v4538_v1, %v4605_v33 }
  0x80   : > { %v309_v24 = vsel %vm302_vm6, %v305_v9, %v308_v44  ;;  %v465_v22 = vsel %vm458_vm7, %v461_v20, %v464_v18  ;;  %v875_v49 = vadd.s32 %v874_v21, %v864_v16  ;;  %v598_v5 = vmul.f32 %v596_v31, %v596_v31 }
  0x81   : > { %v310_v39 = vsel %vm299_vm8, nan, %v309_v24  ;;  %v466_v27 = vsel %vm299_vm8, nan, %v465_v22  ;;  %v1102_v57 = vshrl.u32 %v1101_v26, 23  ;;  %vm879_vm12 = vc.u32 %v4633_v13, %v4647_v37 }
  0x82   : > { %4140 = vst [vmem:[%s4365_s26 + $0x8] sm:$0xff] %v310_v39  ;;  %v876_v25 = vadd.s32 %v875_v49, %v866_v19  ;;  %v599_v41 = vmul.f32 -0.001358992, %v598_v5  ;;  %v606_v4 = vmul.f32 -0.00019511016, %v598_v5  ;;  %v4662_v47 = vand.u32 3, %v614_v11 }
  0x83   : > { %4144 = vst [vmem:[%s4365_s26 + $0x10] sm:$0xff] %v466_v27  ;;  %v4161_v3 = vadd.s32 4294967169, %v1102_v57  ;;  %v1098_v50 = vand.u32 2147483647, %v4627_v55  ;;  %v771_v53 = vand.u32 3, %v4611_v8  ;;  %vm613_vm1 = vweird.f32 %v4372_v6 }
  0x84   : > { %v880_v60 = vadd.s32 1, %v876_v25  ;;  %v600_v38 = vadd.f32 0.041655596, %v599_v41  ;;  %v607_v0 = vadd.f32 0.008332121, %v606_v4  ;;  %vm617_vm14 = vcmp.eq.s32.totalorder %v4662_v47, 0 }
  0x85   : > { %v1108_v51 = vadd.s32 1, %v4161_v3  ;;  %v4669_v33 = vand.u32 8388607, %v1098_v50  ;;  %vm616_vm15 = vcmp.lt.s32.totalorder %v4662_v47, 2  ;;  %vm620_vm0 = vcmp.eq.s32.totalorder %v4662_v47, 2 }
  0x86   : > { %v881_v59 = vsel %vm879_vm12, %v880_v60, %v876_v25  ;;  %v601_v62 = vmul.f32 %v600_v38, %v598_v5  ;;  %v608_v58 = vmul.f32 %v607_v0, %v598_v5  ;;  %vm772_vm2 = vcmp.lt.s32.totalorder %v771_v53, 2 }
  0x87   : > { %v882_v1 = vadd.s32 %v881_v59, %v877_v40  ;;  %vm1109_vm13 = vcmp.gt.s32.totalorder %v1108_v51, 0  ;;  %vm773_vm3 = vcmp.eq.s32.totalorder %v771_v53, 0  ;;  %v1418_v11 = vand.u32 2139095040, %v4568_v56 }
  0x88   : > { %v1110_v35 = vsel %vm1109_vm13, %v1108_v51, 0  ;;  %v602_v63 = vadd.f32 -0.4999988, %v601_v62  ;;  %v609_v2 = vadd.f32 -0.16666654, %v608_v58  ;;  %vm776_vm4 = vcmp.eq.s32.totalorder %v771_v53, 2 }
  0x89   : > { %v883_v10 = vadd.s32 536870912, %v882_v1  ;;  %v1112_v8 = vand.u32 31, %v1110_v35  ;;  %v4675_v12 = vshrl.u32 %v1110_v35, 5  ;;  %v1106_v18 = vor.u32 8388608, %v4669_v33 }
  0x8a   : > { %v603_v54 = vmul.f32 %v602_v63, %v598_v5  ;;  %v610_v42 = vmul.f32 %v609_v2, %v598_v5  ;;  %vm786_vm5 = vcmp.lt.s32.totalorder %v4375_v7, 0  ;;  %v1419_v9 = vshrl.u32 %v1418_v11, 23 }
  0x8b   : > { %v884_v61 = vshrl.u32 %v883_v10, 30  ;;  %v1113_v52 = vsub.s32 32, %v1112_v8  ;;  %v1115_v14 = vshll.u32 %v4300_v28, %v1112_v8  ;;  %v1118_v16 = vshll.u32 %v4301_v30, %v1112_v8 }
  0x8c   : > { %v604_v48 = vadd.f32 1.0, %v603_v54  ;;  %v611_v17 = vadd.f32 1.0, %v610_v42  ;;  %v1121_v43 = vshll.u32 %v4302_v32, %v1112_v8  ;;  %vm1130_vm6 = vcmp.lt.s32.totalorder %v4675_v12, 1 }
  0x8d   : > { %v885_v44 = vshll.u32 %v884_v61, 30  ;;  %v1116_v15 = vshrl.u32 %v4301_v30, %v1113_v52  ;;  %v1119_v19 = vshrl.u32 %v4302_v32, %v1113_v52  ;;  %v1122_v24 = vshrl.u32 %v4303_v34, %v1113_v52 }
  0x8e   : > { %v612_v20 = vmul.f32 %v611_v17, %v596_v31  ;;  %v621_v21 = vxor.u32 2147483648, %v604_v48  ;;  %v908_v22 = vsub.s32 4, %v884_v61  ;;  %vm4693_vm7 = vcmp.le.f32.partialorder %v784_v23, 0.7853982 }
  0x8f   : > { %v4684_v26 = vsub.s32 %v882_v1, %v885_v44  ;;  %v1117_v29 = vor.u32 %v1116_v15, %v1115_v14  ;;  %v1120_v39 = vor.u32 %v1119_v19, %v1118_v16  ;;  %v1124_v25 = vshll.u32 %v4303_v34, %v1112_v8 }
  0x90   : > { %v618_v27 = vxor.u32 2147483648, %v612_v20  ;;  %v622_v49 = vsel %vm620_vm0, %v621_v21, %v612_v20  ;;  %v778_v5 = vsel %vm776_vm4, %v621_v21, %v612_v20  ;;  %v1125_v40 = vshrl.u32 %v4304_v36, %v1113_v52 }
  0x91   : > { %vm887_vm8 = vcmp.lt.s32.totalorder %v4684_v26, 0  ;;  %v888_v57 = vsub.s32 0, %v4684_v26  ;;  %v1127_v41 = vshll.u32 %v4304_v36, %v1112_v8  ;;  %v1123_v23 = vor.u32 %v1122_v24, %v1121_v43 }
  0x92   : > { %v619_v4 = vsel %vm617_vm14, %v604_v48, %v618_v27  ;;  %v775_v3 = vsel %vm773_vm3, %v604_v48, %v618_v27  ;;  %v1128_v60 = vshrl.u32 %v4305_v45, %v1113_v52  ;;  %v1126_v59 = vor.u32 %v1125_v40, %v1124_v25 }
  0x93   : > { %v623_v38 = vsel %vm616_vm15, %v619_v4, %v622_v49  ;;  %v779_v0 = vsel %vm772_vm2, %v775_v3, %v778_v5  ;;  %v889_v51 = vsel %vm887_vm8, %v888_v57, %v4684_v26  ;;  %v878_v35 = vadd.s32 %v4647_v37, %v4633_v13 }
  0x94   : > { %v624_v62 = vsel %vm613_vm1, nan, %v623_v38  ;;  %v780_v58 = vsel %vm613_vm1, nan, %v779_v0  ;;  %v890_v1 = vclz %v889_v51  ;;  %v1129_v33 = vor.u32 %v1128_v60, %v1127_v41 }
  0x95   : > { %4148 = vst [vmem:[%s4365_s26 + $0x18] sm:$0xff] %v624_v62  ;;  %vm1132_vm9 = vcmp.lt.s32.totalorder %v4675_v12, 3  ;;  %vm1133_vm10 = vcmp.lt.s32.totalorder %v4675_v12, 4  ;;  %v1415_v47 = vand.u32 2147483647, %v4568_v56  ;;  %v909_v63 = vsel %vm786_vm5, %v908_v22, %v884_v61 }
  0x96   : > { %4152 = vst [vmem:[%s4365_s26 + $0x20] sm:$0xff] %v780_v58  ;;  %v4154_v53 = vadd.s32 4294967294, %v890_v1  ;;  %v1139_v6 = vsel %vm1133_vm10, %v1126_v59, 920167782  ;;  %v4725_v2 = vshll.u32 %v1106_v18, 8  ;;  %vm1131_vm11 = vcmp.lt.s32.totalorder %v4675_v12, 2 }
  0x97   : > { %v1142_v13 = vsel %vm1130_vm6, %v1120_v39, %v1123_v23  ;;  %v1143_v37 = vsel %vm1133_vm10, %v1129_v33, 1326507024  ;;  %v4171_v10 = vadd.s32 4294967169, %v1419_v9  ;;  %v1114_v8 = vshrl.u32 %v4300_v28, %v1113_v52 }
  0x98   : > { %vm4155_vm12 = vcmp.lt.s32.totalorder %v4154_v53, 0  ;;  %v1138_v11 = vsel %vm1130_vm6, %v1117_v29, %v1120_v39  ;;  %v1140_v54 = vsel %vm1132_vm9, %v1123_v23, %v1139_v6  ;;  %v4739_v61 = vsel %vm4693_vm7, 0, %v909_v63 }
  0x99   : > { %v893_v42 = vsel %vm4155_vm12, 0, %v4154_v53  ;;  %v1135_v14 = vsel %vm1133_vm10, %v1123_v23, 2102212464  ;;  %v1144_v16 = vsel %vm1132_vm9, %v1126_v59, %v1143_v37  ;;  %v1141_v18 = vsel %vm1131_vm11, %v1138_v11, %v1140_v54 }
  0x9a   : > { %v894_v48 = vsub.s32 32, %v893_v42  ;;  %v895_v52 = vshll.u32 %v4684_v26, %v893_v42  ;;  %v898_v17 = vsub.s32 4294967266, %v893_v42  ;;  %v1145_v44 = vsel %vm1131_vm11, %v1142_v13, %v1144_v16 }
  0x9b   : > { %v1147_v15 = vand.u32 65535, %v4725_v2  ;;  %v1148_v19 = vshrl.u32 %v4725_v2, 16  ;;  %v4754_v43 = vand.u32 8388607, %v1415_v47  ;;  %v1134_v21 = vsel %vm1130_vm6, %v1114_v8, %v1117_v29 }
  0x9c   : > { %v896_v9 = vshrl.u32 %v878_v35, %v894_v48  ;;  %v899_v20 = vadd.s32 127, %v898_v17  ;;  %v1425_v26 = vadd.s32 1, %v4171_v10  ;;  %v928_v24 = vadd.s32 3, %v4739_v61 }
  0x9d   : > { %v1136_v22 = vsel %vm1132_vm9, %v1120_v39, %v1135_v14  ;;  %v1149_v27 = vand.u32 65535, %v1145_v44  ;;  %v1150_v49 = vshrl.u32 %v1145_v44, 16  ;;  %v1171_v25 = vand.u32 65535, %v1141_v18 }
  0x9e   : > { %v897_v5 = vor.u32 %v896_v9, %v895_v52  ;;  %v900_v57 = vshll.u32 %v899_v20, 23  ;;  %v1172_v40 = vshrl.u32 %v1141_v18, 16  ;;  %v1423_v23 = vor.u32 8388608, %v4754_v43 }
  0x9f   : > { %v1151_v41 = vmul.u32 %v1149_v27, %v1147_v15  ;;  %v1152_v4 = vmul.u32 %v1150_v49, %v1147_v15  ;;  %v1153_v3 = vmul.u32 %v1149_v27, %v1148_v19  ;;  %v4764_v29 = vsel %vm1131_vm11, %v1134_v21, %v1136_v22 }
  0xa0   : > { %v901_v60 = vor.u32 4788187, %v900_v57  ;;  %v904_v38 = vcvt.s32.f32 %v897_v5  ;;  %vm1426_vm13 = vcmp.gt.s32.totalorder %v1425_v26, 0  ;;  %v4766_v0 = vand.u32 3, %v928_v24 }
  0xa1   : > { %v1154_v39 = vmul.u32 %v1150_v49, %v1148_v19  ;;  %v1155_v51 = vshll.u32 %v1152_v4, 16  ;;  %v1157_v59 = vshll.u32 %v1153_v3, 16  ;;  %v1173_v58 = vmul.u32 %v1171_v25, %v1147_v15 }
  0xa2   : > { %v902_v62 = vand.u32 2147483647, %v901_v60  ;;  %v1174_v1 = vmul.u32 %v1172_v40, %v1147_v15  ;;  %v1175_v33 = vmul.u32 %v1171_v25, %v1148_v19  ;;  %v1156_v35 = vshrl.u32 %v1152_v4, 16 }
  0xa3   : > { %vm1159_vm14 = vc.u32 %v1151_v41, %v1155_v51  ;;  %v1161_v53 = vadd.s32 %v1155_v51, %v1151_v41  ;;  %v1427_v63 = vsel %vm1426_vm13, %v1425_v26, 0  ;;  %v1176_v12 = vmul.u32 %v1172_v40, %v1148_v19 }
  0xa4   : > { %v905_v6 = vmul.f32 %v904_v38, %v902_v62  ;;  %v1160_v13 = vsel %vm1159_vm14, 1, %v4306_v46  ;;  %v1177_v37 = vshll.u32 %v1174_v1, 16  ;;  %v1158_v10 = vshrl.u32 %v1153_v3, 16 }
  0xa5   : > { %v1162_v8 = vadd.s32 %v1160_v13, %v1154_v39  ;;  %vm1163_vm15 = vc.u32 %v1161_v53, %v1157_v59  ;;  %v1179_v11 = vshll.u32 %v1175_v33, 16  ;;  %v1178_v48 = vshrl.u32 %v1174_v1, 16 }
  0xa6   : > { %v906_v54 = vxor.u32 2147483648, %v905_v6  ;;  %v1164_v42 = vsel %vm1163_vm15, 1, %v4306_v46  ;;  %vm1181_vm0 = vc.u32 %v1173_v58, %v1177_v37  ;;  %v1183_v14 = vadd.s32 %v1177_v37, %v1173_v58 }
  0xa7   : > { %v1166_v16 = vadd.s32 %v1164_v42, %v1162_v8  ;;  %v1182_v52 = vsel %vm1181_vm0, 1, %v4306_v46  ;;  %v1429_v17 = vand.u32 31, %v1427_v63  ;;  %v4782_v24 = vand.u32 3, %v4739_v61 }
  0xa8   : > { %v907_v44 = vsel %vm786_vm5, %v906_v54, %v905_v6  ;;  %v1184_v18 = vadd.s32 %v1182_v52, %v1176_v12  ;;  %vm1185_vm1 = vc.u32 %v1183_v14, %v1179_v11  ;;  %v4773_v15 = vadd.s32 %v1183_v14, %v1179_v11 }
  0xa9   : > { %v910_v19 = vsel %vm4693_vm7, %v4375_v7, %v907_v44  ;;  %v1167_v9 = vadd.s32 %v1166_v16, %v1156_v35  ;;  %v1186_v20 = vsel %vm1185_vm1, 1, %v4306_v46  ;;  %v4779_v21 = vsub.s32 32, %v1429_v17 }
  0xaa   : > { %v912_v26 = vmul.f32 %v910_v19, %v910_v19  ;;  %v1180_v22 = vshrl.u32 %v1175_v33, 16  ;;  %v1188_v27 = vadd.s32 %v1186_v20, %v1184_v18  ;;  %v1191_v5 = vmul.u32 %v4725_v2, %v4764_v29 }
  0xab   : > { %v4784_v49 = vadd.s32 %v1167_v9, %v1158_v10  ;;  %v4788_v57 = vshrl.u32 %v1427_v63, 5  ;;  %v1432_v31 = vshll.u32 %v4300_v28, %v1429_v17  ;;  %v1435_v4 = vshll.u32 %v4301_v30, %v1429_v17 }
  0xac   : > { %v913_v25 = vmul.f32 -0.001358992, %v912_v26  ;;  %v920_v40 = vmul.f32 -0.00019511016, %v912_v26  ;;  %v1189_v41 = vadd.s32 %v1188_v27, %v1178_v48  ;;  %v1433_v61 = vshrl.u32 %v4301_v30, %v4779_v21 }
  0xad   : > { %vm1193_vm2 = vc.u32 %v4784_v49, %v4773_v15  ;;  %v1436_v3 = vshrl.u32 %v4302_v32, %v4779_v21  ;;  %v1438_v2 = vshll.u32 %v4302_v32, %v1429_v17  ;;  %v1439_v39 = vshrl.u32 %v4303_v34, %v4779_v21 }
  0xae   : > { %v914_v60 = vadd.f32 0.041655596, %v913_v25  ;;  %v921_v38 = vadd.f32 0.008332121, %v920_v40  ;;  %v1190_v29 = vadd.s32 %v1189_v41, %v1180_v22  ;;  %v1441_v51 = vshll.u32 %v4303_v34, %v1429_v17 }
  0xaf   : > { %v1442_v59 = vshrl.u32 %v4304_v36, %v4779_v21  ;;  %v1444_v62 = vshll.u32 %v4304_v36, %v1429_v17  ;;  %v1445_v58 = vshrl.u32 %v4305_v45, %v4779_v21  ;;  %vm1447_vm3 = vcmp.lt.s32.totalorder %v4788_v57, 1 }
  0xb0   : > { %v915_v1 = vmul.f32 %v914_v60, %v912_v26  ;;  %v922_v33 = vmul.f32 %v921_v38, %v912_v26  ;;  %v1194_v35 = vadd.s32 1, %v1190_v29  ;;  %v4808_v53 = vor.u32 %v1433_v61, %v1432_v31 }
  0xb1   : > { %v4810_v63 = vor.u32 %v1436_v3, %v1435_v4  ;;  %v4812_v6 = vor.u32 %v1439_v39, %v1438_v2  ;;  %v1443_v13 = vor.u32 %v1442_v59, %v1441_v51  ;;  %vm1450_vm4 = vcmp.lt.s32.totalorder %v4788_v57, 4 }
  0xb2   : > { %v916_v12 = vadd.f32 -0.4999988, %v915_v1  ;;  %v923_v37 = vadd.f32 -0.16666654, %v922_v33  ;;  %v1195_v10 = vsel %vm1193_vm2, %v1194_v35, %v1190_v29  ;;  %vm927_vm5 = vweird.f32 %v4375_v7 }
  0xb3   : > { %vm930_vm6 = vcmp.lt.s32.totalorder %v4766_v0, 2  ;;  %v1196_v8 = vadd.s32 %v1195_v10, %v1191_v5  ;;  %v1446_v11 = vor.u32 %v1445_v58, %v1444_v62  ;;  %vm1449_vm7 = vcmp.lt.s32.totalorder %v4788_v57, 3 }
  0xb4   : > { %v917_v54 = vmul.f32 %v916_v12, %v912_v26  ;;  %v924_v42 = vmul.f32 %v923_v37, %v912_v26  ;;  %vm931_vm8 = vcmp.eq.s32.totalorder %v4766_v0, 0  ;;  %vm934_vm9 = vcmp.eq.s32.totalorder %v4766_v0, 2 }
  0xb5   : > { %v1197_v14 = vadd.s32 536870912, %v1196_v8  ;;  %vm1448_vm10 = vcmp.lt.s32.totalorder %v4788_v57, 2  ;;  %v1455_v16 = vsel %vm1447_vm3, %v4808_v53, %v4810_v63  ;;  %v1456_v48 = vsel %vm1450_vm4, %v1443_v13, 920167782 }
  0xb6   : > { %v918_v52 = vadd.f32 1.0, %v917_v54  ;;  %v925_v17 = vadd.f32 1.0, %v924_v42  ;;  %v1457_v44 = vsel %vm1449_vm7, %v4812_v6, %v1456_v48  ;;  %v1459_v18 = vsel %vm1447_vm3, %v4810_v63, %v4812_v6 }
  0xb7   : > { %vm1090_vm11 = vcmp.eq.s32.totalorder %v4782_v24, 2  ;;  %v4838_v9 = vshrl.u32 %v1197_v14, 30  ;;  %v1460_v20 = vsel %vm1450_vm4, %v1446_v11, 1326507024  ;;  %v4844_v26 = vshll.u32 %v1423_v23, 8 }
  0xb8   : > { %v926_v22 = vmul.f32 %v925_v17, %v910_v19  ;;  %v935_v27 = vxor.u32 2147483648, %v918_v52  ;;  %vm1087_vm12 = vcmp.eq.s32.totalorder %v4782_v24, 0  ;;  %v1461_v5 = vsel %vm1449_vm7, %v1443_v13, %v1460_v20 }
  0xb9   : > { %vm1086_vm13 = vcmp.lt.s32.totalorder %v4782_v24, 2  ;;  %v1199_v31 = vshll.u32 %v4838_v9, 30  ;;  %v1458_v25 = vsel %vm1448_vm10, %v1455_v16, %v1457_v44  ;;  %v1462_v40 = vsel %vm1448_vm10, %v1459_v18, %v1461_v5 }
  0xba   : > { %v932_v43 = vxor.u32 2147483648, %v926_v22  ;;  %v936_v23 = vsel %vm934_vm9, %v935_v27, %v926_v22  ;;  %v1092_v19 = vsel %vm1090_vm11, %v935_v27, %v926_v22  ;;  %v1464_v41 = vand.u32 65535, %v4844_v26 }
  0xbb   : > { %v1200_v4 = vsub.s32 %v1196_v8, %v1199_v31  ;;  %v1465_v61 = vshrl.u32 %v4844_v26, 16  ;;  %v1466_v3 = vand.u32 65535, %v1462_v40  ;;  %v1467_v2 = vshrl.u32 %v1462_v40, 16 }
  0xbc   : > { %v933_v60 = vsel %vm931_vm8, %v918_v52, %v932_v43  ;;  %v1089_v38 = vsel %vm1087_vm12, %v918_v52, %v932_v43  ;;  %v1489_v29 = vshrl.u32 %v1458_v25, 16  ;;  %v1488_v12 = vand.u32 65535, %v1458_v25 }
  0xbd   : > { %v937_v39 = vsel %vm930_vm6, %v933_v60, %v936_v23  ;;  %v1093_v51 = vsel %vm1086_vm13, %v1089_v38, %v1092_v19  ;;  %vm1201_vm14 = vcmp.lt.s32.totalorder %v1200_v4, 0  ;;  %v1202_v59 = vsub.s32 0, %v1200_v4 }
  0xbe   : > { %v938_v62 = vsel %vm927_vm5, nan, %v937_v39  ;;  %v1094_v58 = vsel %vm927_vm5, nan, %v1093_v51  ;;  %v1468_v1 = vmul.u32 %v1466_v3, %v1464_v41  ;;  %v1469_v33 = vmul.u32 %v1467_v2, %v1464_v41 }
  0xbf   : > { %4156 = vst [vmem:[%s4365_s26 + $0x28] sm:$0xff] %v938_v62  ;;  %v1203_v35 = vsel %vm1201_vm14, %v1202_v59, %v1200_v4  ;;  %v1470_v13 = vmul.u32 %v1466_v3, %v1465_v61  ;;  %v1471_v37 = vmul.u32 %v1467_v2, %v1465_v61  ;;  %v1491_v8 = vmul.u32 %v1489_v29, %v1464_v41 }
  0xc0   : > { %4160 = vst [vmem:[%s4365_s26 + $0x30] sm:$0xff] %v1094_v58  ;;  %v1204_v0 = vclz %v1203_v35  ;;  %v1472_v10 = vshll.u32 %v1469_v33, 16  ;;  %v1192_v42 = vadd.s32 %v4773_v15, %v4784_v49  ;;  %v1431_v7 = vshrl.u32 %v4300_v28, %v4779_v21 }
  0xc1   : > { %v1474_v24 = vshll.u32 %v1470_v13, 16  ;;  %v1492_v16 = vmul.u32 %v1488_v12, %v1465_v61  ;;  %v1490_v52 = vmul.u32 %v1488_v12, %v1464_v41  ;;  %v1473_v44 = vshrl.u32 %v1469_v33, 16 }
  0xc2   : > { %v4162_v11 = vadd.s32 4294967294, %v1204_v0  ;;  %vm1476_vm15 = vc.u32 %v1468_v1, %v1472_v10  ;;  %v1478_v54 = vadd.s32 %v1472_v10, %v1468_v1  ;;  %v1494_v20 = vshll.u32 %v1491_v8, 16 }
  0xc3   : > { %v1477_v14 = vsel %vm1476_vm15, 1, %v4306_v46  ;;  %vm1100_vm2 = vcmp.lt.s32.totalorder %v4627_v55, 0  ;;  %v1493_v15 = vmul.u32 %v1489_v29, %v1465_v61  ;;  %v1496_v21 = vshll.u32 %v1492_v16, 16 }
  0xc4   : > { %vm4163_vm0 = vcmp.lt.s32.totalorder %v4162_v11, 0  ;;  %v1479_v48 = vadd.s32 %v1477_v14, %v1471_v37  ;;  %vm1480_vm1 = vc.u32 %v1478_v54, %v1474_v24  ;;  %v1451_v40 = vsel %vm1447_vm3, %v1431_v7, %v4808_v53 }
  0xc5   : > { %v1207_v17 = vsel %vm4163_vm0, 0, %v4162_v11  ;;  %v1481_v18 = vsel %vm1480_vm1, 1, %v4306_v46  ;;  %v1452_v43 = vsel %vm1450_vm4, %v4812_v6, 2102212464  ;;  %v1222_v23 = vsub.s32 4, %v4838_v9 }
  0xc6   : > { %v1208_v22 = vsub.s32 32, %v1207_v17  ;;  %v1209_v27 = vshll.u32 %v1200_v4, %v1207_v17  ;;  %v1212_v5 = vsub.s32 4294967266, %v1207_v17  ;;  %v1483_v31 = vadd.s32 %v1481_v18, %v1479_v48 }
  0xc7   : > { %v1475_v19 = vshrl.u32 %v1470_v13, 16  ;;  %vm1498_vm5 = vc.u32 %v1490_v52, %v1494_v20  ;;  %v1500_v41 = vadd.s32 %v1494_v20, %v1490_v52  ;;  %v1453_v60 = vsel %vm1449_vm7, %v4810_v63, %v1452_v43 }
  0xc8   : > { %v1210_v49 = vshrl.u32 %v1192_v42, %v1208_v22  ;;  %v1213_v25 = vadd.s32 127, %v1212_v5  ;;  %v1484_v2 = vadd.s32 %v1483_v31, %v1473_v44  ;;  %v1499_v61 = vsel %vm1498_vm5, 1, %v4306_v46 }
  0xc9   : > { %v1495_v38 = vshrl.u32 %v1491_v8, 16  ;;  %v1501_v53 = vadd.s32 %v1499_v61, %v1493_v15  ;;  %vm1502_vm3 = vc.u32 %v1500_v41, %v1496_v21  ;;  %v4891_v51 = vmul.f32 2.0, %v4568_v56 }
  0xca   : > { %v1211_v4 = vor.u32 %v1210_v49, %v1209_v27  ;;  %v1214_v3 = vshll.u32 %v1213_v25, 23  ;;  %v1503_v6 = vsel %vm1502_vm3, 1, %v4306_v46  ;;  %v1223_v59 = vsel %vm1100_vm2, %v1222_v23, %v4838_v9 }
  0xcb   : > { %v1497_v62 = vshrl.u32 %v1492_v16, 16  ;;  %v1505_v58 = vadd.s32 %v1503_v6, %v1501_v53  ;;  %v1485_v33 = vadd.s32 %v1484_v2, %v1475_v19  ;;  %v1504_v35 = vadd.s32 %v1500_v41, %v1496_v21 }
  0xcc   : > { %v1215_v29 = vor.u32 4788187, %v1214_v3  ;;  %v1218_v39 = vcvt.s32.f32 %v1211_v4  ;;  %v1732_v63 = vand.u32 2139095040, %v4891_v51  ;;  %vm4899_vm4 = vcmp.le.f32.partialorder %v1098_v50, 0.7853982 }
  0xcd   : > { %v1454_v12 = vsel %vm1448_vm10, %v1451_v40, %v1453_v60  ;;  %v1506_v0 = vadd.s32 %v1505_v58, %v1495_v38  ;;  %v4906_v37 = vmul.f32 4.0, %v4568_v56  ;;  %v1225_v10 = vsel %vm4899_vm4, 0, %v1223_v59 }
  0xce   : > { %v1216_v1 = vand.u32 2147483647, %v1215_v29  ;;  %v1729_v24 = vand.u32 2147483647, %v4891_v51  ;;  %v1733_v8 = vshrl.u32 %v1732_v63, 23  ;;  %v1508_v50 = vmul.u32 %v4844_v26, %v1454_v12 }
  0xcf   : > { %v1507_v11 = vadd.s32 %v1506_v0, %v1497_v62  ;;  %vm1510_vm6 = vc.u32 %v1485_v33, %v1504_v35  ;;  %v1242_v7 = vadd.s32 3, %v1225_v10  ;;  %v2046_v14 = vand.u32 2139095040, %v4906_v37 }
  0xd0   : > { %v1219_v9 = vmul.f32 %v1218_v39, %v1216_v1  ;;  %v4179_v42 = vadd.s32 4294967169, %v1733_v8  ;;  %v1736_v48 = vand.u32 8388607, %v1729_v24  ;;  %v4926_v22 = vand.u32 3, %v1225_v10 }
  0xd1   : > { %v1511_v57 = vadd.s32 1, %v1507_v11  ;;  %v4924_v20 = vand.u32 3, %v1242_v7  ;;  %v2047_v5 = vshrl.u32 %v2046_v14, 23  ;;  %vm1417_vm8 = vcmp.lt.s32.totalorder %v4568_v56, 0 }
  0xd2   : > { %v1220_v54 = vxor.u32 2147483648, %v1219_v9  ;;  %v1739_v52 = vadd.s32 1, %v4179_v42  ;;  %v1737_v49 = vor.u32 8388608, %v1736_v48  ;;  %v4929_v23 = vadd.s32 %v1504_v35, %v1485_v33 }
  0xd3   : > { %v1512_v44 = vsel %vm1510_vm6, %v1511_v57, %v1507_v11  ;;  %vm1248_vm9 = vcmp.eq.s32.totalorder %v4924_v20, 2  ;;  %vm1404_vm10 = vcmp.eq.s32.totalorder %v4926_v22, 2  ;;  %v2043_v3 = vand.u32 2147483647, %v4906_v37 }
  0xd4   : > { %v1221_v16 = vsel %vm1100_vm2, %v1220_v54, %v1219_v9  ;;  %v1513_v18 = vadd.s32 %v1512_v44, %v1508_v50  ;;  %vm1740_vm7 = vcmp.gt.s32.totalorder %v1739_v52, 0  ;;  %v4187_v2 = vadd.s32 4294967169, %v2047_v5 }
  0xd5   : > { %v4920_v17 = vsel %vm4899_vm4, %v4627_v55, %v1221_v16  ;;  %v1741_v27 = vsel %vm1740_vm7, %v1739_v52, 0  ;;  %v4936_v53 = vshll.u32 %v1737_v49, 8  ;;  %vm1245_vm11 = vcmp.eq.s32.totalorder %v4924_v20, 0 }
  0xd6   : > { %v1226_v26 = vmul.f32 %v4920_v17, %v4920_v17  ;;  %v1514_v21 = vadd.s32 536870912, %v1513_v18  ;;  %v1743_v25 = vand.u32 31, %v1741_v27  ;;  %v4933_v41 = vshrl.u32 %v1741_v27, 5 }
  0xd7   : > { %vm1401_vm12 = vcmp.eq.s32.totalorder %v4926_v22, 0  ;;  %vm4942_vm13 = vcmp.le.f32.partialorder %v1415_v47, 0.7853982  ;;  %vm1244_vm14 = vcmp.lt.s32.totalorder %v4924_v20, 2  ;;  %vm1400_vm15 = vcmp.lt.s32.totalorder %v4926_v22, 2 }
  0xd8   : > { %v1227_v31 = vmul.f32 -0.001358992, %v1226_v26  ;;  %v1234_v15 = vmul.f32 -0.00019511016, %v1226_v26  ;;  %v1515_v19 = vshrl.u32 %v1514_v21, 30  ;;  %v1744_v4 = vsub.s32 32, %v1743_v25 }
  0xd9   : > { %v1746_v6 = vshll.u32 %v4300_v28, %v1743_v25  ;;  %v1749_v62 = vshll.u32 %v4301_v30, %v1743_v25  ;;  %vm1241_vm0 = vweird.f32 %v4627_v55  ;;  %v1752_v47 = vshll.u32 %v4302_v32, %v1743_v25 }
  0xda   : > { %v1228_v40 = vadd.f32 0.041655596, %v1227_v31  ;;  %v1235_v43 = vadd.f32 0.008332121, %v1234_v15  ;;  %v1516_v38 = vshll.u32 %v1515_v19, 30  ;;  %v1539_v39 = vsub.s32 4, %v1515_v19 }
  0xdb   : > { %v1747_v59 = vshrl.u32 %v4301_v30, %v1744_v4  ;;  %v1750_v35 = vshrl.u32 %v4302_v32, %v1744_v4  ;;  %v1753_v63 = vshrl.u32 %v4303_v34, %v1744_v4  ;;  %vm1761_vm1 = vcmp.lt.s32.totalorder %v4933_v41, 1 }
  0xdc   : > { %v1229_v61 = vmul.f32 %v1228_v40, %v1226_v26  ;;  %v1236_v60 = vmul.f32 %v1235_v43, %v1226_v26  ;;  %v1517_v33 = vsub.s32 %v1513_v18, %v1516_v38  ;;  %v4956_v13 = vadd.s32 1, %v4187_v2 }
  0xdd   : > { %v1540_v10 = vsel %vm1417_vm8, %v1539_v39, %v1515_v19  ;;  %v1748_v8 = vor.u32 %v1747_v59, %v1746_v6  ;;  %v1755_v11 = vshll.u32 %v4303_v34, %v1743_v25  ;;  %v1756_v54 = vshrl.u32 %v4304_v36, %v1744_v4 }
  0xde   : > { %v1230_v58 = vadd.f32 -0.4999988, %v1229_v61  ;;  %v1237_v1 = vadd.f32 -0.16666654, %v1236_v60  ;;  %vm1518_vm2 = vcmp.lt.s32.totalorder %v1517_v33, 0  ;;  %v1519_v9 = vsub.s32 0, %v1517_v33 }
  0xdf   : > { %v1751_v57 = vor.u32 %v1750_v35, %v1749_v62  ;;  %v1757_v16 = vor.u32 %v1756_v54, %v1755_v11  ;;  %v1758_v48 = vshll.u32 %v4304_v36, %v1743_v25  ;;  %v1759_v52 = vshrl.u32 %v4305_v45, %v1744_v4 }
  0xe0   : > { %v1231_v12 = vmul.f32 %v1230_v58, %v1226_v26  ;;  %v1238_v0 = vmul.f32 %v1237_v1, %v1226_v26  ;;  %v1520_v7 = vsel %vm1518_vm2, %v1519_v9, %v1517_v33  ;;  %v1754_v18 = vor.u32 %v1753_v63, %v1752_v47 }
  0xe1   : > { %v1521_v14 = vclz %v1520_v7  ;;  %vm1764_vm5 = vcmp.lt.s32.totalorder %v4933_v41, 4  ;;  %v1745_v5 = vshrl.u32 %v4300_v28, %v1744_v4  ;;  %vm1763_vm3 = vcmp.lt.s32.totalorder %v4933_v41, 3 }
  0xe2   : > { %v1232_v50 = vadd.f32 1.0, %v1231_v12  ;;  %v1239_v42 = vadd.f32 1.0, %v1238_v0  ;;  %v1770_v31 = vsel %vm1764_vm5, %v1757_v16, 920167782  ;;  %v1760_v25 = vor.u32 %v1759_v52, %v1758_v48 }
  0xe3   : > { %v4172_v27 = vadd.s32 4294967294, %v1521_v14  ;;  %vm1762_vm6 = vcmp.lt.s32.totalorder %v4933_v41, 2  ;;  %v1769_v40 = vsel %vm1761_vm1, %v1748_v8, %v1751_v57  ;;  %v1771_v2 = vsel %vm1763_vm3, %v1754_v18, %v1770_v31 }
  0xe4   : > { %v1240_v44 = vmul.f32 %v1239_v42, %v4920_v17  ;;  %v1249_v26 = vxor.u32 2147483648, %v1232_v50  ;;  %v4976_v17 = vsel %vm4942_vm13, 0, %v1540_v10  ;;  %v1766_v58 = vsel %vm1764_vm5, %v1754_v18, 2102212464 }
  0xe5   : > { %vm4173_vm4 = vcmp.lt.s32.totalorder %v4172_v27, 0  ;;  %v1772_v20 = vsel %vm1762_vm6, %v1769_v40, %v1771_v2  ;;  %v1778_v22 = vand.u32 65535, %v4936_v53  ;;  %v1765_v55 = vsel %vm1761_vm1, %v1745_v5, %v1748_v8 }
  0xe6   : > { %v1246_v15 = vxor.u32 2147483648, %v1240_v44  ;;  %v1250_v21 = vsel %vm1248_vm9, %v1249_v26, %v1240_v44  ;;  %v1406_v49 = vsel %vm1404_vm10, %v1249_v26, %v1240_v44  ;;  %v1524_v4 = vsel %vm4173_vm4, 0, %v4172_v27 }
  0xe7   : > { %v1525_v38 = vsub.s32 32, %v1524_v4  ;;  %v1526_v39 = vshll.u32 %v1517_v33, %v1524_v4  ;;  %v1529_v62 = vsub.s32 4294967266, %v1524_v4  ;;  %v5004_v33 = vand.u32 8388607, %v2043_v3 }
  0xe8   : > { %v1247_v43 = vsel %vm1245_vm11, %v1232_v50, %v1246_v15  ;;  %v1403_v19 = vsel %vm1401_vm12, %v1232_v50, %v1246_v15  ;;  %v1779_v47 = vshrl.u32 %v4936_v53, 16  ;;  %vm2054_vm7 = vcmp.gt.s32.totalorder %v4956_v13, 0 }
  0xe9   : > { %v1251_v61 = vsel %vm1244_vm14, %v1247_v43, %v1250_v21  ;;  %v1407_v60 = vsel %vm1400_vm15, %v1403_v19, %v1406_v49  ;;  %v1527_v1 = vshrl.u32 %v4929_v23, %v1525_v38  ;;  %v1530_v35 = vadd.s32 127, %v1529_v62 }
  0xea   : > { %v1252_v6 = vsel %vm1241_vm0, nan, %v1251_v61  ;;  %v1408_v59 = vsel %vm1241_vm0, nan, %v1407_v60  ;;  %v1559_v23 = vadd.s32 3, %v4976_v17  ;;  %v1767_v12 = vsel %vm1763_vm3, %v1751_v57, %v1766_v58 }
  0xeb   : > { %4164 = vst [vmem:[%s4365_s26 + $0x38] sm:$0xff] %v1252_v6  ;;  %v1528_v63 = vor.u32 %v1527_v1, %v1526_v39  ;;  %v1773_v0 = vsel %vm1761_vm1, %v1751_v57, %v1754_v18  ;;  %v1531_v9 = vshll.u32 %v1530_v35, 23  ;;  %v1774_v10 = vsel %vm1764_vm5, %v1760_v25, 1326507024 }
  0xec   : > { %4168 = vst [vmem:[%s4365_s26 + $0x40] sm:$0xff] %v1408_v59  ;;  %v1802_v11 = vand.u32 65535, %v1772_v20  ;;  %v1803_v54 = vshrl.u32 %v1772_v20, 16  ;;  %v1775_v8 = vsel %vm1763_vm3, %v1757_v16, %v1774_v10  ;;  %v2051_v50 = vor.u32 8388608, %v5004_v33  ;;  %v5040_v20 = vld [vmem:[%s4365_s26 + $0x48] sm:$0xff] }
  0xed   : > { %v1532_v42 = vor.u32 4788187, %v1531_v9  ;;  %v1535_v7 = vcvt.s32.f32 %v1528_v63  ;;  %v1776_v14 = vsel %vm1762_vm6, %v1773_v0, %v1775_v8  ;;  %v5024_v48 = vsel %vm2054_vm7, %v4956_v13, 0 }
  0xee   : > { %v5028_v57 = vsel %vm1762_vm6, %v1765_v55, %v1767_v12  ;;  %v1780_v52 = vand.u32 65535, %v1776_v14  ;;  %v1781_v44 = vshrl.u32 %v1776_v14, 16  ;;  %v1805_v26 = vmul.u32 %v1803_v54, %v1778_v22 }
  0xef   : > { %v1533_v18 = vand.u32 2147483647, %v1532_v42  ;;  %v5030_v27 = vand.u32 3, %v1559_v23  ;;  %v1804_v16 = vmul.u32 %v1802_v11, %v1778_v22  ;;  %v1806_v5 = vmul.u32 %v1802_v11, %v1779_v47 }
  0xf0   : > { %v1782_v31 = vmul.u32 %v1780_v52, %v1778_v22  ;;  %v1783_v15 = vmul.u32 %v1781_v44, %v1778_v22  ;;  %v1784_v21 = vmul.u32 %v1780_v52, %v1779_v47  ;;  %v2057_v49 = vand.u32 31, %v5024_v48 }
  0xf1   : > { %v1536_v25 = vmul.f32 %v1535_v7, %v1533_v18  ;;  %v1807_v13 = vmul.u32 %v1803_v54, %v1779_v47  ;;  %v1808_v40 = vshll.u32 %v1805_v26, 16  ;;  %v1810_v43 = vshll.u32 %v1806_v5, 16 }
  0xf2   : > { %v1785_v41 = vmul.u32 %v1781_v44, %v1779_v47  ;;  %v1786_v19 = vshll.u32 %v1783_v15, 16  ;;  %v1788_v4 = vshll.u32 %v1784_v21, 16  ;;  %v1809_v2 = vshrl.u32 %v1805_v26, 16 }
  0xf3   : > { %v1537_v61 = vxor.u32 2147483648, %v1536_v25  ;;  %v1787_v60 = vshrl.u32 %v1783_v15, 16  ;;  %vm1812_vm9 = vc.u32 %v1804_v16, %v1808_v40  ;;  %v1814_v38 = vadd.s32 %v1808_v40, %v1804_v16 }
  0xf4   : > { %vm1790_vm10 = vc.u32 %v1782_v31, %v1786_v19  ;;  %v1792_v39 = vadd.s32 %v1786_v19, %v1782_v31  ;;  %v1813_v6 = vsel %vm1812_vm9, 1, %v4306_v46  ;;  %v5034_v59 = vsub.s32 32, %v2057_v49 }
  0xf5   : > { %v1538_v62 = vsel %vm1417_vm8, %v1537_v61, %v1536_v25  ;;  %v1791_v58 = vsel %vm1790_vm10, 1, %v4306_v46  ;;  %v1815_v1 = vadd.s32 %v1813_v6, %v1807_v13  ;;  %vm1816_vm11 = vc.u32 %v1814_v38, %v1810_v43 }
  0xf6   : > { %v1541_v22 = vsel %vm4942_vm13, %v5040_v20, %v1538_v62  ;;  %v1793_v35 = vadd.s32 %v1791_v58, %v1785_v41  ;;  %vm1794_vm12 = vc.u32 %v1792_v39, %v1788_v4  ;;  %v1817_v55 = vsel %vm1816_vm11, 1, %v4306_v46 }
  0xf7   : > { %v1543_v47 = vmul.f32 %v1541_v22, %v1541_v22  ;;  %v1795_v63 = vsel %vm1794_vm12, 1, %v4306_v46  ;;  %v1811_v23 = vshrl.u32 %v1806_v5, 16  ;;  %v1819_v56 = vadd.s32 %v1817_v55, %v1815_v1 }
  0xf8   : > { %v5048_v12 = vand.u32 3, %v4976_v17  ;;  %v1789_v0 = vshrl.u32 %v1784_v21, 16  ;;  %v1797_v9 = vadd.s32 %v1795_v63, %v1793_v35  ;;  %v1822_v10 = vmul.u32 %v4936_v53, %v5028_v57 }
  0xf9   : > { %v1544_v11 = vmul.f32 -0.001358992, %v1543_v47  ;;  %v1551_v29 = vmul.f32 -0.00019511016, %v1543_v47  ;;  %v5052_v54 = vadd.s32 %v1814_v38, %v1810_v43  ;;  %v1820_v8 = vadd.s32 %v1819_v56, %v1809_v2 }
  0xfa   : > { %v1798_v42 = vadd.s32 %v1797_v9, %v1787_v60  ;;  %v2060_v7 = vshll.u32 %v4300_v28, %v2057_v49  ;;  %v2061_v14 = vshrl.u32 %v4301_v30, %v5034_v59  ;;  %v2063_v52 = vshll.u32 %v4301_v30, %v2057_v49 }
  0xfb   : > { %v1545_v17 = vadd.f32 0.041655596, %v1544_v11  ;;  %v1552_v44 = vadd.f32 0.008332121, %v1551_v29  ;;  %v1821_v26 = vadd.s32 %v1820_v8, %v1811_v23  ;;  %v2064_v18 = vshrl.u32 %v4302_v32, %v5034_v59 }
  0xfc   : > { %v5060_v53 = vadd.s32 %v1798_v42, %v1789_v0  ;;  %v2066_v57 = vshll.u32 %v4302_v32, %v2057_v49  ;;  %v2069_v16 = vshll.u32 %v4303_v34, %v2057_v49  ;;  %v2070_v5 = vshrl.u32 %v4304_v36, %v5034_v59 }
  0xfd   : > { %v1546_v31 = vmul.f32 %v1545_v17, %v1543_v47  ;;  %v1553_v15 = vmul.f32 %v1552_v44, %v1543_v47  ;;  %v1825_v21 = vadd.s32 1, %v1821_v26  ;;  %v2067_v25 = vshrl.u32 %v4303_v34, %v5034_v59 }
  0xfe   : > { %vm1562_vm8 = vcmp.eq.s32.totalorder %v5030_v27, 0  ;;  %vm1824_vm13 = vc.u32 %v5060_v53, %v5052_v54  ;;  %v5072_v13 = vshrl.u32 %v5024_v48, 5  ;;  %v2072_v40 = vshll.u32 %v4304_v36, %v2057_v49 }
  0xff   : > { %v1547_v43 = vadd.f32 -0.4999988, %v1546_v31  ;;  %v1554_v41 = vadd.f32 -0.16666654, %v1553_v15  ;;  %vm1561_vm14 = vcmp.lt.s32.totalorder %v5030_v27, 2  ;;  %v1826_v19 = vsel %vm1824_vm13, %v1825_v21, %v1821_v26 }
 0x100   : > { %v2073_v4 = vshrl.u32 %v4305_v45, %v5034_v59  ;;  %vm1565_vm15 = vcmp.eq.s32.totalorder %v5030_v27, 2  ;;  %v1827_v2 = vadd.s32 %v1826_v19, %v1822_v10  ;;  %v5079_v61 = vor.u32 %v2061_v14, %v2060_v7  ;;  %v5111_v10 = vld [vmem:[%s4360_s25 + $0x10] sm:$0xff] }
 0x101   : > { %v2071_v60 = vor.u32 %v2070_v5, %v2069_v16  ;;  %v1548_v38 = vmul.f32 %v1547_v43, %v1543_v47  ;;  %v1555_v39 = vmul.f32 %v1554_v41, %v1543_v47  ;;  %v5081_v48 = vor.u32 %v2064_v18, %v2063_v52  ;;  %4204 = vst [vmem:[%s4365_s26 + $0x90] sm:$0xff] %v5111_v10 }
 0x102   : > { %v5083_v6 = vor.u32 %v2067_v25, %v2066_v57  ;;  %v1828_v49 = vadd.s32 536870912, %v1827_v2  ;;  %v2074_v62 = vor.u32 %v2073_v4, %v2072_v40  ;;  %vm2075_vm0 = vcmp.lt.s32.totalorder %v5072_v13, 1 }
 0x103   : > { %vm2078_vm1 = vcmp.lt.s32.totalorder %v5072_v13, 4  ;;  %v1549_v58 = vadd.f32 1.0, %v1548_v38  ;;  %v1556_v1 = vadd.f32 1.0, %v1555_v39  ;;  %vm1717_vm2 = vcmp.lt.s32.totalorder %v5048_v12, 2 }
 0x104   : > { %vm2077_vm5 = vcmp.lt.s32.totalorder %v5072_v13, 3  ;;  %vm1718_vm3 = vcmp.eq.s32.totalorder %v5048_v12, 0  ;;  %vm1721_vm4 = vcmp.eq.s32.totalorder %v5048_v12, 2  ;;  %v5091_v35 = vshrl.u32 %v1828_v49, 30 }
 0x105   : > { %v2084_v55 = vsel %vm2078_vm1, %v2071_v60, 920167782  ;;  %v1557_v47 = vmul.f32 %v1556_v1, %v1541_v22  ;;  %v1566_v63 = vxor.u32 2147483648, %v1549_v58  ;;  %vm2076_vm6 = vcmp.lt.s32.totalorder %v5072_v13, 2 }
 0x106   : > { %v2087_v23 = vsel %vm2075_vm0, %v5081_v48, %v5083_v6  ;;  %v1830_v56 = vshll.u32 %v5091_v35, 30  ;;  %v2083_v0 = vsel %vm2075_vm0, %v5079_v61, %v5081_v48  ;;  %v2085_v9 = vsel %vm2077_vm5, %v5083_v6, %v2084_v55 }
 0x107   : > { %v2088_v22 = vsel %vm2078_vm1, %v2074_v62, 1326507024  ;;  %v1563_v11 = vxor.u32 2147483648, %v1557_v47  ;;  %v1567_v29 = vsel %vm1565_vm15, %v1566_v63, %v1557_v47  ;;  %v1723_v8 = vsel %vm1721_vm4, %v1566_v63, %v1557_v47 }
 0x108   : > { %v2089_v42 = vsel %vm2077_vm5, %v2071_v60, %v2088_v22  ;;  %vm1558_vm7 = vweird.f32 %v5040_v20  ;;  %v1831_v7 = vsub.s32 %v1827_v2, %v1830_v56  ;;  %v5124_v52 = vshll.u32 %v2051_v50, 8 }
 0x109   : > { %v2090_v14 = vsel %vm2076_vm6, %v2087_v23, %v2089_v42  ;;  %v1564_v17 = vsel %vm1562_vm8, %v1549_v58, %v1563_v11  ;;  %v1720_v44 = vsel %vm1718_vm3, %v1549_v58, %v1563_v11  ;;  %v2086_v26 = vsel %vm2076_vm6, %v2083_v0, %v2085_v9 }
 0x10a   : > { %v2094_v18 = vand.u32 65535, %v2090_v14  ;;  %v1568_v57 = vsel %vm1561_vm14, %v1564_v17, %v1567_v29  ;;  %v1724_v16 = vsel %vm1717_vm2, %v1720_v44, %v1723_v8  ;;  %vm1832_vm9 = vcmp.lt.s32.totalorder %v1831_v7, 0 }
 0x10b   : > { %v1833_v33 = vsub.s32 0, %v1831_v7  ;;  %v1569_v50 = vsel %vm1558_vm7, nan, %v1568_v57  ;;  %v1725_v5 = vsel %vm1558_vm7, nan, %v1724_v16  ;;  %v2092_v31 = vand.u32 65535, %v5124_v52 }
 0x10c   : > { %4174 = vst [vmem:[%s4365_s26 + $0x50] sm:$0xff] %v1569_v50  ;;  %v2093_v21 = vshrl.u32 %v5124_v52, 16  ;;  %v2095_v25 = vshrl.u32 %v2090_v14, 16  ;;  %v2117_v40 = vshrl.u32 %v2086_v26, 16  ;;  %v2116_v41 = vand.u32 65535, %v2086_v26 }
 0x10d   : > { %v1834_v15 = vsel %vm1832_vm9, %v1833_v33, %v1831_v7  ;;  %4178 = vst [vmem:[%s4365_s26 + $0x58] sm:$0xff] %v1725_v5  ;;  %v2096_v27 = vmul.u32 %v2094_v18, %v2092_v31  ;;  %v1823_v2 = vadd.s32 %v5052_v54, %v5060_v53  ;;  %v2059_v60 = vshrl.u32 %v4300_v28, %v5034_v59 }
 0x10e   : > { %v1835_v43 = vclz %v1834_v15  ;;  %v2097_v19 = vmul.u32 %v2095_v25, %v2092_v31  ;;  %v2119_v4 = vmul.u32 %v2117_v40, %v2092_v31  ;;  %v2098_v38 = vmul.u32 %v2094_v18, %v2093_v21 }
 0x10f   : > { %v1853_v49 = vsub.s32 4, %v5091_v35  ;;  %v2099_v62 = vmul.u32 %v2095_v25, %v2093_v21  ;;  %v2118_v58 = vmul.u32 %v2116_v41, %v2092_v31  ;;  %v2120_v55 = vmul.u32 %v2116_v41, %v2093_v21 }
 0x110   : > { %v4180_v12 = vadd.s32 4294967294, %v1835_v43  ;;  %v2100_v39 = vshll.u32 %v2097_v19, 16  ;;  %v2122_v47 = vshll.u32 %v2119_v4, 16  ;;  %vm5148_vm12 = vcmp.le.f32.partialorder %v1729_v24, 0.7853982 }
 0x111   : > { %vm1731_vm8 = vcmp.lt.s32.totalorder %v4891_v51, 0  ;;  %v2079_v54 = vsel %vm2075_vm0, %v2059_v60, %v5079_v61  ;;  %v2102_v53 = vshll.u32 %v2098_v38, 16  ;;  %v2080_v11 = vsel %vm2078_vm1, %v5083_v6, 2102212464 }
 0x112   : > { %vm4181_vm10 = vcmp.lt.s32.totalorder %v4180_v12, 0  ;;  %vm2104_vm11 = vc.u32 %v2096_v27, %v2100_v39  ;;  %v2121_v29 = vmul.u32 %v2117_v40, %v2093_v21  ;;  %v1854_v24 = vsel %vm1731_vm8, %v1853_v49, %v5091_v35 }
 0x113   : > { %v1838_v1 = vsel %vm4181_vm10, 0, %v4180_v12  ;;  %v2105_v0 = vsel %vm2104_vm11, 1, %v4306_v46  ;;  %v2106_v8 = vadd.s32 %v2100_v39, %v2096_v27  ;;  %vm2126_vm13 = vc.u32 %v2118_v58, %v2122_v47 }
 0x114   : > { %v1839_v63 = vsub.s32 32, %v1838_v1  ;;  %v1840_v23 = vshll.u32 %v1831_v7, %v1838_v1  ;;  %v1843_v56 = vsub.s32 4294967266, %v1838_v1  ;;  %v2107_v42 = vadd.s32 %v2105_v0, %v2099_v62 }
 0x115   : > { %v2124_v7 = vshll.u32 %v2120_v55, 16  ;;  %v2128_v44 = vadd.s32 %v2122_v47, %v2118_v58  ;;  %v2101_v61 = vshrl.u32 %v2097_v19, 16  ;;  %vm2108_vm14 = vc.u32 %v2106_v8, %v2102_v53 }
 0x116   : > { %v1841_v9 = vshrl.u32 %v1823_v2, %v1839_v63  ;;  %v1844_v22 = vadd.s32 127, %v1843_v56  ;;  %v2127_v26 = vsel %vm2126_vm13, 1, %v4306_v46  ;;  %v5164_v18 = vmul.f32 8.0, %v5040_v20 }
 0x117   : > { %v2109_v16 = vsel %vm2108_vm14, 1, %v4306_v46  ;;  %v2129_v33 = vadd.s32 %v2127_v26, %v2121_v29  ;;  %v2103_v35 = vshrl.u32 %v2098_v38, 16  ;;  %v2123_v5 = vshrl.u32 %v2119_v4, 16 }
 0x118   : > { %v1842_v14 = vor.u32 %v1841_v9, %v1840_v23  ;;  %v1845_v17 = vshll.u32 %v1844_v22, 23  ;;  %v2111_v50 = vadd.s32 %v2109_v16, %v2107_v42  ;;  %vm2130_vm15 = vc.u32 %v2128_v44, %v2124_v7 }
 0x119   : > { %v2081_v15 = vsel %vm2077_vm5, %v5081_v48, %v2080_v11  ;;  %v2131_v21 = vsel %vm2130_vm15, 1, %v4306_v46  ;;  %v2360_v25 = vand.u32 2139095040, %v5164_v18  ;;  %v1856_v20 = vsel %vm5148_vm12, 0, %v1854_v24 }
 0x11a   : > { %v1846_v6 = vor.u32 4788187, %v1845_v17  ;;  %v1849_v57 = vcvt.s32.f32 %v1842_v14  ;;  %v2112_v40 = vadd.s32 %v2111_v50, %v2101_v61  ;;  %v2125_v43 = vshrl.u32 %v2120_v55, 16 }
 0x11b   : > { %v2133_v41 = vadd.s32 %v2131_v21, %v2129_v33  ;;  %v2132_v19 = vadd.s32 %v2128_v44, %v2124_v7  ;;  %v2361_v12 = vshrl.u32 %v2360_v25, 23  ;;  %v2082_v4 = vsel %vm2076_vm6, %v2079_v54, %v2081_v15 }
 0x11c   : > { %v1847_v31 = vand.u32 2147483647, %v1846_v6  ;;  %v2113_v2 = vadd.s32 %v2112_v40, %v2103_v35  ;;  %v2357_v48 = vand.u32 2147483647, %v5164_v18  ;;  %v1873_v39 = vadd.s32 3, %v1856_v20 }
 0x11d   : > { %v2134_v60 = vadd.s32 %v2133_v41, %v2123_v5  ;;  %v4195_v49 = vadd.s32 4294967169, %v2361_v12  ;;  %v2677_v58 = vand.u32 2139095040, %v5111_v10  ;;  %v2136_v55 = vmul.u32 %v5124_v52, %v2082_v4 }
 0x11e   : > { %v1850_v27 = vmul.f32 %v1849_v57, %v1847_v31  ;;  %vm2138_vm0 = vc.u32 %v2113_v2, %v2132_v19  ;;  %v2364_v23 = vand.u32 8388607, %v2357_v48  ;;  %v5186_v0 = vand.u32 3, %v1873_v39 }
 0x11f   : > { %v2135_v62 = vadd.s32 %v2134_v60, %v2125_v43  ;;  %v2367_v47 = vadd.s32 1, %v4195_v49  ;;  %v5188_v54 = vand.u32 3, %v1856_v20  ;;  %v2674_v52 = vand.u32 2147483647, %v5111_v10 }
 0x120   : > { %v1851_v38 = vxor.u32 2147483648, %v1850_v27  ;;  %v2678_v22 = vshrl.u32 %v2677_v58, 23  ;;  %v2365_v59 = vor.u32 8388608, %v2364_v23  ;;  %vm1879_vm2 = vcmp.eq.s32.totalorder %v5186_v0, 2 }
 0x121   : > { %v2139_v63 = vadd.s32 1, %v2135_v62  ;;  %vm2368_vm1 = vcmp.gt.s32.totalorder %v2367_v47, 0  ;;  %vm2035_vm5 = vcmp.eq.s32.totalorder %v5188_v54, 2  ;;  %v5195_v61 = vand.u32 8388607, %v2674_v52 }
 0x122   : > { %v1852_v1 = vsel %vm1731_vm8, %v1851_v38, %v1850_v27  ;;  %v2369_v9 = vsel %vm2368_vm1, %v2367_v47, 0  ;;  %v4205_v44 = vadd.s32 4294967169, %v2678_v22  ;;  %v5197_v57 = vadd.s32 %v2132_v19, %v2113_v2 }
 0x123   : > { %v1855_v13 = vsel %vm5148_vm12, %v4891_v51, %v1852_v1  ;;  %v2140_v53 = vsel %vm2138_vm0, %v2139_v63, %v2135_v62  ;;  %v2371_v8 = vand.u32 31, %v2369_v9  ;;  %vm1876_vm3 = vcmp.eq.s32.totalorder %v5186_v0, 0 }
 0x124   : > { %v1857_v56 = vmul.f32 %v1855_v13, %v1855_v13  ;;  %v2141_v24 = vadd.s32 %v2140_v53, %v2136_v55  ;;  %vm2032_vm4 = vcmp.eq.s32.totalorder %v5188_v54, 0  ;;  %v5206_v5 = vshll.u32 %v2365_v59, 8 }
 0x125   : > { %v2372_v17 = vsub.s32 32, %v2371_v8  ;;  %v2374_v33 = vshll.u32 %v4300_v28, %v2371_v8  ;;  %v2383_v50 = vshll.u32 %v4303_v34, %v2371_v8  ;;  %vm1875_vm6 = vcmp.lt.s32.totalorder %v5186_v0, 2 }
 0x126   : > { %v1858_v11 = vmul.f32 -0.001358992, %v1857_v56  ;;  %v1865_v29 = vmul.f32 -0.00019511016, %v1857_v56  ;;  %v2142_v14 = vadd.s32 536870912, %v2141_v24  ;;  %vm2031_vm7 = vcmp.lt.s32.totalorder %v5188_v54, 2 }
 0x127   : > { %v2375_v35 = vshrl.u32 %v4301_v30, %v2372_v17  ;;  %v5211_v25 = vshrl.u32 %v2369_v9, 5  ;;  %vm1872_vm9 = vweird.f32 %v4891_v51  ;;  %v2377_v20 = vshll.u32 %v4301_v30, %v2371_v8 }
 0x128   : > { %v1859_v42 = vadd.f32 0.041655596, %v1858_v11  ;;  %v1866_v7 = vadd.f32 0.008332121, %v1865_v29  ;;  %v5199_v16 = vshrl.u32 %v2142_v14, 30  ;;  %v2378_v40 = vshrl.u32 %v4302_v32, %v2372_v17 }
 0x129   : > { %v2380_v43 = vshll.u32 %v4302_v32, %v2371_v8  ;;  %v2384_v41 = vshrl.u32 %v4304_v36, %v2372_v17  ;;  %v2381_v4 = vshrl.u32 %v4303_v34, %v2372_v17  ;;  %v2376_v2 = vor.u32 %v2375_v35, %v2374_v33 }
 0x12a   : > { %v1860_v26 = vmul.f32 %v1859_v42, %v1857_v56  ;;  %v1867_v6 = vmul.f32 %v1866_v7, %v1857_v56  ;;  %v2144_v21 = vshll.u32 %v5199_v16, 30  ;;  %v5222_v38 = vand.u32 65535, %v5206_v5 }
 0x12b   : > { %v2385_v60 = vor.u32 %v2384_v41, %v2383_v50  ;;  %v2684_v39 = vadd.s32 1, %v4205_v44  ;;  %v2379_v1 = vor.u32 %v2378_v40, %v2377_v20  ;;  %v2386_v55 = vshll.u32 %v4304_v36, %v2371_v8 }
 0x12c   : > { %v1861_v31 = vadd.f32 -0.4999988, %v1860_v26  ;;  %v1868_v15 = vadd.f32 -0.16666654, %v1867_v6  ;;  %v5218_v12 = vsub.s32 %v2141_v24, %v2144_v21  ;;  %v2387_v47 = vshrl.u32 %v4305_v45, %v2372_v17 }
 0x12d   : > { %vm2392_vm11 = vcmp.lt.s32.totalorder %v5211_v25, 4  ;;  %vm2045_vm12 = vcmp.lt.s32.totalorder %v4906_v37, 0  ;;  %v2382_v53 = vor.u32 %v2381_v4, %v2380_v43  ;;  %vm2389_vm8 = vcmp.lt.s32.totalorder %v5211_v25, 1 }
 0x12e   : > { %v1862_v27 = vmul.f32 %v1861_v31, %v1857_v56  ;;  %v1869_v19 = vmul.f32 %v1868_v15, %v1857_v56  ;;  %vm2146_vm10 = vcmp.lt.s32.totalorder %v5218_v12, 0  ;;  %v2147_v58 = vsub.s32 0, %v5218_v12 }
 0x12f   : > { %vm2391_vm13 = vcmp.lt.s32.totalorder %v5211_v25, 3  ;;  %v2398_v22 = vsel %vm2392_vm11, %v2385_v60, 920167782  ;;  %vm2685_vm14 = vcmp.gt.s32.totalorder %v2684_v39, 0  ;;  %vm5241_vm15 = vcmp.le.f32.partialorder %v2043_v3, 0.7853982 }
 0x130   : > { %v1863_v49 = vadd.f32 1.0, %v1862_v27  ;;  %v1870_v62 = vadd.f32 1.0, %v1869_v19  ;;  %v2148_v56 = vsel %vm2146_vm10, %v2147_v58, %v5218_v12  ;;  %v2373_v8 = vshrl.u32 %v4300_v28, %v2372_v17 }
 0x131   : > { %v2149_v9 = vclz %v2148_v56  ;;  %v2388_v42 = vor.u32 %v2387_v47, %v2386_v55  ;;  %vm2390_vm0 = vcmp.lt.s32.totalorder %v5211_v25, 2  ;;  %v2397_v3 = vsel %vm2389_vm8, %v2376_v2, %v2379_v1 }
 0x132   : > { %v1871_v63 = vmul.f32 %v1870_v62, %v1855_v13  ;;  %v1880_v23 = vxor.u32 2147483648, %v1863_v49  ;;  %v2399_v44 = vsel %vm2391_vm13, %v2382_v53, %v2398_v22  ;;  %v2167_v6 = vsub.s32 4, %v5199_v16 }
 0x133   : > { %v4188_v59 = vadd.s32 4294967294, %v2149_v9  ;;  %v2394_v31 = vsel %vm2392_vm11, %v2382_v53, 2102212464  ;;  %v2400_v54 = vsel %vm2390_vm0, %v2397_v3, %v2399_v44  ;;  %v2401_v20 = vsel %vm2389_vm8, %v2379_v1, %v2382_v53 }
 0x134   : > { %v1877_v11 = vxor.u32 2147483648, %v1871_v63  ;;  %v1881_v29 = vsel %vm1879_vm2, %v1880_v23, %v1871_v63  ;;  %v2037_v13 = vsel %vm2035_vm5, %v1880_v23, %v1871_v63  ;;  %v2402_v51 = vsel %vm2392_vm11, %v2388_v42, 1326507024 }
 0x135   : > { %vm4189_vm1 = vcmp.lt.s32.totalorder %v4188_v59, 0  ;;  %v2407_v40 = vshrl.u32 %v5206_v5, 16  ;;  %v2686_v43 = vsel %vm2685_vm14, %v2684_v39, 0  ;;  %v2168_v19 = vsel %vm2045_vm12, %v2167_v6, %v5199_v16 }
 0x136   : > { %v1878_v7 = vsel %vm1876_vm3, %v1863_v49, %v1877_v11  ;;  %v2034_v14 = vsel %vm2032_vm4, %v1863_v49, %v1877_v11  ;;  %v2152_v50 = vsel %vm4189_vm1, 0, %v4188_v59  ;;  %v2395_v4 = vsel %vm2391_vm13, %v2379_v1, %v2394_v31 }
 0x137   : > { %v1882_v26 = vsel %vm1875_vm6, %v1878_v7, %v1881_v29  ;;  %v2038_v17 = vsel %vm2031_vm7, %v2034_v14, %v2037_v13  ;;  %v2153_v15 = vsub.s32 32, %v2152_v50  ;;  %v2154_v0 = vshll.u32 %v5218_v12, %v2152_v50 }
 0x138   : > { %v1883_v33 = vsel %vm1872_vm9, nan, %v1882_v26  ;;  %v2039_v35 = vsel %vm1872_vm9, nan, %v2038_v17  ;;  %v2157_v21 = vsub.s32 4294967266, %v2152_v50  ;;  %v2393_v12 = vsel %vm2389_vm8, %v2373_v8, %v2376_v2 }
 0x139   : > { %4182 = vst [vmem:[%s4365_s26 + $0x60] sm:$0xff] %v1883_v33  ;;  %v2155_v41 = vshrl.u32 %v5197_v57, %v2153_v15  ;;  %v2403_v49 = vsel %vm2391_vm13, %v2385_v60, %v2402_v51  ;;  %v2430_v62 = vand.u32 65535, %v2400_v54  ;;  %v2431_v58 = vshrl.u32 %v2400_v54, 16 }
 0x13a   : > { %4186 = vst [vmem:[%s4365_s26 + $0x68] sm:$0xff] %v2039_v35  ;;  %v2158_v27 = vadd.s32 127, %v2157_v21  ;;  %v2404_v57 = vsel %vm2390_vm0, %v2401_v20, %v2403_v49  ;;  %v2682_v47 = vor.u32 8388608, %v5195_v61  ;;  %v5292_v16 = vsel %vm5241_vm15, 0, %v2168_v19 }
 0x13b   : > { %v2156_v55 = vor.u32 %v2155_v41, %v2154_v0  ;;  %v2408_v2 = vand.u32 65535, %v2404_v57  ;;  %v2409_v63 = vshrl.u32 %v2404_v57, 16  ;;  %v2433_v1 = vmul.u32 %v2431_v58, %v5222_v38 }
 0x13c   : > { %v2159_v39 = vshll.u32 %v2158_v27, 23  ;;  %v5297_v60 = vsel %vm2390_vm0, %v2393_v12, %v2395_v4  ;;  %v2688_v53 = vand.u32 31, %v2686_v43  ;;  %v2432_v29 = vmul.u32 %v2430_v62, %v5222_v38 }
 0x13d   : > { %v2163_v56 = vcvt.s32.f32 %v2156_v55  ;;  %v2410_v9 = vmul.u32 %v2408_v2, %v5222_v38  ;;  %v2411_v22 = vmul.u32 %v2409_v63, %v5222_v38  ;;  %v2412_v11 = vmul.u32 %v2408_v2, %v2407_v40 }
 0x13e   : > { %v2160_v23 = vor.u32 4788187, %v2159_v39  ;;  %v2187_v59 = vadd.s32 3, %v5292_v16  ;;  %v2434_v8 = vmul.u32 %v2430_v62, %v2407_v40  ;;  %v2436_v42 = vshll.u32 %v2433_v1, 16 }
 0x13f   : > { %v2413_v7 = vmul.u32 %v2409_v63, %v2407_v40  ;;  %v2414_v14 = vshll.u32 %v2411_v22, 16  ;;  %v2416_v3 = vshll.u32 %v2412_v11, 16  ;;  %v2435_v44 = vmul.u32 %v2431_v58, %v2407_v40 }
 0x140   : > { %v2161_v13 = vand.u32 2147483647, %v2160_v23  ;;  %v2415_v26 = vshrl.u32 %v2411_v22, 16  ;;  %v2417_v17 = vshrl.u32 %v2412_v11, 16  ;;  %v2438_v6 = vshll.u32 %v2434_v8, 16 }
 0x141   : > { %vm2418_vm2 = vc.u32 %v2410_v9, %v2414_v14  ;;  %v2420_v33 = vadd.s32 %v2414_v14, %v2410_v9  ;;  %vm2440_vm5 = vc.u32 %v2432_v29, %v2436_v42  ;;  %v2442_v35 = vadd.s32 %v2436_v42, %v2432_v29 }
 0x142   : > { %v2164_v25 = vmul.f32 %v2163_v56, %v2161_v13  ;;  %v2419_v38 = vsel %vm2418_vm2, 1, %v4306_v46  ;;  %v2437_v31 = vshrl.u32 %v2433_v1, 16  ;;  %v2441_v15 = vsel %vm2440_vm5, 1, %v4306_v46 }
 0x143   : > { %v2421_v0 = vadd.s32 %v2419_v38, %v2413_v7  ;;  %vm2422_vm3 = vc.u32 %v2420_v33, %v2416_v3  ;;  %v2443_v21 = vadd.s32 %v2441_v15, %v2435_v44  ;;  %vm2444_vm4 = vc.u32 %v2442_v35, %v2438_v6 }
 0x144   : > { %v2165_v50 = vxor.u32 2147483648, %v2164_v25  ;;  %v2423_v20 = vsel %vm2422_vm3, 1, %v4306_v46  ;;  %v2445_v51 = vsel %vm2444_vm4, 1, %v4306_v46  ;;  %v5309_v40 = vsub.s32 32, %v2688_v53 }
 0x145   : > { %v2425_v27 = vadd.s32 %v2423_v20, %v2421_v0  ;;  %v2439_v19 = vshrl.u32 %v2434_v8, 16  ;;  %v2447_v12 = vadd.s32 %v2445_v51, %v2443_v21  ;;  %v5314_v49 = vand.u32 3, %v2187_v59 }
 0x146   : > { %v2166_v54 = vsel %vm2045_vm12, %v2165_v50, %v2164_v25  ;;  %v2450_v62 = vmul.u32 %v5206_v5, %v5297_v60  ;;  %v5318_v58 = vshrl.u32 %v2686_v43, 5  ;;  %v5320_v39 = vadd.s32 %v2442_v35, %v2438_v6 }
 0x147   : > { %v2169_v41 = vsel %vm5241_vm15, %v4906_v37, %v2166_v54  ;;  %v2426_v55 = vadd.s32 %v2425_v27, %v2415_v26  ;;  %v2448_v57 = vadd.s32 %v2447_v12, %v2437_v31  ;;  %v2694_v2 = vshll.u32 %v4301_v30, %v2688_v53 }
 0x148   : > { %v2171_v4 = vmul.f32 %v2169_v41, %v2169_v41  ;;  %v2695_v1 = vshrl.u32 %v4302_v32, %v5309_v40  ;;  %v2697_v23 = vshll.u32 %v4302_v32, %v2688_v53  ;;  %v2698_v5 = vshrl.u32 %v4303_v34, %v5309_v40 }
 0x149   : > { %v5326_v56 = vadd.s32 %v2426_v55, %v2417_v17  ;;  %v2449_v9 = vadd.s32 %v2448_v57, %v2439_v19  ;;  %v2700_v43 = vshll.u32 %v4303_v34, %v2688_v53  ;;  %v2691_v11 = vshll.u32 %v4300_v28, %v2688_v53 }
 0x14a   : > { %v2172_v63 = vmul.f32 -0.001358992, %v2171_v4  ;;  %v2179_v24 = vmul.f32 -0.00019511016, %v2171_v4  ;;  %v2701_v29 = vshrl.u32 %v4304_v36, %v5309_v40  ;;  %v2692_v59 = vshrl.u32 %v4301_v30, %v5309_v40 }
 0x14b   : > { %vm2452_vm6 = vc.u32 %v5326_v56, %v5320_v39  ;;  %v2453_v13 = vadd.s32 1, %v2449_v9  ;;  %v2703_v8 = vshll.u32 %v4304_v36, %v2688_v53  ;;  %v2344_v14 = vand.u32 3, %v5292_v16 }
 0x14c   : > { %v2173_v60 = vadd.f32 0.041655596, %v2172_v63  ;;  %v2180_v22 = vadd.f32 0.008332121, %v2179_v24  ;;  %v2704_v3 = vshrl.u32 %v4305_v45, %v5309_v40  ;;  %v5342_v25 = vor.u32 %v2695_v1, %v2694_v2 }
 0x14d   : > { %v2454_v44 = vsel %vm2452_vm6, %v2453_v13, %v2449_v9  ;;  %v5344_v26 = vor.u32 %v2698_v5, %v2697_v23  ;;  %v2702_v17 = vor.u32 %v2701_v29, %v2700_v43  ;;  %vm2189_vm7 = vcmp.lt.s32.totalorder %v5314_v49, 2 }
 0x14e   : > { %v2174_v42 = vmul.f32 %v2173_v60, %v2171_v4  ;;  %v2181_v7 = vmul.f32 %v2180_v22, %v2171_v4  ;;  %v2455_v35 = vadd.s32 %v2454_v44, %v2450_v62  ;;  %v2705_v50 = vor.u32 %v2704_v3, %v2703_v8 }
 0x14f   : > { %vm2186_vm9 = vweird.f32 %v4906_v37  ;;  %vm2190_vm10 = vcmp.eq.s32.totalorder %v5314_v49, 0  ;;  %v5349_v16 = vor.u32 %v2692_v59, %v2691_v11  ;;  %vm2706_vm11 = vcmp.lt.s32.totalorder %v5318_v58, 1 }
 0x150   : > { %v2175_v6 = vadd.f32 -0.4999988, %v2174_v42  ;;  %v2182_v33 = vadd.f32 -0.16666654, %v2181_v7  ;;  %vm2709_vm12 = vcmp.lt.s32.totalorder %v5318_v58, 4  ;;  %v2456_v31 = vadd.s32 536870912, %v2455_v35 }
 0x151   : > { %vm2708_vm8 = vcmp.lt.s32.totalorder %v5318_v58, 3  ;;  %vm2193_vm13 = vcmp.eq.s32.totalorder %v5314_v49, 2  ;;  %vm2707_vm14 = vcmp.lt.s32.totalorder %v5318_v58, 2  ;;  %v2715_v15 = vsel %vm2709_vm12, %v2702_v17, 920167782 }
 0x152   : > { %v2176_v53 = vmul.f32 %v2175_v6, %v2171_v4  ;;  %v2183_v38 = vmul.f32 %v2182_v33, %v2171_v4  ;;  %v2719_v0 = vsel %vm2709_vm12, %v2705_v50, 1326507024  ;;  %v5360_v20 = vshrl.u32 %v2456_v31, 30 }
 0x153   : > { %v2718_v51 = vsel %vm2706_vm11, %v5342_v25, %v5344_v26  ;;  %vm2349_vm15 = vcmp.eq.s32.totalorder %v2344_v14, 2  ;;  %v2714_v27 = vsel %vm2706_vm11, %v5349_v16, %v5342_v25  ;;  %v2720_v19 = vsel %vm2708_vm8, %v2702_v17, %v2719_v0 }
 0x154   : > { %v2177_v21 = vadd.f32 1.0, %v2176_v53  ;;  %v2184_v54 = vadd.f32 1.0, %v2183_v38  ;;  %v5374_v12 = vshll.u32 %v2682_v47, 8  ;;  %v2458_v55 = vshll.u32 %v5360_v20, 30 }
 0x155   : > { %v2716_v57 = vsel %vm2708_vm8, %v5344_v26, %v2715_v15  ;;  %vm2345_vm0 = vcmp.lt.s32.totalorder %v2344_v14, 2  ;;  %vm2346_vm1 = vcmp.eq.s32.totalorder %v2344_v14, 0  ;;  %v2721_v2 = vsel %vm2707_vm14, %v2718_v51, %v2720_v19 }
 0x156   : > { %v2185_v4 = vmul.f32 %v2184_v54, %v2169_v41  ;;  %v2194_v62 = vxor.u32 2147483648, %v2177_v21  ;;  %v2723_v63 = vand.u32 65535, %v5374_v12  ;;  %v2459_v41 = vsub.s32 %v2455_v35, %v2458_v55 }
 0x157   : > { %v2717_v1 = vsel %vm2707_vm14, %v2714_v27, %v2716_v57  ;;  %v2724_v23 = vshrl.u32 %v5374_v12, 16  ;;  %v2725_v9 = vand.u32 65535, %v2721_v2  ;;  %v2726_v5 = vshrl.u32 %v2721_v2, 16 }
 0x158   : > { %v2191_v24 = vxor.u32 2147483648, %v2185_v4  ;;  %v2195_v61 = vsel %vm2193_vm13, %v2194_v62, %v2185_v4  ;;  %v2351_v47 = vsel %vm2349_vm15, %v2194_v62, %v2185_v4  ;;  %vm2460_vm2 = vcmp.lt.s32.totalorder %v2459_v41, 0 }
 0x159   : > { %v2461_v22 = vsub.s32 0, %v2459_v41  ;;  %v2727_v13 = vmul.u32 %v2725_v9, %v2723_v63  ;;  %v2728_v7 = vmul.u32 %v2726_v5, %v2723_v63  ;;  %v2729_v44 = vmul.u32 %v2725_v9, %v2724_v23 }
 0x15a   : > { %v2192_v43 = vsel %vm2190_vm10, %v2177_v21, %v2191_v24  ;;  %v2348_v60 = vsel %vm2346_vm1, %v2177_v21, %v2191_v24  ;;  %v2747_v17 = vand.u32 65535, %v2717_v1  ;;  %v2748_v6 = vshrl.u32 %v2717_v1, 16 }
 0x15b   : > { %v2196_v11 = vsel %vm2189_vm7, %v2192_v43, %v2195_v61  ;;  %v2352_v29 = vsel %vm2345_vm0, %v2348_v60, %v2351_v47  ;;  %v2462_v42 = vsel %vm2460_vm2, %v2461_v22, %v2459_v41  ;;  %v2730_v33 = vmul.u32 %v2726_v5, %v2724_v23 }
 0x15c   : > { %v2197_v59 = vsel %vm2186_vm9, nan, %v2196_v11  ;;  %v2353_v8 = vsel %vm2186_vm9, nan, %v2352_v29  ;;  %v2463_v3 = vclz %v2462_v42  ;;  %v2731_v49 = vshll.u32 %v2728_v7, 16 }
 0x15d   : > { %4190 = vst [vmem:[%s4365_s26 + $0x70] sm:$0xff] %v2197_v59  ;;  %v2733_v14 = vshll.u32 %v2729_v44, 16  ;;  %v2750_v50 = vmul.u32 %v2748_v6, %v2723_v63  ;;  %v2451_v38 = vadd.s32 %v5320_v39, %v5326_v56  ;;  %v2749_v31 = vmul.u32 %v2747_v17, %v2723_v63 }
 0x15e   : > { %4194 = vst [vmem:[%s4365_s26 + $0x78] sm:$0xff] %v2353_v8  ;;  %v4196_v35 = vadd.s32 4294967294, %v2463_v3  ;;  %vm2735_vm5 = vc.u32 %v2727_v13, %v2731_v49  ;;  %v2737_v53 = vadd.s32 %v2731_v49, %v2727_v13  ;;  %v2751_v21 = vmul.u32 %v2747_v17, %v2724_v23 }
 0x15f   : > { %v2736_v37 = vsel %vm2735_vm5, 1, %v4306_v46  ;;  %v2753_v54 = vshll.u32 %v2750_v50, 16  ;;  %vm2359_vm6 = vcmp.lt.s32.totalorder %v5164_v18, 0  ;;  %v2690_v4 = vshrl.u32 %v4300_v28, %v5309_v40 }
 0x160   : > { %vm4197_vm3 = vcmp.lt.s32.totalorder %v4196_v35, 0  ;;  %v2738_v0 = vadd.s32 %v2736_v37, %v2730_v33  ;;  %vm2739_vm4 = vc.u32 %v2737_v53, %v2733_v14  ;;  %v2732_v39 = vshrl.u32 %v2728_v7, 16 }
 0x161   : > { %v2466_v15 = vsel %vm4197_vm3, 0, %v4196_v35  ;;  %v2752_v56 = vmul.u32 %v2748_v6, %v2724_v23  ;;  %v2481_v57 = vsub.s32 4, %v5360_v20  ;;  %v2711_v2 = vsel %vm2709_vm12, %v5344_v26, 2102212464 }
 0x162   : > { %v2467_v51 = vsub.s32 32, %v2466_v15  ;;  %v2468_v27 = vshll.u32 %v2459_v41, %v2466_v15  ;;  %v2471_v19 = vsub.s32 4294967266, %v2466_v15  ;;  %v2740_v63 = vsel %vm2739_vm4, 1, %v4306_v46 }
 0x163   : > { %v2755_v24 = vshll.u32 %v2751_v21, 16  ;;  %v2742_v41 = vadd.s32 %v2740_v63, %v2738_v0  ;;  %vm2757_vm7 = vc.u32 %v2749_v31, %v2753_v54  ;;  %v2734_v1 = vshrl.u32 %v2729_v44, 16 }
 0x164   : > { %v2469_v62 = vshrl.u32 %v2451_v38, %v2467_v51  ;;  %v2472_v55 = vadd.s32 127, %v2471_v19  ;;  %v2758_v40 = vsel %vm2757_vm7, 1, %v4306_v46  ;;  %v2759_v9 = vadd.s32 %v2753_v54, %v2749_v31 }
 0x165   : > { %v5412_v5 = vmul.f32 2.0, %v5111_v10  ;;  %v2743_v60 = vadd.s32 %v2742_v41, %v2732_v39  ;;  %v2760_v22 = vadd.s32 %v2758_v40, %v2752_v56  ;;  %v2482_v26 = vsel %vm2359_vm6, %v2481_v57, %v5360_v20 }
 0x166   : > { %v2470_v61 = vor.u32 %v2469_v62, %v2468_v27  ;;  %v2473_v47 = vshll.u32 %v2472_v55, 23  ;;  %v2754_v11 = vshrl.u32 %v2750_v50, 16  ;;  %vm2761_vm9 = vc.u32 %v2759_v9, %v2755_v24 }
 0x167   : > { %v2991_v29 = vand.u32 2139095040, %v5412_v5  ;;  %v2710_v59 = vsel %vm2706_vm11, %v2690_v4, %v5349_v16  ;;  %v2712_v8 = vsel %vm2708_vm8, %v5342_v25, %v2711_v2  ;;  %v2762_v42 = vsel %vm2761_vm9, 1, %v4306_v46 }
 0x168   : > { %v2474_v23 = vor.u32 4788187, %v2473_v47  ;;  %v2477_v43 = vcvt.s32.f32 %v2470_v61  ;;  %vm5427_vm10 = vcmp.le.f32.partialorder %v2357_v48, 0.7853982  ;;  %v2756_v20 = vshrl.u32 %v2751_v21, 16 }
 0x169   : > { %v2764_v3 = vadd.s32 %v2762_v42, %v2760_v22  ;;  %v2992_v44 = vshrl.u32 %v2991_v29, 23  ;;  %v2484_v6 = vsel %vm5427_vm10, 0, %v2482_v26  ;;  %v2744_v16 = vadd.s32 %v2743_v60, %v2734_v1 }
 0x16a   : > { %v2475_v13 = vand.u32 2147483647, %v2474_v23  ;;  %v2763_v33 = vadd.s32 %v2759_v9, %v2755_v24  ;;  %v2713_v25 = vsel %vm2707_vm14, %v2710_v59, %v2712_v8  ;;  %v2501_v50 = vadd.s32 3, %v2484_v6 }
 0x16b   : > { %v2765_v49 = vadd.s32 %v2764_v3, %v2754_v11  ;;  %v4213_v35 = vadd.s32 4294967169, %v2992_v44  ;;  %v2767_v37 = vmul.u32 %v5374_v12, %v2713_v25  ;;  %v2988_v58 = vand.u32 2147483647, %v5412_v5 }
 0x16c   : > { %v2478_v17 = vmul.f32 %v2477_v43, %v2475_v13  ;;  %vm2769_vm11 = vc.u32 %v2744_v16, %v2763_v33  ;;  %v5446_v54 = vand.u32 3, %v2501_v50  ;;  %v5448_v51 = vand.u32 3, %v2484_v6 }
 0x16d   : > { %v2766_v48 = vadd.s32 %v2765_v49, %v2756_v20  ;;  %v2998_v53 = vadd.s32 1, %v4213_v35  ;;  %v5450_v55 = vadd.s32 %v2763_v33, %v2744_v16  ;;  %v2995_v39 = vand.u32 8388607, %v2988_v58 }
 0x16e   : > { %v2479_v14 = vxor.u32 2147483648, %v2478_v17  ;;  %v5457_v57 = vmul.f32 4.0, %v5111_v10  ;;  %vm2507_vm8 = vcmp.eq.s32.totalorder %v5446_v54, 2  ;;  %vm2663_vm13 = vcmp.eq.s32.totalorder %v5448_v51, 2 }
 0x16f   : > { %v2770_v15 = vadd.s32 1, %v2766_v48  ;;  %vm2999_vm12 = vcmp.gt.s32.totalorder %v2998_v53, 0  ;;  %vm2504_vm14 = vcmp.eq.s32.totalorder %v5446_v54, 0  ;;  %vm2660_vm15 = vcmp.eq.s32.totalorder %v5448_v51, 0 }
 0x170   : > { %v2480_v38 = vsel %vm2359_vm6, %v2479_v14, %v2478_v17  ;;  %v3000_v21 = vsel %vm2999_vm12, %v2998_v53, 0  ;;  %v2996_v22 = vor.u32 8388608, %v2995_v39  ;;  %vm2503_vm0 = vcmp.lt.s32.totalorder %v5446_v54, 2 }
 0x171   : > { %v5441_v31 = vsel %vm5427_vm10, %v5164_v18, %v2480_v38  ;;  %v2771_v27 = vsel %vm2769_vm11, %v2770_v15, %v2766_v48  ;;  %v3002_v12 = vand.u32 31, %v3000_v21  ;;  %v5474_v26 = vshrl.u32 %v3000_v21, 5 }
 0x172   : > { %v2485_v0 = vmul.f32 %v5441_v31, %v5441_v31  ;;  %v2772_v62 = vadd.s32 %v2771_v27, %v2767_v37  ;;  %vm2659_vm1 = vcmp.lt.s32.totalorder %v5448_v51, 2  ;;  %v3305_v42 = vand.u32 2139095040, %v5457_v57 }
 0x173   : > { %v5454_v56 = vsub.s32 32, %v3002_v12  ;;  %v3005_v61 = vshll.u32 %v4300_v28, %v3002_v12  ;;  %v3008_v41 = vshll.u32 %v4301_v30, %v3002_v12  ;;  %v3014_v40 = vshll.u32 %v4303_v34, %v3002_v12 }
 0x174   : > { %v2486_v19 = vmul.f32 -0.001358992, %v2485_v0  ;;  %v2493_v4 = vmul.f32 -0.00019511016, %v2485_v0  ;;  %v2773_v24 = vadd.s32 536870912, %v2772_v62  ;;  %v3011_v11 = vshll.u32 %v4302_v32, %v3002_v12 }
 0x175   : > { %v3006_v47 = vshrl.u32 %v4301_v30, %v5454_v56  ;;  %v3009_v1 = vshrl.u32 %v4302_v32, %v5454_v56  ;;  %v3015_v60 = vshrl.u32 %v4304_v36, %v5454_v56  ;;  %v3012_v29 = vshrl.u32 %v4303_v34, %v5454_v56 }
 0x176   : > { %v2487_v2 = vadd.f32 0.041655596, %v2486_v19  ;;  %v2494_v63 = vadd.f32 0.008332121, %v2493_v4  ;;  %v5468_v43 = vshrl.u32 %v2773_v24, 30  ;;  %vm2500_vm2 = vweird.f32 %v5164_v18 }
 0x177   : > { %v5484_v7 = vor.u32 %v3006_v47, %v3005_v61  ;;  %v3016_v20 = vor.u32 %v3015_v60, %v3014_v40  ;;  %v3017_v3 = vshll.u32 %v4304_v36, %v3002_v12  ;;  %v3018_v44 = vshrl.u32 %v4305_v45, %v5454_v56 }
 0x178   : > { %v2488_v9 = vmul.f32 %v2487_v2, %v2485_v0  ;;  %v2495_v23 = vmul.f32 %v2494_v63, %v2485_v0  ;;  %v2775_v8 = vshll.u32 %v5468_v43, 30  ;;  %v5491_v33 = vor.u32 %v3009_v1, %v3008_v41 }
 0x179   : > { %vm2676_vm5 = vcmp.lt.s32.totalorder %v5111_v10, 0  ;;  %v3013_v25 = vor.u32 %v3012_v29, %v3011_v11  ;;  %vm3020_vm3 = vcmp.lt.s32.totalorder %v5474_v26, 1  ;;  %vm3022_vm4 = vcmp.lt.s32.totalorder %v5474_v26, 3 }
 0x17a   : > { %v2489_v13 = vadd.f32 -0.4999988, %v2488_v9  ;;  %v2496_v59 = vadd.f32 -0.16666654, %v2495_v23  ;;  %v5489_v16 = vsub.s32 %v2772_v62, %v2775_v8  ;;  %vm3023_vm6 = vcmp.lt.s32.totalorder %v5474_v26, 4 }
 0x17b   : > { %v3019_v50 = vor.u32 %v3018_v44, %v3017_v3  ;;  %v3029_v48 = vsel %vm3023_vm6, %v3016_v20, 920167782  ;;  %v5501_v53 = vshll.u32 %v2996_v22, 8  ;;  %v3302_v38 = vand.u32 2147483647, %v5457_v57 }
 0x17c   : > { %v2490_v17 = vmul.f32 %v2489_v13, %v2485_v0  ;;  %v2497_v6 = vmul.f32 %v2496_v59, %v2485_v0  ;;  %vm2777_vm7 = vcmp.lt.s32.totalorder %v5489_v16, 0  ;;  %v2778_v14 = vsub.s32 0, %v5489_v16 }
 0x17d   : > { %v3306_v21 = vshrl.u32 %v3305_v42, 23  ;;  %vm5508_vm9 = vcmp.le.f32.partialorder %v2674_v52, 0.7853982  ;;  %vm3021_vm10 = vcmp.lt.s32.totalorder %v5474_v26, 2  ;;  %v3028_v19 = vsel %vm3020_vm3, %v5484_v7, %v5491_v33 }
 0x17e   : > { %v2491_v49 = vadd.f32 1.0, %v2490_v17  ;;  %v2498_v35 = vadd.f32 1.0, %v2497_v6  ;;  %v2779_v0 = vsel %vm2777_vm7, %v2778_v14, %v5489_v16  ;;  %v2798_v39 = vsub.s32 4, %v5468_v43 }
 0x17f   : > { %v2780_v12 = vclz %v2779_v0  ;;  %v3004_v63 = vshrl.u32 %v4300_v28, %v5454_v56  ;;  %v3033_v24 = vsel %vm3023_vm6, %v3019_v50, 1326507024  ;;  %v3037_v61 = vand.u32 65535, %v5501_v53 }
 0x180   : > { %v2499_v37 = vmul.f32 %v2498_v35, %v5441_v31  ;;  %v2508_v15 = vxor.u32 2147483648, %v2491_v49  ;;  %v3030_v31 = vsel %vm3022_vm4, %v3013_v25, %v3029_v48  ;;  %v3032_v40 = vsel %vm3020_vm3, %v5491_v33, %v3013_v25 }
 0x181   : > { %v4206_v2 = vadd.s32 4294967294, %v2780_v12  ;;  %v3031_v1 = vsel %vm3021_vm10, %v3028_v19, %v3030_v31  ;;  %v3034_v23 = vsel %vm3022_vm4, %v3016_v20, %v3033_v24  ;;  %v2799_v29 = vsel %vm2676_vm5, %v2798_v39, %v5468_v43 }
 0x182   : > { %v2505_v4 = vxor.u32 2147483648, %v2499_v37  ;;  %v2509_v62 = vsel %vm2507_vm8, %v2508_v15, %v2499_v37  ;;  %v2665_v52 = vsel %vm2663_vm13, %v2508_v15, %v2499_v37  ;;  %v3062_v59 = vshrl.u32 %v3031_v1, 16 }
 0x183   : > { %vm4207_vm11 = vcmp.lt.s32.totalorder %v4206_v2, 0  ;;  %v3025_v8 = vsel %vm3023_vm6, %v3013_v25, 2102212464  ;;  %v3035_v42 = vsel %vm3021_vm10, %v3032_v40, %v3034_v23  ;;  %v3038_v18 = vshrl.u32 %v5501_v53, 16 }
 0x184   : > { %v2506_v47 = vsel %vm2504_vm14, %v2491_v49, %v2505_v4  ;;  %v2662_v41 = vsel %vm2660_vm15, %v2491_v49, %v2505_v4  ;;  %v2783_v11 = vsel %vm4207_vm11, 0, %v4206_v2  ;;  %v3061_v20 = vand.u32 65535, %v3031_v1 }
 0x185   : > { %v2510_v56 = vsel %vm2503_vm0, %v2506_v47, %v2509_v62  ;;  %v2666_v9 = vsel %vm2659_vm1, %v2662_v41, %v2665_v52  ;;  %v2784_v54 = vsub.s32 32, %v2783_v11  ;;  %v2785_v51 = vshll.u32 %v5489_v16, %v2783_v11 }
 0x186   : > { %v2511_v60 = vsel %vm2500_vm2, nan, %v2510_v56  ;;  %v2667_v22 = vsel %vm2500_vm2, nan, %v2666_v9  ;;  %v2788_v13 = vsub.s32 4294967266, %v2783_v11  ;;  %v4221_v43 = vadd.s32 4294967169, %v3306_v21 }
 0x187   : > { %4198 = vst [vmem:[%s4365_s26 + $0x80] sm:$0xff] %v2511_v60  ;;  %v2786_v3 = vshrl.u32 %v5450_v55, %v2784_v54  ;;  %v5562_v17 = vand.u32 8388607, %v3302_v38  ;;  %v5566_v6 = vsel %vm5508_vm9, 0, %v2799_v29  ;;  %v3024_v16 = vsel %vm3020_vm3, %v3004_v63, %v5484_v7 }
 0x188   : > { %4202 = vst [vmem:[%s4365_s26 + $0x88] sm:$0xff] %v2667_v22  ;;  %v2789_v44 = vadd.s32 127, %v2788_v13  ;;  %v3039_v25 = vand.u32 65535, %v3035_v42  ;;  %v3040_v49 = vshrl.u32 %v3035_v42, 16  ;;  %v3026_v55 = vsel %vm3022_vm4, %v5491_v33, %v3025_v8  ;;  %v5586_v42 = vld [vmem:[%s4365_s26 + $0x90] sm:$0xff] }
 0x189   : > { %v2787_v35 = vor.u32 %v2786_v3, %v2785_v51  ;;  %v3064_v50 = vmul.u32 %v3062_v59, %v3037_v61  ;;  %v3065_v0 = vmul.u32 %v3061_v20, %v3038_v18  ;;  %v3063_v19 = vmul.u32 %v3061_v20, %v3037_v61 }
 0x18a   : > { %v2790_v14 = vshll.u32 %v2789_v44, 23  ;;  %v3041_v48 = vmul.u32 %v3039_v25, %v3037_v61  ;;  %v3042_v37 = vmul.u32 %v3040_v49, %v3037_v61  ;;  %v3043_v15 = vmul.u32 %v3039_v25, %v3038_v18 }
 0x18b   : > { %v2794_v12 = vcvt.s32.f32 %v2787_v35  ;;  %v3312_v31 = vadd.s32 1, %v4221_v43  ;;  %v5576_v7 = vsel %vm3021_vm10, %v3024_v16, %v3026_v55  ;;  %v3044_v4 = vmul.u32 %v3040_v49, %v3038_v18 }
 0x18c   : > { %v2791_v21 = vor.u32 4788187, %v2790_v14  ;;  %v3045_v62 = vshll.u32 %v3042_v37, 16  ;;  %v3047_v52 = vshll.u32 %v3043_v15, 16  ;;  %v2818_v2 = vadd.s32 3, %v5566_v6 }
 0x18d   : > { %v3066_v33 = vmul.u32 %v3062_v59, %v3038_v18  ;;  %v3067_v63 = vshll.u32 %v3064_v50, 16  ;;  %v3046_v24 = vshrl.u32 %v3042_v37, 16  ;;  %v3069_v41 = vshll.u32 %v3065_v0, 16 }
 0x18e   : > { %v2792_v39 = vand.u32 2147483647, %v2791_v21  ;;  %vm3049_vm12 = vc.u32 %v3041_v48, %v3045_v62  ;;  %v3051_v47 = vadd.s32 %v3045_v62, %v3041_v48  ;;  %v3068_v56 = vshrl.u32 %v3064_v50, 16 }
 0x18f   : > { %v3050_v61 = vsel %vm3049_vm12, 1, %v4306_v46  ;;  %vm3071_vm8 = vc.u32 %v3063_v19, %v3067_v63  ;;  %v3073_v40 = vadd.s32 %v3067_v63, %v3063_v19  ;;  %v3048_v11 = vshrl.u32 %v3043_v15, 16 }
 0x190   : > { %v2795_v1 = vmul.f32 %v2794_v12, %v2792_v39  ;;  %v3052_v26 = vadd.s32 %v3050_v61, %v3044_v4  ;;  %vm3053_vm13 = vc.u32 %v3051_v47, %v3047_v52  ;;  %v3072_v9 = vsel %vm3071_vm8, 1, %v4306_v46 }
 0x191   : > { %v3054_v60 = vsel %vm3053_vm13, 1, %v4306_v46  ;;  %v3074_v22 = vadd.s32 %v3072_v9, %v3066_v33  ;;  %vm3075_vm14 = vc.u32 %v3073_v40, %v3069_v41  ;;  %vm3313_vm15 = vcmp.gt.s32.totalorder %v3312_v31, 0 }
 0x192   : > { %v2796_v23 = vxor.u32 2147483648, %v2795_v1  ;;  %v3056_v29 = vadd.s32 %v3054_v60, %v3052_v26  ;;  %v3076_v54 = vsel %vm3075_vm14, 1, %v4306_v46  ;;  %v3070_v13 = vshrl.u32 %v3065_v0, 16 }
 0x193   : > { %v3078_v59 = vadd.s32 %v3076_v54, %v3074_v22  ;;  %v3314_v8 = vsel %vm3313_vm15, %v3312_v31, 0  ;;  %v5591_v3 = vadd.s32 %v3073_v40, %v3069_v41  ;;  %v3310_v25 = vor.u32 8388608, %v5562_v17 }
 0x194   : > { %v2797_v51 = vsel %vm2676_vm5, %v2796_v23, %v2795_v1  ;;  %v3057_v20 = vadd.s32 %v3056_v29, %v3046_v24  ;;  %v3316_v44 = vand.u32 31, %v3314_v8  ;;  %v5594_v49 = vand.u32 3, %v2818_v2 }
 0x195   : > { %v2800_v18 = vsel %vm5508_vm9, %v5586_v42, %v2797_v51  ;;  %v3079_v16 = vadd.s32 %v3078_v59, %v3068_v56  ;;  %v3081_v35 = vmul.u32 %v5501_v53, %v5576_v7  ;;  %v5602_v48 = vshrl.u32 %v3314_v8, 5 }
 0x196   : > { %v2802_v43 = vmul.f32 %v2800_v18, %v2800_v18  ;;  %v5596_v10 = vadd.s32 %v3057_v20, %v3048_v11  ;;  %v5600_v14 = vsub.s32 32, %v3316_v44  ;;  %v3319_v37 = vshll.u32 %v4300_v28, %v3316_v44 }
 0x197   : > { %v3080_v50 = vadd.s32 %v3079_v16, %v3070_v13  ;;  %v3322_v15 = vshll.u32 %v4301_v30, %v3316_v44  ;;  %v3325_v19 = vshll.u32 %v4302_v32, %v3316_v44  ;;  %v3328_v7 = vshll.u32 %v4303_v34, %v3316_v44 }
 0x198   : > { %v2803_v55 = vmul.f32 -0.001358992, %v2802_v43  ;;  %v2810_v27 = vmul.f32 -0.00019511016, %v2802_v43  ;;  %vm3083_vm0 = vc.u32 %v5596_v10, %v5591_v3  ;;  %v3320_v17 = vshrl.u32 %v4301_v30, %v5600_v14 }
 0x199   : > { %v3084_v53 = vadd.s32 1, %v3080_v50  ;;  %v3323_v12 = vshrl.u32 %v4302_v32, %v5600_v14  ;;  %v3326_v31 = vshrl.u32 %v4303_v34, %v5600_v14  ;;  %v3329_v4 = vshrl.u32 %v4304_v36, %v5600_v14 }
 0x19a   : > { %v2804_v0 = vadd.f32 0.041655596, %v2803_v55  ;;  %v2811_v21 = vadd.f32 0.008332121, %v2810_v27  ;;  %v2975_v39 = vand.u32 3, %v5566_v6  ;;  %v5619_v63 = vor.u32 %v3320_v17, %v3319_v37 }
 0x19b   : > { %v3085_v2 = vsel %vm3083_vm0, %v3084_v53, %v3080_v50  ;;  %v5621_v24 = vor.u32 %v3323_v12, %v3322_v15  ;;  %v3331_v47 = vshll.u32 %v4304_v36, %v3316_v44  ;;  %vm2820_vm1 = vcmp.lt.s32.totalorder %v5594_v49, 2 }
 0x19c   : > { %v2805_v62 = vmul.f32 %v2804_v0, %v2802_v43  ;;  %v2812_v52 = vmul.f32 %v2811_v21, %v2802_v43  ;;  %v3086_v33 = vadd.s32 %v3085_v2, %v3081_v35  ;;  %v3330_v61 = vor.u32 %v3329_v4, %v3328_v7 }
 0x19d   : > { %v3332_v40 = vshrl.u32 %v4305_v45, %v5600_v14  ;;  %vm2817_vm2 = vweird.f32 %v5586_v42  ;;  %vm2821_vm5 = vcmp.eq.s32.totalorder %v5594_v49, 0  ;;  %v5629_v26 = vor.u32 %v3326_v31, %v3325_v19 }
 0x19e   : > { %v2806_v41 = vadd.f32 -0.4999988, %v2805_v62  ;;  %v2813_v1 = vadd.f32 -0.16666654, %v2812_v52  ;;  %v3087_v6 = vadd.s32 536870912, %v3086_v33  ;;  %vm3334_vm3 = vcmp.lt.s32.totalorder %v5602_v48, 1 }
 0x19f   : > { %vm3336_vm4 = vcmp.lt.s32.totalorder %v5602_v48, 3  ;;  %v5633_v23 = vshll.u32 %v3310_v25, 8  ;;  %v3333_v22 = vor.u32 %v3332_v40, %v3331_v47  ;;  %vm3335_vm6 = vcmp.lt.s32.totalorder %v5602_v48, 2 }
 0x1a0   : > { %v2807_v56 = vmul.f32 %v2806_v41, %v2802_v43  ;;  %v2814_v9 = vmul.f32 %v2813_v1, %v2802_v43  ;;  %v5635_v60 = vshrl.u32 %v3087_v6, 30  ;;  %vm3337_vm7 = vcmp.lt.s32.totalorder %v5602_v48, 4 }
 0x1a1   : > { %v3342_v54 = vsel %vm3334_vm3, %v5619_v63, %v5621_v24  ;;  %v3343_v51 = vsel %vm3337_vm7, %v3330_v61, 920167782  ;;  %vm2824_vm9 = vcmp.eq.s32.totalorder %v5594_v49, 2  ;;  %vm2980_vm10 = vcmp.eq.s32.totalorder %v2975_v39, 2 }
 0x1a2   : > { %v2808_v11 = vadd.f32 1.0, %v2807_v56  ;;  %v2815_v29 = vadd.f32 1.0, %v2814_v9  ;;  %v3089_v13 = vshll.u32 %v5635_v60, 30  ;;  %v3344_v59 = vsel %vm3336_vm4, %v5629_v26, %v3343_v51 }
 0x1a3   : > { %vm2976_vm11 = vcmp.lt.s32.totalorder %v2975_v39, 2  ;;  %vm2977_vm12 = vcmp.eq.s32.totalorder %v2975_v39, 0  ;;  %v3345_v43 = vsel %vm3335_vm6, %v3342_v54, %v3344_v59  ;;  %v3346_v16 = vsel %vm3334_vm3, %v5621_v24, %v5629_v26 }
 0x1a4   : > { %v2816_v8 = vmul.f32 %v2815_v29, %v2800_v18  ;;  %v2825_v20 = vxor.u32 2147483648, %v2808_v11  ;;  %v3090_v44 = vsub.s32 %v3086_v33, %v3089_v13  ;;  %v3347_v25 = vsel %vm3337_vm7, %v3333_v22, 1326507024 }
 0x1a5   : > { %v3351_v18 = vand.u32 65535, %v5633_v23  ;;  %v3348_v37 = vsel %vm3336_vm4, %v3330_v61, %v3347_v25  ;;  %v3352_v17 = vshrl.u32 %v5633_v23, 16  ;;  %v3376_v53 = vshrl.u32 %v3345_v43, 16 }
 0x1a6   : > { %v2822_v35 = vxor.u32 2147483648, %v2816_v8  ;;  %v2826_v55 = vsel %vm2824_vm9, %v2825_v20, %v2816_v8  ;;  %v2982_v27 = vsel %vm2980_vm10, %v2825_v20, %v2816_v8  ;;  %vm3091_vm8 = vcmp.lt.s32.totalorder %v3090_v44, 0 }
 0x1a7   : > { %v3092_v50 = vsub.s32 0, %v3090_v44  ;;  %v3349_v21 = vsel %vm3335_vm6, %v3346_v16, %v3348_v37  ;;  %v3375_v33 = vand.u32 65535, %v3345_v43  ;;  %v3318_v49 = vshrl.u32 %v4300_v28, %v5600_v14 }
 0x1a8   : > { %v2823_v15 = vsel %vm2821_vm5, %v2808_v11, %v2822_v35  ;;  %v2979_v0 = vsel %vm2977_vm12, %v2808_v11, %v2822_v35  ;;  %v3353_v7 = vand.u32 65535, %v3349_v21  ;;  %v3354_v2 = vshrl.u32 %v3349_v21, 16 }
 0x1a9   : > { %v2827_v12 = vsel %vm2820_vm1, %v2823_v15, %v2826_v55  ;;  %v2983_v19 = vsel %vm2976_vm11, %v2979_v0, %v2982_v27  ;;  %v3093_v31 = vsel %vm3091_vm8, %v3092_v50, %v3090_v44  ;;  %v3378_v61 = vmul.u32 %v3376_v53, %v3351_v18 }
 0x1aa   : > { %v2828_v4 = vsel %vm2817_vm2, nan, %v2827_v12  ;;  %v2984_v62 = vsel %vm2817_vm2, nan, %v2983_v19  ;;  %v3094_v52 = vclz %v3093_v31  ;;  %v3355_v41 = vmul.u32 %v3353_v7, %v3351_v18 }
 0x1ab   : > { %4208 = vst [vmem:[%s4365_s26 + $0x98] sm:$0xff] %v2828_v4  ;;  %v3356_v1 = vmul.u32 %v3354_v2, %v3351_v18  ;;  %v3357_v39 = vmul.u32 %v3353_v7, %v3352_v17  ;;  %v3082_v40 = vadd.s32 %v5591_v3, %v5596_v10  ;;  %v3358_v9 = vmul.u32 %v3354_v2, %v3352_v17 }
 0x1ac   : > { %4212 = vst [vmem:[%s4365_s26 + $0xa0] sm:$0xff] %v2984_v62  ;;  %v4214_v47 = vadd.s32 4294967294, %v3094_v52  ;;  %v3379_v22 = vmul.u32 %v3375_v33, %v3352_v17  ;;  %v3338_v51 = vsel %vm3334_vm3, %v3318_v49, %v5619_v63  ;;  %v3377_v14 = vmul.u32 %v3375_v33, %v3351_v18 }
 0x1ad   : > { %v3359_v6 = vshll.u32 %v3356_v1, 16  ;;  %v3361_v13 = vshll.u32 %v3357_v39, 16  ;;  %v3381_v59 = vshll.u32 %v3378_v61, 16  ;;  %v3112_v3 = vsub.s32 4, %v5635_v60 }
 0x1ae   : > { %vm4215_vm13 = vcmp.lt.s32.totalorder %v4214_v47, 0  ;;  %v3339_v10 = vsel %vm3337_vm7, %v5629_v26, 2102212464  ;;  %v3380_v16 = vmul.u32 %v3376_v53, %v3352_v17  ;;  %v3383_v25 = vshll.u32 %v3379_v22, 16 }
 0x1af   : > { %v3097_v56 = vsel %vm4215_vm13, 0, %v4214_v47  ;;  %vm3363_vm14 = vc.u32 %v3355_v41, %v3359_v6  ;;  %v3362_v27 = vshrl.u32 %v3357_v39, 16  ;;  %v3360_v50 = vshrl.u32 %v3356_v1, 16 }
 0x1b0   : > { %v3098_v11 = vsub.s32 32, %v3097_v56  ;;  %v3099_v29 = vshll.u32 %v3090_v44, %v3097_v56  ;;  %v3102_v54 = vsub.s32 4294967266, %v3097_v56  ;;  %v3364_v43 = vsel %vm3363_vm14, 1, %v4306_v46 }
 0x1b1   : > { %v3365_v44 = vadd.s32 %v3359_v6, %v3355_v41  ;;  %v3366_v63 = vadd.s32 %v3364_v43, %v3358_v9  ;;  %vm3385_vm0 = vc.u32 %v3377_v14, %v3381_v59  ;;  %v3387_v18 = vadd.s32 %v3381_v59, %v3377_v14 }
 0x1b2   : > { %v3100_v8 = vshrl.u32 %v3082_v40, %v3098_v11  ;;  %v3103_v20 = vadd.s32 127, %v3102_v54  ;;  %v3386_v21 = vsel %vm3385_vm0, 1, %v4306_v46  ;;  %v3382_v12 = vshrl.u32 %v3378_v61, 16 }
 0x1b3   : > { %vm3367_vm15 = vc.u32 %v3365_v44, %v3361_v13  ;;  %v3388_v19 = vadd.s32 %v3386_v21, %v3380_v16  ;;  %vm3389_vm1 = vc.u32 %v3387_v18, %v3383_v25  ;;  %v3340_v53 = vsel %vm3336_vm4, %v5621_v24, %v3339_v10 }
 0x1b4   : > { %v3101_v35 = vor.u32 %v3100_v8, %v3099_v29  ;;  %v3104_v55 = vshll.u32 %v3103_v20, 23  ;;  %v3368_v0 = vsel %vm3367_vm15, 1, %v4306_v46  ;;  %v3390_v31 = vsel %vm3389_vm1, 1, %v4306_v46 }
 0x1b5   : > { %v3370_v26 = vadd.s32 %v3368_v0, %v3366_v63  ;;  %v5694_v7 = vmul.f32 8.0, %v5586_v42  ;;  %vm2990_vm2 = vcmp.lt.s32.totalorder %v5412_v5, 0  ;;  %v3384_v62 = vshrl.u32 %v3379_v22, 16 }
 0x1b6   : > { %v3105_v37 = vor.u32 4788187, %v3104_v55  ;;  %v3108_v15 = vcvt.s32.f32 %v3101_v35  ;;  %v3392_v52 = vadd.s32 %v3390_v31, %v3388_v19  ;;  %v3113_v33 = vsel %vm2990_vm2, %v3112_v3, %v5635_v60 }
 0x1b7   : > { %v3371_v4 = vadd.s32 %v3370_v26, %v3360_v50  ;;  %v3391_v47 = vadd.s32 %v3387_v18, %v3383_v25  ;;  %v3619_v41 = vand.u32 2139095040, %v5694_v7  ;;  %v3341_v24 = vsel %vm3335_vm6, %v3338_v51, %v3340_v53 }
 0x1b8   : > { %v3106_v17 = vand.u32 2147483647, %v3105_v37  ;;  %v3393_v49 = vadd.s32 %v3392_v52, %v3382_v12  ;;  %vm2989_vm5 = vcmp.le.f32.partialorder %v2988_v58, 0.7853982  ;;  %v3395_v60 = vmul.u32 %v5633_v23, %v3341_v24 }
 0x1b9   : > { %v3372_v1 = vadd.s32 %v3371_v4, %v3362_v27  ;;  %v3620_v39 = vshrl.u32 %v3619_v41, 23  ;;  %v3115_v61 = vsel %vm2989_vm5, 0, %v3113_v33  ;;  %v3616_v14 = vand.u32 2147483647, %v5694_v7 }
 0x1ba   : > { %v3109_v2 = vmul.f32 %v3108_v15, %v3106_v17  ;;  %v3394_v40 = vadd.s32 %v3393_v49, %v3384_v62  ;;  %v3132_v11 = vadd.s32 3, %v3115_v61  ;;  %v3289_v10 = vand.u32 3, %v3115_v61 }
 0x1bb   : > { %vm3397_vm3 = vc.u32 %v3372_v1, %v3391_v47  ;;  %v4229_v56 = vadd.s32 4294967169, %v3620_v39  ;;  %v3623_v35 = vand.u32 8388607, %v3616_v14  ;;  %vm3131_vm9 = vweird.f32 %v5412_v5 }
 0x1bc   : > { %v3110_v42 = vxor.u32 2147483648, %v3109_v2  ;;  %v3398_v48 = vadd.s32 1, %v3394_v40  ;;  %v3133_v3 = vand.u32 3, %v3132_v11  ;;  %vm3290_vm11 = vcmp.lt.s32.totalorder %v3289_v10, 2 }
 0x1bd   : > { %v3626_v29 = vadd.s32 1, %v4229_v56  ;;  %vm3291_vm12 = vcmp.eq.s32.totalorder %v3289_v10, 0  ;;  %vm3294_vm8 = vcmp.eq.s32.totalorder %v3289_v10, 2  ;;  %v3396_v0 = vadd.s32 %v3391_v47, %v3372_v1 }
 0x1be   : > { %v3111_v6 = vsel %vm2990_vm2, %v3110_v42, %v3109_v2  ;;  %v3399_v54 = vsel %vm3397_vm3, %v3398_v48, %v3394_v40  ;;  %vm3134_vm6 = vcmp.lt.s32.totalorder %v3133_v3, 2  ;;  %vm3135_vm7 = vcmp.eq.s32.totalorder %v3133_v3, 0 }
 0x1bf   : > { %v3114_v9 = vsel %vm2989_vm5, %v5412_v5, %v3111_v6  ;;  %v3400_v13 = vadd.s32 %v3399_v54, %v3395_v60  ;;  %vm3627_vm4 = vcmp.gt.s32.totalorder %v3626_v29, 0  ;;  %vm3138_vm10 = vcmp.eq.s32.totalorder %v3133_v3, 2 }
 0x1c0   : > { %v3116_v22 = vmul.f32 %v3114_v9, %v3114_v9  ;;  %v3628_v59 = vsel %vm3627_vm4, %v3626_v29, 0  ;;  %v3624_v21 = vor.u32 8388608, %v3623_v35  ;;  %vm3304_vm1 = vcmp.lt.s32.totalorder %v5457_v57, 0 }
 0x1c1   : > { %v3401_v23 = vadd.s32 536870912, %v3400_v13  ;;  %v3630_v43 = vand.u32 31, %v3628_v59  ;;  %v5718_v26 = vshrl.u32 %v3628_v59, 5  ;;  %vm5784_vm3 = vcmp.le.f32.partialorder %v3302_v38, 0.7853982 }
 0x1c2   : > { %v3117_v51 = vmul.f32 -0.001358992, %v3116_v22  ;;  %v3124_v58 = vmul.f32 -0.00019511016, %v3116_v22  ;;  %v5738_v60 = vshll.u32 %v3624_v21, 8 }
 0x1c3   : > { %v5710_v25 = vshrl.u32 %v3401_v23, 30  ;;  %v5716_v50 = vsub.s32 32, %v3630_v43  ;;  %v3633_v12 = vshll.u32 %v4300_v28, %v3630_v43  ;;  %v3636_v4 = vshll.u32 %v4301_v30, %v3630_v43 }
 0x1c4   : > { %v3118_v8 = vadd.f32 0.041655596, %v3117_v51  ;;  %v3125_v20 = vadd.f32 0.008332121, %v3124_v58  ;;  %v3639_v52 = vshll.u32 %v4302_v32, %v3630_v43  ;;  %v3642_v1 = vshll.u32 %v4303_v34, %v3630_v43 }
 0x1c5   : > { %v3403_v63 = vshll.u32 %v5710_v25, 30  ;;  %v3634_v31 = vshrl.u32 %v4301_v30, %v5716_v50  ;;  %v3637_v62 = vshrl.u32 %v4302_v32, %v5716_v50  ;;  %v3640_v41 = vshrl.u32 %v4303_v34, %v5716_v50 }
 0x1c6   : > { %v3119_v44 = vmul.f32 %v3118_v8, %v3116_v22  ;;  %v3126_v16 = vmul.f32 %v3125_v20, %v3116_v22  ;;  %v3643_v49 = vshrl.u32 %v4304_v36, %v5716_v50  ;;  %v3645_v42 = vshll.u32 %v4304_v36, %v3630_v43 }
 0x1c7   : > { %v3404_v15 = vsub.s32 %v3400_v13, %v3403_v63  ;;  %v3646_v32 = vshrl.u32 %v4305_v45, %v5716_v50  ;;  %v3635_v6 = vor.u32 %v3634_v31, %v3633_v12  ;;  %vm3648_vm14 = vcmp.lt.s32.totalorder %v5718_v26, 1 }
 0x1c8   : > { %v3120_v55 = vadd.f32 -0.4999988, %v3119_v44  ;;  %v3127_v27 = vadd.f32 -0.16666654, %v3126_v16  ;;  %v5742_v36 = vor.u32 %v3637_v62, %v3636_v4  ;;  %v3644_v45 = vor.u32 %v3643_v49, %v3642_v1 }
 0x1c9   : > { %vm3405_vm13 = vcmp.lt.s32.totalorder %v3404_v15, 0  ;;  %v3406_v53 = vsub.s32 0, %v3404_v15  ;;  %v3647_v51 = vor.u32 %v3646_v32, %v3645_v42  ;;  %vm3651_vm0 = vcmp.lt.s32.totalorder %v5718_v26, 4 }
 0x1ca   : > { %v3121_v18 = vmul.f32 %v3120_v55, %v3116_v22  ;;  %v3128_v37 = vmul.f32 %v3127_v27, %v3116_v22  ;;  %v3426_v8 = vsub.s32 4, %v5710_v25  ;;  %vm3650_vm2 = vcmp.lt.s32.totalorder %v5718_v26, 3 }
 0x1cb   : > { %v3407_v47 = vsel %vm3405_vm13, %v3406_v53, %v3404_v15  ;;  %v3665_v20 = vand.u32 65535, %v5738_v60  ;;  %vm3649_vm5 = vcmp.lt.s32.totalorder %v5718_v26, 2  ;;  %v3656_v23 = vsel %vm3648_vm14, %v3635_v6, %v5742_v36 }
 0x1cc   : > { %v3122_v19 = vadd.f32 1.0, %v3121_v18  ;;  %v3129_v17 = vadd.f32 1.0, %v3128_v37  ;;  %v3408_v24 = vclz %v3407_v47  ;;  %v3657_v10 = vsel %vm3651_vm0, %v3644_v45, 920167782 }
 0x1cd   : > { %v3661_v44 = vsel %vm3651_vm0, %v3647_v51, 1326507024  ;;  %v3666_v16 = vshrl.u32 %v5738_v60, 16  ;;  %v3427_v18 = vsel %vm3304_vm1, %v3426_v8, %v5710_v25  ;;  %v3632_v37 = vshrl.u32 %v4300_v28, %v5716_v50 }
 0x1ce   : > { %v3130_v2 = vmul.f32 %v3129_v17, %v3114_v9  ;;  %v3139_v33 = vxor.u32 2147483648, %v3122_v19  ;;  %v4222_v40 = vadd.s32 4294967294, %v3408_v24  ;;  %v3641_v9 = vor.u32 %v3640_v41, %v3639_v52 }
 0x1cf   : > { %v3662_v63 = vsel %vm3650_vm2, %v3644_v45, %v3661_v44  ;;  %v3429_v28 = vsel %vm5784_vm3, 0, %v3427_v18  ;;  %v3652_v50 = vsel %vm3648_vm14, %v3632_v37, %v3635_v6 }
 0x1d0   : > { %v3136_v30 = vxor.u32 2147483648, %v3130_v2  ;;  %v3140_v39 = vsel %vm3138_vm10, %v3139_v33, %v3130_v2  ;;  %v3296_v61 = vsel %vm3294_vm8, %v3139_v33, %v3130_v2  ;;  %vm4223_vm15 = vcmp.lt.s32.totalorder %v4222_v40, 0 }
 0x1d1   : > { %v3411_v54 = vsel %vm4223_vm15, 0, %v4222_v40  ;;  %v3660_v43 = vsel %vm3648_vm14, %v5742_v36, %v3641_v9  ;;  %v3658_v27 = vsel %vm3650_vm2, %v3641_v9, %v3657_v10  ;;  %v3653_v24 = vsel %vm3651_vm0, %v3641_v9, 2102212464 }
 0x1d2   : > { %v3137_v34 = vsel %vm3135_vm7, %v3122_v19, %v3136_v30  ;;  %v3293_v56 = vsel %vm3291_vm12, %v3122_v19, %v3136_v30  ;;  %v3412_v58 = vsub.s32 32, %v3411_v54  ;;  %v3413_v13 = vshll.u32 %v3404_v15, %v3411_v54 }
 0x1d3   : > { %v3141_v48 = vsel %vm3134_vm6, %v3137_v34, %v3140_v39  ;;  %v3297_v22 = vsel %vm3290_vm11, %v3293_v56, %v3296_v61  ;;  %v3416_v59 = vsub.s32 4294967266, %v3411_v54  ;;  %v3659_v15 = vsel %vm3649_vm5, %v3656_v23, %v3658_v27 }
 0x1d4   : > { %v3142_v11 = vsel %vm3131_vm9, nan, %v3141_v48  ;;  %v3298_v29 = vsel %vm3131_vm9, nan, %v3297_v22  ;;  %v3414_v3 = vshrl.u32 %v3396_v0, %v3412_v58  ;;  %v3663_v0 = vsel %vm3649_vm5, %v3660_v43, %v3662_v63 }
 0x1d5   : > { %4216 = vst [vmem:[%s4365_s26 + $0xa8] sm:$0xff] %v3142_v11  ;;  %v3417_v5 = vadd.s32 127, %v3416_v59  ;;  %v3667_v17 = vand.u32 65535, %v3663_v0  ;;  %v3668_v53 = vshrl.u32 %v3663_v0, 16  ;;  %v3689_v25 = vand.u32 65535, %v3659_v15 }
 0x1d6   : > { %4220 = vst [vmem:[%s4365_s26 + $0xb0] sm:$0xff] %v3298_v29  ;;  %v3415_v35 = vor.u32 %v3414_v3, %v3413_v13  ;;  %v3690_v31 = vshrl.u32 %v3659_v15, 16  ;;  %v3654_v58 = vsel %vm3650_vm2, %v5742_v36, %v3653_v24  ;;  %v3446_v27 = vadd.s32 3, %v3429_v28 }
 0x1d7   : > { %v3418_v55 = vshll.u32 %v3417_v5, 23  ;;  %v3669_v62 = vmul.u32 %v3667_v17, %v3665_v20  ;;  %v3670_v52 = vmul.u32 %v3668_v53, %v3665_v20  ;;  %v3671_v2 = vmul.u32 %v3667_v17, %v3666_v16 }
 0x1d8   : > { %v3422_v19 = vcvt.s32.f32 %v3415_v35  ;;  %v3691_v33 = vmul.u32 %v3689_v25, %v3665_v20  ;;  %v3692_v47 = vmul.u32 %v3690_v31, %v3665_v20  ;;  %v3693_v41 = vmul.u32 %v3689_v25, %v3666_v16 }
 0x1d9   : > { %v3419_v12 = vor.u32 4788187, %v3418_v55  ;;  %v3672_v1 = vmul.u32 %v3668_v53, %v3666_v16  ;;  %v3673_v49 = vshll.u32 %v3670_v52, 16  ;;  %v3675_v42 = vshll.u32 %v3671_v2, 16 }
 0x1da   : > { %v3674_v39 = vshrl.u32 %v3670_v52, 16  ;;  %v3694_v61 = vmul.u32 %v3690_v31, %v3666_v16  ;;  %v3695_v32 = vshll.u32 %v3692_v47, 16  ;;  %v3696_v6 = vshrl.u32 %v3692_v47, 16 }
 0x1db   : > { %v3420_v4 = vand.u32 2147483647, %v3419_v12  ;;  %vm3677_vm4 = vc.u32 %v3669_v62, %v3673_v49  ;;  %v3679_v40 = vadd.s32 %v3673_v49, %v3669_v62  ;;  %v3697_v34 = vshll.u32 %v3693_v41, 16 }
 0x1dc   : > { %v3678_v48 = vsel %vm3677_vm4, 1, %v4306_v46  ;;  %vm3699_vm6 = vc.u32 %v3691_v33, %v3695_v32  ;;  %v3701_v22 = vadd.s32 %v3695_v32, %v3691_v33  ;;  %v3676_v13 = vshrl.u32 %v3671_v2, 16 }
 0x1dd   : > { %v3423_v38 = vmul.f32 %v3422_v19, %v3420_v4  ;;  %v3680_v45 = vadd.s32 %v3678_v48, %v3672_v1  ;;  %vm3681_vm7 = vc.u32 %v3679_v40, %v3675_v42  ;;  %v3700_v11 = vsel %vm3699_vm6, 1, %v4306_v46 }
 0x1de   : > { %v3682_v54 = vsel %vm3681_vm7, 1, %v4306_v46  ;;  %v3702_v51 = vadd.s32 %v3700_v11, %v3694_v61  ;;  %vm3703_vm9 = vc.u32 %v3701_v22, %v3697_v34  ;;  %v3698_v5 = vshrl.u32 %v3693_v41, 16 }
 0x1df   : > { %v3424_v30 = vxor.u32 2147483648, %v3423_v38  ;;  %v3684_v59 = vadd.s32 %v3682_v54, %v3680_v45  ;;  %v3704_v8 = vsel %vm3703_vm9, 1, %v4306_v46  ;;  %v3705_v43 = vadd.s32 %v3701_v22, %v3697_v34 }
 0x1e0   : > { %v3706_v23 = vadd.s32 %v3704_v8, %v3702_v51  ;;  %v3655_v35 = vsel %vm3649_vm5, %v3652_v50, %v3654_v58  ;;  %v3447_v12 = vand.u32 3, %v3446_v27  ;;  %v3603_v19 = vand.u32 3, %v3429_v28 }
 0x1e1   : > { %v3425_v56 = vsel %vm3304_vm1, %v3424_v30, %v3423_v38  ;;  %v3685_v10 = vadd.s32 %v3684_v59, %v3674_v39  ;;  %v3709_v15 = vmul.u32 %v5738_v60, %v3655_v35  ;;  %vm3445_vm0 = vweird.f32 %v5457_v57 }
 0x1e2   : > { %v3428_v9 = vsel %vm5784_vm3, %v5457_v57, %v3425_v56  ;;  %v3707_v55 = vadd.s32 %v3706_v23, %v3696_v6  ;;  %vm3452_vm11 = vcmp.eq.s32.totalorder %v3447_v12, 2  ;;  %vm3608_vm12 = vcmp.eq.s32.totalorder %v3603_v19, 2 }
 0x1e3   : > { %v3430_v29 = vmul.f32 %v3428_v9, %v3428_v9  ;;  %v3686_v63 = vadd.s32 %v3685_v10, %v3676_v13  ;;  %vm3448_vm8 = vcmp.lt.s32.totalorder %v3447_v12, 2  ;;  %vm3449_vm13 = vcmp.eq.s32.totalorder %v3447_v12, 0 }
 0x1e4   : > { %v3708_v37 = vadd.s32 %v3707_v55, %v3698_v5  ;;  %vm3605_vm14 = vcmp.eq.s32.totalorder %v3603_v19, 0  ;;  %vm3604_vm15 = vcmp.lt.s32.totalorder %v3603_v19, 2  ;;  %vm3618_vm5 = vcmp.lt.s32.totalorder %v5694_v7, 0 }
 0x1e5   : > { %v3431_v20 = vmul.f32 -0.001358992, %v3430_v29  ;;  %v3438_v3 = vmul.f32 -0.00019511016, %v3430_v29  ;;  %vm3711_vm10 = vc.u32 %v3686_v63, %v3705_v43  ;;  %v3710_v6 = vadd.s32 %v3705_v43, %v3686_v63 }
 0x1e6   : > { %v3712_v21 = vadd.s32 1, %v3708_v37  ;;  %vm3617_vm3 = vcmp.le.f32.partialorder %v3616_v14, 0.7853982 }
 0x1e7   : > { %v3432_v44 = vadd.f32 0.041655596, %v3431_v20  ;;  %v3439_v16 = vadd.f32 0.008332121, %v3438_v3 }
 0x1e8   : > { %v3713_v25 = vsel %vm3711_vm10, %v3712_v21, %v3708_v37 }
 0x1e9   : > { %v3433_v18 = vmul.f32 %v3432_v44, %v3430_v29  ;;  %v3440_v36 = vmul.f32 %v3439_v16, %v3430_v29  ;;  %v3714_v31 = vadd.s32 %v3713_v25, %v3709_v15 }
 0x1eb   : > { %v3434_v46 = vadd.f32 -0.4999988, %v3433_v18  ;;  %v3441_v0 = vadd.f32 -0.16666654, %v3440_v36  ;;  %v3715_v50 = vadd.s32 536870912, %v3714_v31 }
 0x1ed   : > { %v3435_v17 = vmul.f32 %v3434_v46, %v3430_v29  ;;  %v3442_v53 = vmul.f32 %v3441_v0, %v3430_v29  ;;  %v3716_v60 = vshrl.u32 %v3715_v50, 30 }
 0x1ef   : > { %v3436_v26 = vadd.f32 1.0, %v3435_v17  ;;  %v3443_v4 = vadd.f32 1.0, %v3442_v53  ;;  %v3717_v33 = vshll.u32 %v3716_v60, 30  ;;  %v3740_v13 = vsub.s32 4, %v3716_v60 }
 0x1f1   : > { %v3444_v62 = vmul.f32 %v3443_v4, %v3428_v9  ;;  %v3453_v52 = vxor.u32 2147483648, %v3436_v26  ;;  %v3718_v49 = vsub.s32 %v3714_v31, %v3717_v33  ;;  %v3741_v20 = vsel %vm3618_vm5, %v3740_v13, %v3716_v60  ;;  %v4022_v60 = vld [vmem:[%s4365_s26 + $0x10] sm:$0xff] (%p4347_p5) }
 0x1f2   : > { %v3743_v23 = vsel %vm3617_vm3, 0, %v3741_v20  ;;  %4023 = vst [vmem:[%s5828_s30 + $0x20] sm:$0xff] (%p4347_p5), %v4022_v60  ;;  %v4030_v33 = vld [vmem:[%s4365_s26 + $0x30] sm:$0xff] (%p4347_p5) }
 0x1f3   : > { %v3450_v2 = vxor.u32 2147483648, %v3444_v62  ;;  %v3454_v38 = vsel %vm3452_vm11, %v3453_v52, %v3444_v62  ;;  %v3610_v28 = vsel %vm3608_vm12, %v3453_v52, %v3444_v62  ;;  %vm3719_vm1 = vcmp.lt.s32.totalorder %v3718_v49, 0  ;;  %v4020_v52 = vld [vmem:[%s4365_s26 + $0x8] sm:$0xff] (%p4347_p5)  ;;  %4031 = vst [vmem:[%s5828_s30 + $0x60] sm:$0xff] (%p4347_p5), %v4030_v33 }
 0x1f4   : > { %v3720_v39 = vsub.s32 0, %v3718_v49  ;;  %v3760_v35 = vadd.s32 3, %v3743_v23  ;;  %v3917_v37 = vand.u32 3, %v3743_v23  ;;  %vm3759_vm12 = vweird.f32 %v5694_v7  ;;  %4021 = vst [vmem:[%s5828_s30 + $0x10] sm:$0xff] (%p4347_p5), %v4020_v52 }
 0x1f5   : > { %v3451_v47 = vsel %vm3449_vm13, %v3436_v26, %v3450_v2  ;;  %v3607_v41 = vsel %vm3605_vm14, %v3436_v26, %v3450_v2  ;;  %v4024_v2 = vld [vmem:[%s4365_s26 + $0x18] sm:$0xff] (%p4347_p5) }
 0x1f6   : > { %v3455_v24 = vsel %vm3448_vm8, %v3451_v47, %v3454_v38  ;;  %v3611_v1 = vsel %vm3604_vm15, %v3607_v41, %v3610_v28  ;;  %v3721_v61 = vsel %vm3719_vm1, %v3720_v39, %v3718_v49  ;;  %v3761_v36 = vand.u32 3, %v3760_v35  ;;  %v4026_v38 = vld [vmem:[%s4365_s26 + $0x20] sm:$0xff] (%p4347_p5)  ;;  %v4028_v28 = vld [vmem:[%s4365_s26 + $0x28] sm:$0xff] (%p4347_p5)  ;;  %4025 = vst [vmem:[%s5828_s30 + $0x30] sm:$0xff] (%p4347_p5), %v4024_v2  ;;  %v4032_v47 = vld [vmem:[%s4365_s26 + $0x38] sm:$0xff] (%p4347_p5) }
 0x1f7   : > { %v3456_v42 = vsel %vm3445_vm0, nan, %v3455_v24  ;;  %v3612_v30 = vsel %vm3445_vm0, nan, %v3611_v1  ;;  %v3722_v32 = vclz %v3721_v61  ;;  %vm3922_vm6 = vcmp.eq.s32.totalorder %v3917_v37, 2  ;;  %4027 = vst [vmem:[%s5828_s30 + $0x40] sm:$0xff] (%p4347_p5), %v4026_v38  ;;  %v4034_v41 = vld [vmem:[%s4365_s26 + $0x40] sm:$0xff] (%p4347_p5)  ;;  %v4036_v24 = vld [vmem:[%s4365_s26 + $0x48] sm:$0xff] (%p4347_p5) }
 0x1f8   : > { %4224 = vst [vmem:[%s4365_s26 + $0xb8] sm:$0xff] %v3456_v42  ;;  %vm3766_vm4 = vcmp.eq.s32.totalorder %v3761_v36, 2  ;;  %vm3762_vm7 = vcmp.lt.s32.totalorder %v3761_v36, 2  ;;  %vm3763_vm9 = vcmp.eq.s32.totalorder %v3761_v36, 0  ;;  %vm3919_vm10 = vcmp.eq.s32.totalorder %v3917_v37, 0  ;;  %v4038_v1 = vld [vmem:[%s4365_s26 + $0x50] sm:$0xff] (%p4347_p5) }
 0x1f9   : > { %4228 = vst [vmem:[%s4365_s26 + $0xc0] sm:$0xff] %v3612_v30  ;;  %v4230_v40 = vadd.s32 4294967294, %v3722_v32  ;;  %vm3918_vm11 = vcmp.lt.s32.totalorder %v3917_v37, 2  ;;  %v4042_v42 = vld [vmem:[%s4365_s26 + $0x60] sm:$0xff] (%p4347_p5)  ;;  %v4044_v30 = vld [vmem:[%s4365_s26 + $0x68] sm:$0xff] (%p4347_p5)  ;;  %v4046_v39 = vld [vmem:[%s4365_s26 + $0x70] sm:$0xff] (%p4347_p5) }
 0x1fa   : > { %4029 = vst [vmem:[%s5828_s30 + $0x50] sm:$0xff] (%p4347_p5), %v4028_v28  ;;  %v4048_v61 = vld [vmem:[%s4365_s26 + $0x78] sm:$0xff] (%p4347_p5)  ;;  %v4050_v32 = vld [vmem:[%s4365_s26 + $0x80] sm:$0xff] (%p4347_p5) }
 0x1fb   : > { %vm4231_vm2 = vcmp.lt.s32.totalorder %v4230_v40, 0  ;;  %4033 = vst [vmem:[%s5828_s30 + $0x70] sm:$0xff] (%p4347_p5), %v4032_v47 }
 0x1fc   : > { %v3725_v34 = vsel %vm4231_vm2, 0, %v4230_v40  ;;  %4035 = vst [vmem:[%s5828_s30 + $0x80] sm:$0xff] (%p4347_p5), %v4034_v41  ;;  %v4052_v40 = vld [vmem:[%s4365_s26 + $0x88] sm:$0xff] (%p4347_p5) }
 0x1fd   : > { %v3726_v56 = vsub.s32 32, %v3725_v34  ;;  %v3727_v57 = vshll.u32 %v3718_v49, %v3725_v34  ;;  %v3730_v48 = vsub.s32 4294967266, %v3725_v34  ;;  %v4040_v49 = vld [vmem:[%s4365_s26 + $0x58] sm:$0xff] (%p4347_p5)  ;;  %4037 = vst [vmem:[%s5828_s30 + $0x90] sm:$0xff] (%p4347_p5), %v4036_v24 }
 0x1fe   : > { %4039 = vst [vmem:[%s5828_s30 + $0xa0] sm:$0xff] (%p4347_p5), %v4038_v1  ;;  %v4056_v34 = vld [vmem:[%s4365_s26 + $0x98] sm:$0xff] (%p4347_p5) }
 0x1ff   : > { %v3728_v22 = vshrl.u32 %v3710_v6, %v3726_v56  ;;  %v3731_v9 = vadd.s32 127, %v3730_v48  ;;  %4041 = vst [vmem:[%s5828_s30 + $0xb0] sm:$0xff] (%p4347_p5), %v4040_v49  ;;  %v4054_v6 = vld [vmem:[%s4365_s26 + $0x90] sm:$0xff] (%p4347_p5)  ;;  %v4058_v56 = vld [vmem:[%s4365_s26 + $0xa0] sm:$0xff] (%p4347_p5) }
 0x200   : > { %4043 = vst [vmem:[%s5828_s30 + $0xc0] sm:$0xff] (%p4347_p5), %v4042_v42  ;;  %v4062_v48 = vld [vmem:[%s4365_s26 + $0xb0] sm:$0xff] (%p4347_p5) }
 0x201   : > { %v3729_v45 = vor.u32 %v3728_v22, %v3727_v57  ;;  %v3732_v11 = vshll.u32 %v3731_v9, 23  ;;  %4045 = vst [vmem:[%s5828_s30 + $0xd0] sm:$0xff] (%p4347_p5), %v4044_v30  ;;  %v4060_v57 = vld [vmem:[%s4365_s26 + $0xa8] sm:$0xff] (%p4347_p5)  ;;  %v4064_v22 = vld [vmem:[%s4365_s26 + $0xb8] sm:$0xff] (%p4347_p5)  ;;  %v4066_v9 = vld [vmem:[%s4365_s26 + $0xc0] sm:$0xff] (%p4347_p5) }
 0x202   : > { %4047 = vst [vmem:[%s5828_s30 + $0xe0] sm:$0xff] (%p4347_p5), %v4046_v39 }
 0x203   : > { %v3733_v29 = vor.u32 4788187, %v3732_v11  ;;  %v3736_v54 = vcvt.s32.f32 %v3729_v45  ;;  %4049 = vst [vmem:[%s5828_s30 + $0xf0] sm:$0xff] (%p4347_p5), %v4048_v61 }
 0x204   : > { %4051 = vst [vmem:[%s5828_s30 + $0x100] sm:$0xff] (%p4347_p5), %v4050_v32 }
 0x205   : > { %v3734_v51 = vand.u32 2147483647, %v3733_v29  ;;  %4053 = vst [vmem:[%s5828_s30 + $0x110] sm:$0xff] (%p4347_p5), %v4052_v40 }
 0x206   : > { %4055 = vst [vmem:[%s5828_s30 + $0x120] sm:$0xff] (%p4347_p5), %v4054_v6 }
 0x207   : > { %v3737_v58 = vmul.f32 %v3736_v54, %v3734_v51  ;;  %4057 = vst [vmem:[%s5828_s30 + $0x130] sm:$0xff] (%p4347_p5), %v4056_v34 }
 0x208   : > { %4059 = vst [vmem:[%s5828_s30 + $0x140] sm:$0xff] (%p4347_p5), %v4058_v56 }
 0x209   : > { %v3738_v59 = vxor.u32 2147483648, %v3737_v58  ;;  %4061 = vst [vmem:[%s5828_s30 + $0x150] sm:$0xff] (%p4347_p5), %v4060_v57 }
 0x20a   : > { %4063 = vst [vmem:[%s5828_s30 + $0x160] sm:$0xff] (%p4347_p5), %v4062_v48 }
 0x20b   : > { %v3739_v8 = vsel %vm3618_vm5, %v3738_v59, %v3737_v58  ;;  %4065 = vst [vmem:[%s5828_s30 + $0x170] sm:$0xff] (%p4347_p5), %v4064_v22 }
 0x20c   : > { %v3742_v3 = vsel %vm3617_vm3, %v5694_v7, %v3739_v8  ;;  %v4018_v7 = vld [vmem:[%s4365_s26] sm:$0xff] (%p4347_p5)  ;;  %4067 = vst [vmem:[%s5828_s30 + $0x180] sm:$0xff] (%p4347_p5), %v4066_v9 }
 0x20d   : > { %v3744_v5 = vmul.f32 %v3742_v3, %v3742_v3  ;;  %4019 = vst [vmem:[%s5828_s30] sm:$0xff] (%p4347_p5), %v4018_v7 }
 0x20f   : > { %v3745_v10 = vmul.f32 -0.001358992, %v3744_v5  ;;  %v3752_v43 = vmul.f32 -0.00019511016, %v3744_v5 }
 0x211   : > { %v3746_v44 = vadd.f32 0.041655596, %v3745_v10  ;;  %v3753_v16 = vadd.f32 0.008332121, %v3752_v43 }
 0x213   : > { %v3747_v55 = vmul.f32 %v3746_v44, %v3744_v5  ;;  %v3754_v27 = vmul.f32 %v3753_v16, %v3744_v5 }
 0x215   : > { %v3748_v63 = vadd.f32 -0.4999988, %v3747_v55  ;;  %v3755_v18 = vadd.f32 -0.16666654, %v3754_v27 }
 0x217   : > { %v3749_v15 = vmul.f32 %v3748_v63, %v3744_v5  ;;  %v3756_v14 = vmul.f32 %v3755_v18, %v3744_v5 }
 0x219   : > { %v3750_v46 = vadd.f32 1.0, %v3749_v15  ;;  %v3757_v0 = vadd.f32 1.0, %v3756_v14 }
 0x21b   : > { %v3758_v21 = vmul.f32 %v3757_v0, %v3742_v3  ;;  %v3767_v12 = vxor.u32 2147483648, %v3750_v46 }
 0x21d   : > { %v3764_v19 = vxor.u32 2147483648, %v3758_v21  ;;  %v3768_v17 = vsel %vm3766_vm4, %v3767_v12, %v3758_v21  ;;  %v3924_v53 = vsel %vm3922_vm6, %v3767_v12, %v3758_v21 }
 0x21f   : > { %v3765_v25 = vsel %vm3763_vm9, %v3750_v46, %v3764_v19  ;;  %v3921_v31 = vsel %vm3919_vm10, %v3750_v46, %v3764_v19  ;;  %3935 = sbr.rel (!%p4347_p5) target bundleno = 556 (0x22c), region = 66 }
 0x220   : > { %v3769_v26 = vsel %vm3762_vm7, %v3765_v25, %v3768_v17  ;;  %v3925_v4 = vsel %vm3918_vm11, %v3921_v31, %v3924_v53 }
 0x221   : > { %v3770_v50 = vsel %vm3759_vm12, nan, %v3769_v26  ;;  %v3926_v62 = vsel %vm3759_vm12, nan, %v3925_v4 }
 0x222   : > { %4232 = vst [vmem:[%s4365_s26 + $0xc8] sm:$0xff] %v3770_v50 }
 0x223   : > { %4236 = vst [vmem:[%s4365_s26 + $0xd0] sm:$0xff] %v3926_v62 }
 0x229   : > { %v4068_v45 = vld [vmem:[%s4365_s26 + $0xc8] sm:$0xff] }
 0x22a   : > { %v4070_v11 = vld [vmem:[%s4365_s26 + $0xd0] sm:$0xff]  ;;  %4069 = vst [vmem:[%s5828_s30 + $0x190] sm:$0xff] %v4068_v45 }
 0x22b   : > { %4071 = vst [vmem:[%s5828_s30 + $0x1a0] sm:$0xff] %v4070_v11 }
 0x22c PF: > { %p8_p10 = scmp.ge.s32.totalorder %s4334_s10, 4   ;;  %s5915_s6 = smov %s4294_s7 }
 0x22d   : > { %s5916_s7 = smov %s4345_s13  ;;  %s5917_s8 = smov %s4334_s10 }
 0x22e   :  { %10 = sbr.rel (!%p8_p10) target bundleno = 2 (0x2), region = 163 }

</bundles_post_ra>
